<compile_context>
chip_gen: v5e
topology: v5e:2x2
jax: 0.10.0
libtpu: 0.0.40
codegen_flags: <defaults>
</compile_context>

<pallas_src>
import numpy as np
import jax
import jax.numpy as jnp
from jax import lax
from jax.experimental import pallas as pl
from jax.experimental.pallas import tpu as pltpu


# ----------------------------------------------------------------------------- kernel
def _fused_convlstm_kernel(gx1_ref, wc_ref, b2_ref, sl_ref, sr_ref, y_ref, c_last_ref):
    """Two stacked ConvLSTM layers, all timesteps, single invocation (no grid).

    gx1_ref:    (T, 4*H1, N)           hoisted layer-1 input projection + bias, per timestep
    wc_ref:     (4*H1+4*H2, K*(H1+H2)) combined gate weights, columns ordered (k, [h1, h2]):
                                         rows [0, 4*H1)      -> layer-1 hidden->gate weights
                                                                 (h2 columns are zero)
                                         rows [4*H1, 4*H1+4*H2) -> layer-2 gate weights
    b2_ref:     (4*H2, 1)              layer-2 gate bias
    sl_ref:     (N, N)  banded shift: (v @ sl)[:, n] = v[:, n-1]  (0 at l == 0, per batch)
    sr_ref:     (N, N)  banded shift: (v @ sr)[:, n] = v[:, n+1]  (0 at l == L-1, per batch)
    y_ref:      (T, H2, N)             layer-2 hidden state per timestep (module output)
    c_last_ref: (H2, N)                layer-2 cell state after the final timestep
    N = B*L (batch-major flattening of the spatial axis into the lane dim).
    """
    T, four_h1, N = gx1_ref.shape
    H1 = four_h1 // 4
    H2 = c_last_ref.shape[0]

    # Hoisted loads / broadcasts (reused across the unrolled loop).
    wc = wc_ref[...]
    sl = sl_ref[...]
    sr = sr_ref[...]
    b2 = jnp.broadcast_to(b2_ref[...], (4 * H2, N))

    def lstm_update(pre, c, h_dim):
        i = jax.nn.sigmoid(pre[0 * h_dim:1 * h_dim])
        f = jax.nn.sigmoid(pre[1 * h_dim:2 * h_dim])
        o = jax.nn.sigmoid(pre[2 * h_dim:3 * h_dim])
        g = jnp.tanh(pre[3 * h_dim:4 * h_dim])
        c_new = f * c + i * g
        return o * jnp.tanh(c_new), c_new

    c1 = jnp.zeros((H1, N), jnp.float32)
    c2 = jnp.zeros((H2, N), jnp.float32)
    h2 = jnp.zeros((H2, N), jnp.float32)
    pre1_rec = jnp.zeros((4 * H1, N), jnp.float32)   # conv(h1_{t-1}) gate term; unused at t==0

    for t in range(T):                               # fully unrolled recurrence
        # ---- layer 1: gates = hoisted conv(x_t)+b1  +  conv(h1_{t-1}) (from previous step)
        pre1 = gx1_ref[t]
        if t > 0:
            pre1 = pre1 + pre1_rec
        h1, c1 = lstm_update(pre1, c1, H1)

        # ---- kernel-3 'same' conv taps of [h1_t ; h2_{t-1}] via two banded shift matmuls
        hh = jnp.concatenate([h1, h2], axis=0)                        # (H1+H2, N)
        prv = jnp.dot(hh, sl, preferred_element_type=jnp.float32)     # hh[:, n-1]  (tap k=0)
        nxt = jnp.dot(hh, sr, preferred_element_type=jnp.float32)     # hh[:, n+1]  (tap k=2)
        rows = jnp.concatenate([prv, hh, nxt], axis=0)                # (3*(H1+H2), N)

        # ---- ONE combined gate matmul:
        #        rows [0, 4H1)  = conv(h1_t) gate term, i.e. layer-1 recurrence for t+1
        #        rows [4H1, ..) = layer-2 gate pre-activations at step t
        z = jnp.dot(wc, rows, preferred_element_type=jnp.float32)     # (4H1+4H2, N)
        pre1_rec = z[:4 * H1]
        pre2 = z[4 * H1:] + b2
        h2, c2 = lstm_update(pre2, c2, H2)

        y_ref[t] = h2

    c_last_ref[...] = c2


# ----------------------------------------------------------------------------- wrapper
def _conv_weight_kmajor(w):
    """(C_out, C_in, K) torch Conv1d weight -> (C_out, K*C_in), k-major column order."""
    c_out, c_in, k = w.shape
    return jnp.transpose(w, (0, 2, 1)).reshape(c_out, k * c_in)


@jax.jit
def lstm_forward(x_btcl, params):
    """Pallas implementation of LSTM.forward (2 stacked ConvLSTM cells, uni-directional,
    return_all_layers=False).  Returns (layer_output (B,T,H,L), (h_last, c_last))."""
    (w1, b1), (w2, b2) = params
    B, T, Cin, L = x_btcl.shape
    four_h1, _, K = w1.shape
    four_h2 = w2.shape[0]
    H1, H2 = four_h1 // 4, four_h2 // 4
    N = B * L
    assert K == 3 and w2.shape[2] == 3, "kernel written for kernel_size=3 ('same' padding)"
    assert w2.shape[1] == H1 + H2

    # ---- hoisted layer-1 input projection: conv(x_t) + b1 for ALL timesteps in one matmul
    wx1 = _conv_weight_kmajor(w1[:, :Cin, :])                         # (4H1, K*Cin)
    xp = jnp.pad(x_btcl, ((0, 0), (0, 0), (0, 0), (1, 1)))            # zero 'same' padding
    xtaps = jnp.stack([xp[..., k:k + L] for k in range(K)], axis=0)   # (K, B, T, Cin, L)
    xtaps = jnp.transpose(xtaps, (2, 0, 3, 1, 4)).reshape(T, K * Cin, N)
    gx1 = jnp.einsum('oc,tcn->ton', wx1, xtaps) + b1[None, :, None]   # (T, 4H1, N)

    # ---- combined hidden-path gate weights (k-major columns, [h1 cols, h2 cols] per k):
    #        rows [0, 4H1): layer-1 hidden->gate weights (h2 columns zero)
    #        rows [4H1, .): layer-2 gate weights (input = h1, hidden = h2 -> matches order)
    w1h_k = jnp.transpose(w1[:, Cin:, :], (0, 2, 1))                  # (4H1, K, H1)
    w1h_pad = jnp.pad(w1h_k, ((0, 0), (0, 0), (0, H2))).reshape(four_h1, K * (H1 + H2))
    w2_km = _conv_weight_kmajor(w2)                                   # (4H2, K*(H1+H2))
    w_comb = jnp.concatenate([w1h_pad, w2_km], axis=0)                # (4H1+4H2, K*(H1+H2))

    # ---- banded shift matrices implementing the conv taps on the flattened (B, L) lanes
    sl = jnp.asarray(np.kron(np.eye(B), np.eye(L, k=1)), dtype=jnp.float32)   # v[:, n-1]
    sr = jnp.asarray(np.kron(np.eye(B), np.eye(L, k=-1)), dtype=jnp.float32)  # v[:, n+1]

    y_thn, c_last_hn = pl.pallas_call(
        _fused_convlstm_kernel,
        out_shape=(jax.ShapeDtypeStruct((T, H2, N), jnp.float32),
                   jax.ShapeDtypeStruct((H2, N), jnp.float32)),
        in_specs=[pl.BlockSpec(memory_space=pltpu.MemorySpace.VMEM) for _ in range(5)],
        out_specs=(pl.BlockSpec(memory_space=pltpu.MemorySpace.VMEM),
                   pl.BlockSpec(memory_space=pltpu.MemorySpace.VMEM)),
    )(gx1, w_comb, b2.reshape(four_h2, 1), sl, sr)

    y = jnp.transpose(y_thn.reshape(T, H2, B, L), (2, 0, 1, 3))       # (B, T, H2, L)
    h_last = y[:, -1]                                                 # (B, H2, L)
    c_last = jnp.transpose(c_last_hn.reshape(H2, B, L), (1, 0, 2))    # (B, H2, L)
    return y, (h_last, c_last)


# ----------------------------------------------------------------------------- pure-JAX reference
def lstm_forward_ref(x_btcl, params):
    cur = x_btcl
    layer_out = None
    last_state = None
    for (w, b) in params:
        fourH, Ctot, K = w.shape
        Hd = fourH // 4
        B, T, _, L = cur.shape
        h = jnp.zeros((B, Hd, L), jnp.float32)
        c = jnp.zeros((B, Hd, L), jnp.float32)
        outs = []
        for t in range(T):
            xt = cur[:, t]                                            # (B, Cin, L)
            comb = jnp.concatenate([xt, h], axis=1)                   # (B, Cin+H, L)
            g = lax.conv_general_dilated(
                comb, w, window_strides=(1,), padding=[(K // 2, K // 2)],
                dimension_numbers=('NCH', 'OIH', 'NCH'),
                precision=lax.Precision.HIGHEST)
            g = g + b[None, :, None]
            i = jax.nn.sigmoid(g[:, 0 * Hd:1 * Hd])
            f = jax.nn.sigmoid(g[:, 1 * Hd:2 * Hd])
            o = jax.nn.sigmoid(g[:, 2 * Hd:3 * Hd])
            gg = jnp.tanh(g[:, 3 * Hd:4 * Hd])
            c = f * c + i * gg
            h = o * jnp.tanh(c)
            outs.append(h)
        cur = jnp.stack(outs, axis=1)
        layer_out, last_state = cur, (h, c)
    return layer_out, last_state


# ----------------------------------------------------------------------------- main
if __name__ == "__main__":
    B, T, Cin, L = 2, 8, 4, 16
    hidden_dims = [8, 8]
    kernel_size = 3

    key = jax.random.PRNGKey(0)
    key, kx = jax.random.split(key)
    x = jax.random.normal(kx, (B, T, Cin, L), dtype=jnp.float32)

    params = []
    in_dim = Cin
    for hd in hidden_dims:
        key, kw, kb = jax.random.split(key, 3)
        w = 0.3 * jax.random.normal(kw, (4 * hd, in_dim + hd, kernel_size), dtype=jnp.float32)
        b = 0.1 * jax.random.normal(kb, (4 * hd,), dtype=jnp.float32)
        params.append((w, b))
        in_dim = hd

    out, (h_last, c_last) = lstm_forward(x, params)
    jax.block_until_ready((out, h_last, c_last))

    out_r, (h_r, c_r) = lstm_forward_ref(x, params)
    # Kernel matmuls use default (single-pass MXU) precision vs. the HIGHEST-precision f32
    # reference, hence the 2e-2 tolerance.
    np.testing.assert_allclose(np.asarray(out), np.asarray(out_r), rtol=2e-2, atol=2e-2)
    np.testing.assert_allclose(np.asarray(h_last), np.asarray(h_r), rtol=2e-2, atol=2e-2)
    np.testing.assert_allclose(np.asarray(c_last), np.asarray(c_r), rtol=2e-2, atol=2e-2)

    print("KERNEL_OK")
</pallas_src>

<mosaic_0001>
module attributes {stable_mosaic.version = 11 : i64} {
  func.func @_fused_convlstm_kernel(%arg0: memref<8x32x32xf32, #tpu.memory_space<vmem>>, %arg1: memref<64x48xf32, #tpu.memory_space<vmem>>, %arg2: memref<32x1xf32, #tpu.memory_space<vmem>>, %arg3: memref<32x32xf32, #tpu.memory_space<vmem>>, %arg4: memref<32x32xf32, #tpu.memory_space<vmem>>, %arg5: memref<8x8x32xf32, #tpu.memory_space<vmem>>, %arg6: memref<8x32xf32, #tpu.memory_space<vmem>>) attributes {dimension_semantics = [], scalar_prefetch = 0 : i64, scratch_operands = 0 : i64, tpu.core_type = #tpu.core_type<tc>} {
    %c0 = arith.constant 0 : index
    %c0_0 = arith.constant 0 : index
    %0 = vector.load %arg1[%c0, %c0_0] : memref<64x48xf32, #tpu.memory_space<vmem>>, vector<64x48xf32>
    %c0_1 = arith.constant 0 : index
    %c0_2 = arith.constant 0 : index
    %1 = vector.load %arg3[%c0_1, %c0_2] : memref<32x32xf32, #tpu.memory_space<vmem>>, vector<32x32xf32>
    %c0_3 = arith.constant 0 : index
    %c0_4 = arith.constant 0 : index
    %2 = vector.load %arg4[%c0_3, %c0_4] : memref<32x32xf32, #tpu.memory_space<vmem>>, vector<32x32xf32>
    %c0_5 = arith.constant 0 : index
    %c0_6 = arith.constant 0 : index
    %3 = vector.load %arg2[%c0_5, %c0_6] : memref<32x1xf32, #tpu.memory_space<vmem>>, vector<32x1xf32>
    %4 = vector.shape_cast %3 : vector<32x1xf32> to vector<32x1xf32>
    %5 = vector.broadcast %4 : vector<32x1xf32> to vector<32x32xf32>
    %cst = arith.constant 0.000000e+00 : f32
    %6 = vector.broadcast %cst : f32 to vector<8x32xf32>
    %cst_7 = arith.constant 0.000000e+00 : f32
    %7 = vector.broadcast %cst_7 : f32 to vector<8x32xf32>
    %cst_8 = arith.constant 0.000000e+00 : f32
    %8 = vector.broadcast %cst_8 : f32 to vector<8x32xf32>
    %c0_9 = arith.constant 0 : index
    %c0_10 = arith.constant 0 : index
    %c0_11 = arith.constant 0 : index
    %9 = vector.load %arg0[%c0_9, %c0_10, %c0_11] : memref<8x32x32xf32, #tpu.memory_space<vmem>>, vector<1x32x32xf32>
    %10 = vector.shape_cast %9 : vector<1x32x32xf32> to vector<32x32xf32>
    %11 = vector.extract_strided_slice %10 {offsets = [0, 0], sizes = [8, 32], strides = [1, 1]} : vector<32x32xf32> to vector<8x32xf32>
    %12 = arith.negf %11 : vector<8x32xf32>
    %13 = math.exp %12 : vector<8x32xf32>
    %cst_12 = arith.constant 1.000000e+00 : f32
    %14 = vector.broadcast %cst_12 : f32 to vector<8x32xf32>
    %15 = arith.addf %14, %13 : vector<8x32xf32>
    %16 = arith.divf %14, %15 : vector<8x32xf32>
    %17 = vector.extract_strided_slice %10 {offsets = [8, 0], sizes = [8, 32], strides = [1, 1]} : vector<32x32xf32> to vector<8x32xf32>
    %18 = arith.negf %17 : vector<8x32xf32>
    %19 = math.exp %18 : vector<8x32xf32>
    %cst_13 = arith.constant 1.000000e+00 : f32
    %20 = vector.broadcast %cst_13 : f32 to vector<8x32xf32>
    %21 = arith.addf %20, %19 : vector<8x32xf32>
    %22 = arith.divf %20, %21 : vector<8x32xf32>
    %23 = vector.extract_strided_slice %10 {offsets = [16, 0], sizes = [8, 32], strides = [1, 1]} : vector<32x32xf32> to vector<8x32xf32>
    %24 = arith.negf %23 : vector<8x32xf32>
    %25 = math.exp %24 : vector<8x32xf32>
    %cst_14 = arith.constant 1.000000e+00 : f32
    %26 = vector.broadcast %cst_14 : f32 to vector<8x32xf32>
    %27 = arith.addf %26, %25 : vector<8x32xf32>
    %28 = arith.divf %26, %27 : vector<8x32xf32>
    %29 = vector.extract_strided_slice %10 {offsets = [24, 0], sizes = [8, 32], strides = [1, 1]} : vector<32x32xf32> to vector<8x32xf32>
    %30 = math.tanh %29 : vector<8x32xf32>
    %31 = arith.mulf %22, %6 : vector<8x32xf32>
    %32 = arith.mulf %16, %30 : vector<8x32xf32>
    %33 = arith.addf %31, %32 : vector<8x32xf32>
    %34 = math.tanh %33 : vector<8x32xf32>
    %35 = arith.mulf %28, %34 : vector<8x32xf32>
    %36 = tpu.concatenate %35, %8 in 0 : vector<8x32xf32>, vector<8x32xf32> -> vector<16x32xf32>
    %cst_15 = arith.constant dense<0.000000e+00> : vector<16x32xf32>
    %37 = tpu.matmul %36, %1, %cst_15 {dimension_numbers = #tpu.dot_dimension_numbers<[1], [0], [0], [1], [0, 0, 1, 1], [], []>} : vector<16x32xf32>, vector<32x32xf32>, vector<16x32xf32> -> vector<16x32xf32>
    %cst_16 = arith.constant dense<0.000000e+00> : vector<16x32xf32>
    %38 = tpu.matmul %36, %2, %cst_16 {dimension_numbers = #tpu.dot_dimension_numbers<[1], [0], [0], [1], [0, 0, 1, 1], [], []>} : vector<16x32xf32>, vector<32x32xf32>, vector<16x32xf32> -> vector<16x32xf32>
    %39 = tpu.concatenate %37, %36, %38 in 0 : vector<16x32xf32>, vector<16x32xf32>, vector<16x32xf32> -> vector<48x32xf32>
    %cst_17 = arith.constant dense<0.000000e+00> : vector<64x32xf32>
    %40 = tpu.matmul %0, %39, %cst_17 {dimension_numbers = #tpu.dot_dimension_numbers<[1], [0], [0], [1], [0, 0, 1, 1], [], []>} : vector<64x48xf32>, vector<48x32xf32>, vector<64x32xf32> -> vector<64x32xf32>
    %41 = vector.extract_strided_slice %40 {offsets = [0, 0], sizes = [32, 32], strides = [1, 1]} : vector<64x32xf32> to vector<32x32xf32>
    %42 = vector.extract_strided_slice %40 {offsets = [32, 0], sizes = [32, 32], strides = [1, 1]} : vector<64x32xf32> to vector<32x32xf32>
    %43 = arith.addf %42, %5 : vector<32x32xf32>
    %44 = vector.extract_strided_slice %43 {offsets = [0, 0], sizes = [8, 32], strides = [1, 1]} : vector<32x32xf32> to vector<8x32xf32>
    %45 = arith.negf %44 : vector<8x32xf32>
    %46 = math.exp %45 : vector<8x32xf32>
    %cst_18 = arith.constant 1.000000e+00 : f32
    %47 = vector.broadcast %cst_18 : f32 to vector<8x32xf32>
    %48 = arith.addf %47, %46 : vector<8x32xf32>
    %49 = arith.divf %47, %48 : vector<8x32xf32>
    %50 = vector.extract_strided_slice %43 {offsets = [8, 0], sizes = [8, 32], strides = [1, 1]} : vector<32x32xf32> to vector<8x32xf32>
    %51 = arith.negf %50 : vector<8x32xf32>
    %52 = math.exp %51 : vector<8x32xf32>
    %cst_19 = arith.constant 1.000000e+00 : f32
    %53 = vector.broadcast %cst_19 : f32 to vector<8x32xf32>
    %54 = arith.addf %53, %52 : vector<8x32xf32>
    %55 = arith.divf %53, %54 : vector<8x32xf32>
    %56 = vector.extract_strided_slice %43 {offsets = [16, 0], sizes = [8, 32], strides = [1, 1]} : vector<32x32xf32> to vector<8x32xf32>
    %57 = arith.negf %56 : vector<8x32xf32>
    %58 = math.exp %57 : vector<8x32xf32>
    %cst_20 = arith.constant 1.000000e+00 : f32
    %59 = vector.broadcast %cst_20 : f32 to vector<8x32xf32>
    %60 = arith.addf %59, %58 : vector<8x32xf32>
    %61 = arith.divf %59, %60 : vector<8x32xf32>
    %62 = vector.extract_strided_slice %43 {offsets = [24, 0], sizes = [8, 32], strides = [1, 1]} : vector<32x32xf32> to vector<8x32xf32>
    %63 = math.tanh %62 : vector<8x32xf32>
    %64 = arith.mulf %55, %7 : vector<8x32xf32>
    %65 = arith.mulf %49, %63 : vector<8x32xf32>
    %66 = arith.addf %64, %65 : vector<8x32xf32>
    %67 = math.tanh %66 : vector<8x32xf32>
    %68 = arith.mulf %61, %67 : vector<8x32xf32>
    %c0_21 = arith.constant 0 : index
    %c0_22 = arith.constant 0 : index
    %c0_23 = arith.constant 0 : index
    %69 = vector.load %arg5[%c0_21, %c0_22, %c0_23] : memref<8x8x32xf32, #tpu.memory_space<vmem>>, vector<1x8x32xf32>
    %70 = vector.shape_cast %69 : vector<1x8x32xf32> to vector<8x32xf32>
    %71 = vector.shape_cast %68 : vector<8x32xf32> to vector<1x8x32xf32>
    tpu.vector_store %arg5[%c0_21, %c0_22, %c0_23], %71 {strides = array<i32>} : memref<8x8x32xf32, #tpu.memory_space<vmem>>, vector<1x8x32xf32>,
    %c1 = arith.constant 1 : index
    %c0_24 = arith.constant 0 : index
    %c0_25 = arith.constant 0 : index
    %72 = vector.load %arg0[%c1, %c0_24, %c0_25] : memref<8x32x32xf32, #tpu.memory_space<vmem>>, vector<1x32x32xf32>
    %73 = vector.shape_cast %72 : vector<1x32x32xf32> to vector<32x32xf32>
    %74 = arith.addf %73, %41 : vector<32x32xf32>
    %75 = vector.extract_strided_slice %74 {offsets = [0, 0], sizes = [8, 32], strides = [1, 1]} : vector<32x32xf32> to vector<8x32xf32>
    %76 = arith.negf %75 : vector<8x32xf32>
    %77 = math.exp %76 : vector<8x32xf32>
    %cst_26 = arith.constant 1.000000e+00 : f32
    %78 = vector.broadcast %cst_26 : f32 to vector<8x32xf32>
    %79 = arith.addf %78, %77 : vector<8x32xf32>
    %80 = arith.divf %78, %79 : vector<8x32xf32>
    %81 = vector.extract_strided_slice %74 {offsets = [8, 0], sizes = [8, 32], strides = [1, 1]} : vector<32x32xf32> to vector<8x32xf32>
    %82 = arith.negf %81 : vector<8x32xf32>
    %83 = math.exp %82 : vector<8x32xf32>
    %cst_27 = arith.constant 1.000000e+00 : f32
    %84 = vector.broadcast %cst_27 : f32 to vector<8x32xf32>
    %85 = arith.addf %84, %83 : vector<8x32xf32>
    %86 = arith.divf %84, %85 : vector<8x32xf32>
    %87 = vector.extract_strided_slice %74 {offsets = [16, 0], sizes = [8, 32], strides = [1, 1]} : vector<32x32xf32> to vector<8x32xf32>
    %88 = arith.negf %87 : vector<8x32xf32>
    %89 = math.exp %88 : vector<8x32xf32>
    %cst_28 = arith.constant 1.000000e+00 : f32
    %90 = vector.broadcast %cst_28 : f32 to vector<8x32xf32>
    %91 = arith.addf %90, %89 : vector<8x32xf32>
    %92 = arith.divf %90, %91 : vector<8x32xf32>
    %93 = vector.extract_strided_slice %74 {offsets = [24, 0], sizes = [8, 32], strides = [1, 1]} : vector<32x32xf32> to vector<8x32xf32>
    %94 = math.tanh %93 : vector<8x32xf32>
    %95 = arith.mulf %86, %33 : vector<8x32xf32>
    %96 = arith.mulf %80, %94 : vector<8x32xf32>
    %97 = arith.addf %95, %96 : vector<8x32xf32>
    %98 = math.tanh %97 : vector<8x32xf32>
    %99 = arith.mulf %92, %98 : vector<8x32xf32>
    %100 = tpu.concatenate %99, %68 in 0 : vector<8x32xf32>, vector<8x32xf32> -> vector<16x32xf32>
    %cst_29 = arith.constant dense<0.000000e+00> : vector<16x32xf32>
    %101 = tpu.matmul %100, %1, %cst_29 {dimension_numbers = #tpu.dot_dimension_numbers<[1], [0], [0], [1], [0, 0, 1, 1], [], []>} : vector<16x32xf32>, vector<32x32xf32>, vector<16x32xf32> -> vector<16x32xf32>
    %cst_30 = arith.constant dense<0.000000e+00> : vector<16x32xf32>
    %102 = tpu.matmul %100, %2, %cst_30 {dimension_numbers = #tpu.dot_dimension_numbers<[1], [0], [0], [1], [0, 0, 1, 1], [], []>} : vector<16x32xf32>, vector<32x32xf32>, vector<16x32xf32> -> vector<16x32xf32>
    %103 = tpu.concatenate %101, %100, %102 in 0 : vector<16x32xf32>, vector<16x32xf32>, vector<16x32xf32> -> vector<48x32xf32>
    %cst_31 = arith.constant dense<0.000000e+00> : vector<64x32xf32>
    %104 = tpu.matmul %0, %103, %cst_31 {dimension_numbers = #tpu.dot_dimension_numbers<[1], [0], [0], [1], [0, 0, 1, 1], [], []>} : vector<64x48xf32>, vector<48x32xf32>, vector<64x32xf32> -> vector<64x32xf32>
    %105 = vector.extract_strided_slice %104 {offsets = [0, 0], sizes = [32, 32], strides = [1, 1]} : vector<64x32xf32> to vector<32x32xf32>
    %106 = vector.extract_strided_slice %104 {offsets = [32, 0], sizes = [32, 32], strides = [1, 1]} : vector<64x32xf32> to vector<32x32xf32>
    %107 = arith.addf %106, %5 : vector<32x32xf32>
    %108 = vector.extract_strided_slice %107 {offsets = [0, 0], sizes = [8, 32], strides = [1, 1]} : vector<32x32xf32> to vector<8x32xf32>
    %109 = arith.negf %108 : vector<8x32xf32>
    %110 = math.exp %109 : vector<8x32xf32>
    %cst_32 = arith.constant 1.000000e+00 : f32
    %111 = vector.broadcast %cst_32 : f32 to vector<8x32xf32>
    %112 = arith.addf %111, %110 : vector<8x32xf32>
    %113 = arith.divf %111, %112 : vector<8x32xf32>
    %114 = vector.extract_strided_slice %107 {offsets = [8, 0], sizes = [8, 32], strides = [1, 1]} : vector<32x32xf32> to vector<8x32xf32>
    %115 = arith.negf %114 : vector<8x32xf32>
    %116 = math.exp %115 : vector<8x32xf32>
    %cst_33 = arith.constant 1.000000e+00 : f32
    %117 = vector.broadcast %cst_33 : f32 to vector<8x32xf32>
    %118 = arith.addf %117, %116 : vector<8x32xf32>
    %119 = arith.divf %117, %118 : vector<8x32xf32>
    %120 = vector.extract_strided_slice %107 {offsets = [16, 0], sizes = [8, 32], strides = [1, 1]} : vector<32x32xf32> to vector<8x32xf32>
    %121 = arith.negf %120 : vector<8x32xf32>
    %122 = math.exp %121 : vector<8x32xf32>
    %cst_34 = arith.constant 1.000000e+00 : f32
    %123 = vector.broadcast %cst_34 : f32 to vector<8x32xf32>
    %124 = arith.addf %123, %122 : vector<8x32xf32>
    %125 = arith.divf %123, %124 : vector<8x32xf32>
    %126 = vector.extract_strided_slice %107 {offsets = [24, 0], sizes = [8, 32], strides = [1, 1]} : vector<32x32xf32> to vector<8x32xf32>
    %127 = math.tanh %126 : vector<8x32xf32>
    %128 = arith.mulf %119, %66 : vector<8x32xf32>
    %129 = arith.mulf %113, %127 : vector<8x32xf32>
    %130 = arith.addf %128, %129 : vector<8x32xf32>
    %131 = math.tanh %130 : vector<8x32xf32>
    %132 = arith.mulf %125, %131 : vector<8x32xf32>
    %c1_35 = arith.constant 1 : index
    %c0_36 = arith.constant 0 : index
    %c0_37 = arith.constant 0 : index
    %133 = vector.load %arg5[%c1_35, %c0_36, %c0_37] : memref<8x8x32xf32, #tpu.memory_space<vmem>>, vector<1x8x32xf32>
    %134 = vector.shape_cast %133 : vector<1x8x32xf32> to vector<8x32xf32>
    %135 = vector.shape_cast %132 : vector<8x32xf32> to vector<1x8x32xf32>
    tpu.vector_store %arg5[%c1_35, %c0_36, %c0_37], %135 {strides = array<i32>} : memref<8x8x32xf32, #tpu.memory_space<vmem>>, vector<1x8x32xf32>,
    %c2 = arith.constant 2 : index
    %c0_38 = arith.constant 0 : index
    %c0_39 = arith.constant 0 : index
    %136 = vector.load %arg0[%c2, %c0_38, %c0_39] : memref<8x32x32xf32, #tpu.memory_space<vmem>>, vector<1x32x32xf32>
    %137 = vector.shape_cast %136 : vector<1x32x32xf32> to vector<32x32xf32>
    %138 = arith.addf %137, %105 : vector<32x32xf32>
    %139 = vector.extract_strided_slice %138 {offsets = [0, 0], sizes = [8, 32], strides = [1, 1]} : vector<32x32xf32> to vector<8x32xf32>
    %140 = arith.negf %139 : vector<8x32xf32>
    %141 = math.exp %140 : vector<8x32xf32>
    %cst_40 = arith.constant 1.000000e+00 : f32
    %142 = vector.broadcast %cst_40 : f32 to vector<8x32xf32>
    %143 = arith.addf %142, %141 : vector<8x32xf32>
    %144 = arith.divf %142, %143 : vector<8x32xf32>
    %145 = vector.extract_strided_slice %138 {offsets = [8, 0], sizes = [8, 32], strides = [1, 1]} : vector<32x32xf32> to vector<8x32xf32>
    %146 = arith.negf %145 : vector<8x32xf32>
    %147 = math.exp %146 : vector<8x32xf32>
    %cst_41 = arith.constant 1.000000e+00 : f32
    %148 = vector.broadcast %cst_41 : f32 to vector<8x32xf32>
    %149 = arith.addf %148, %147 : vector<8x32xf32>
    %150 = arith.divf %148, %149 : vector<8x32xf32>
    %151 = vector.extract_strided_slice %138 {offsets = [16, 0], sizes = [8, 32], strides = [1, 1]} : vector<32x32xf32> to vector<8x32xf32>
    %152 = arith.negf %151 : vector<8x32xf32>
    %153 = math.exp %152 : vector<8x32xf32>
    %cst_42 = arith.constant 1.000000e+00 : f32
    %154 = vector.broadcast %cst_42 : f32 to vector<8x32xf32>
    %155 = arith.addf %154, %153 : vector<8x32xf32>
    %156 = arith.divf %154, %155 : vector<8x32xf32>
    %157 = vector.extract_strided_slice %138 {offsets = [24, 0], sizes = [8, 32], strides = [1, 1]} : vector<32x32xf32> to vector<8x32xf32>
    %158 = math.tanh %157 : vector<8x32xf32>
    %159 = arith.mulf %150, %97 : vector<8x32xf32>
    %160 = arith.mulf %144, %158 : vector<8x32xf32>
    %161 = arith.addf %159, %160 : vector<8x32xf32>
    %162 = math.tanh %161 : vector<8x32xf32>
    %163 = arith.mulf %156, %162 : vector<8x32xf32>
    %164 = tpu.concatenate %163, %132 in 0 : vector<8x32xf32>, vector<8x32xf32> -> vector<16x32xf32>
    %cst_43 = arith.constant dense<0.000000e+00> : vector<16x32xf32>
    %165 = tpu.matmul %164, %1, %cst_43 {dimension_numbers = #tpu.dot_dimension_numbers<[1], [0], [0], [1], [0, 0, 1, 1], [], []>} : vector<16x32xf32>, vector<32x32xf32>, vector<16x32xf32> -> vector<16x32xf32>
    %cst_44 = arith.constant dense<0.000000e+00> : vector<16x32xf32>
    %166 = tpu.matmul %164, %2, %cst_44 {dimension_numbers = #tpu.dot_dimension_numbers<[1], [0], [0], [1], [0, 0, 1, 1], [], []>} : vector<16x32xf32>, vector<32x32xf32>, vector<16x32xf32> -> vector<16x32xf32>
    %167 = tpu.concatenate %165, %164, %166 in 0 : vector<16x32xf32>, vector<16x32xf32>, vector<16x32xf32> -> vector<48x32xf32>
    %cst_45 = arith.constant dense<0.000000e+00> : vector<64x32xf32>
    %168 = tpu.matmul %0, %167, %cst_45 {dimension_numbers = #tpu.dot_dimension_numbers<[1], [0], [0], [1], [0, 0, 1, 1], [], []>} : vector<64x48xf32>, vector<48x32xf32>, vector<64x32xf32> -> vector<64x32xf32>
    %169 = vector.extract_strided_slice %168 {offsets = [0, 0], sizes = [32, 32], strides = [1, 1]} : vector<64x32xf32> to vector<32x32xf32>
    %170 = vector.extract_strided_slice %168 {offsets = [32, 0], sizes = [32, 32], strides = [1, 1]} : vector<64x32xf32> to vector<32x32xf32>
    %171 = arith.addf %170, %5 : vector<32x32xf32>
    %172 = vector.extract_strided_slice %171 {offsets = [0, 0], sizes = [8, 32], strides = [1, 1]} : vector<32x32xf32> to vector<8x32xf32>
    %173 = arith.negf %172 : vector<8x32xf32>
    %174 = math.exp %173 : vector<8x32xf32>
    %cst_46 = arith.constant 1.000000e+00 : f32
    %175 = vector.broadcast %cst_46 : f32 to vector<8x32xf32>
    %176 = arith.addf %175, %174 : vector<8x32xf32>
    %177 = arith.divf %175, %176 : vector<8x32xf32>
    %178 = vector.extract_strided_slice %171 {offsets = [8, 0], sizes = [8, 32], strides = [1, 1]} : vector<32x32xf32> to vector<8x32xf32>
    %179 = arith.negf %178 : vector<8x32xf32>
    %180 = math.exp %179 : vector<8x32xf32>
    %cst_47 = arith.constant 1.000000e+00 : f32
    %181 = vector.broadcast %cst_47 : f32 to vector<8x32xf32>
    %182 = arith.addf %181, %180 : vector<8x32xf32>
    %183 = arith.divf %181, %182 : vector<8x32xf32>
    %184 = vector.extract_strided_slice %171 {offsets = [16, 0], sizes = [8, 32], strides = [1, 1]} : vector<32x32xf32> to vector<8x32xf32>
    %185 = arith.negf %184 : vector<8x32xf32>
    %186 = math.exp %185 : vector<8x32xf32>
    %cst_48 = arith.constant 1.000000e+00 : f32
    %187 = vector.broadcast %cst_48 : f32 to vector<8x32xf32>
    %188 = arith.addf %187, %186 : vector<8x32xf32>
    %189 = arith.divf %187, %188 : vector<8x32xf32>
    %190 = vector.extract_strided_slice %171 {offsets = [24, 0], sizes = [8, 32], strides = [1, 1]} : vector<32x32xf32> to vector<8x32xf32>
    %191 = math.tanh %190 : vector<8x32xf32>
    %192 = arith.mulf %183, %130 : vector<8x32xf32>
    %193 = arith.mulf %177, %191 : vector<8x32xf32>
    %194 = arith.addf %192, %193 : vector<8x32xf32>
    %195 = math.tanh %194 : vector<8x32xf32>
    %196 = arith.mulf %189, %195 : vector<8x32xf32>
    %c2_49 = arith.constant 2 : index
    %c0_50 = arith.constant 0 : index
    %c0_51 = arith.constant 0 : index
    %197 = vector.load %arg5[%c2_49, %c0_50, %c0_51] : memref<8x8x32xf32, #tpu.memory_space<vmem>>, vector<1x8x32xf32>
    %198 = vector.shape_cast %197 : vector<1x8x32xf32> to vector<8x32xf32>
    %199 = vector.shape_cast %196 : vector<8x32xf32> to vector<1x8x32xf32>
    tpu.vector_store %arg5[%c2_49, %c0_50, %c0_51], %199 {strides = array<i32>} : memref<8x8x32xf32, #tpu.memory_space<vmem>>, vector<1x8x32xf32>,
    %c3 = arith.constant 3 : index
    %c0_52 = arith.constant 0 : index
    %c0_53 = arith.constant 0 : index
    %200 = vector.load %arg0[%c3, %c0_52, %c0_53] : memref<8x32x32xf32, #tpu.memory_space<vmem>>, vector<1x32x32xf32>
    %201 = vector.shape_cast %200 : vector<1x32x32xf32> to vector<32x32xf32>
    %202 = arith.addf %201, %169 : vector<32x32xf32>
    %203 = vector.extract_strided_slice %202 {offsets = [0, 0], sizes = [8, 32], strides = [1, 1]} : vector<32x32xf32> to vector<8x32xf32>
    %204 = arith.negf %203 : vector<8x32xf32>
    %205 = math.exp %204 : vector<8x32xf32>
    %cst_54 = arith.constant 1.000000e+00 : f32
    %206 = vector.broadcast %cst_54 : f32 to vector<8x32xf32>
    %207 = arith.addf %206, %205 : vector<8x32xf32>
    %208 = arith.divf %206, %207 : vector<8x32xf32>
    %209 = vector.extract_strided_slice %202 {offsets = [8, 0], sizes = [8, 32], strides = [1, 1]} : vector<32x32xf32> to vector<8x32xf32>
    %210 = arith.negf %209 : vector<8x32xf32>
    %211 = math.exp %210 : vector<8x32xf32>
    %cst_55 = arith.constant 1.000000e+00 : f32
    %212 = vector.broadcast %cst_55 : f32 to vector<8x32xf32>
    %213 = arith.addf %212, %211 : vector<8x32xf32>
    %214 = arith.divf %212, %213 : vector<8x32xf32>
    %215 = vector.extract_strided_slice %202 {offsets = [16, 0], sizes = [8, 32], strides = [1, 1]} : vector<32x32xf32> to vector<8x32xf32>
    %216 = arith.negf %215 : vector<8x32xf32>
    %217 = math.exp %216 : vector<8x32xf32>
    %cst_56 = arith.constant 1.000000e+00 : f32
    %218 = vector.broadcast %cst_56 : f32 to vector<8x32xf32>
    %219 = arith.addf %218, %217 : vector<8x32xf32>
    %220 = arith.divf %218, %219 : vector<8x32xf32>
    %221 = vector.extract_strided_slice %202 {offsets = [24, 0], sizes = [8, 32], strides = [1, 1]} : vector<32x32xf32> to vector<8x32xf32>
    %222 = math.tanh %221 : vector<8x32xf32>
    %223 = arith.mulf %214, %161 : vector<8x32xf32>
    %224 = arith.mulf %208, %222 : vector<8x32xf32>
    %225 = arith.addf %223, %224 : vector<8x32xf32>
    %226 = math.tanh %225 : vector<8x32xf32>
    %227 = arith.mulf %220, %226 : vector<8x32xf32>
    %228 = tpu.concatenate %227, %196 in 0 : vector<8x32xf32>, vector<8x32xf32> -> vector<16x32xf32>
    %cst_57 = arith.constant dense<0.000000e+00> : vector<16x32xf32>
    %229 = tpu.matmul %228, %1, %cst_57 {dimension_numbers = #tpu.dot_dimension_numbers<[1], [0], [0], [1], [0, 0, 1, 1], [], []>} : vector<16x32xf32>, vector<32x32xf32>, vector<16x32xf32> -> vector<16x32xf32>
    %cst_58 = arith.constant dense<0.000000e+00> : vector<16x32xf32>
    %230 = tpu.matmul %228, %2, %cst_58 {dimension_numbers = #tpu.dot_dimension_numbers<[1], [0], [0], [1], [0, 0, 1, 1], [], []>} : vector<16x32xf32>, vector<32x32xf32>, vector<16x32xf32> -> vector<16x32xf32>
    %231 = tpu.concatenate %229, %228, %230 in 0 : vector<16x32xf32>, vector<16x32xf32>, vector<16x32xf32> -> vector<48x32xf32>
    %cst_59 = arith.constant dense<0.000000e+00> : vector<64x32xf32>
    %232 = tpu.matmul %0, %231, %cst_59 {dimension_numbers = #tpu.dot_dimension_numbers<[1], [0], [0], [1], [0, 0, 1, 1], [], []>} : vector<64x48xf32>, vector<48x32xf32>, vector<64x32xf32> -> vector<64x32xf32>
    %233 = vector.extract_strided_slice %232 {offsets = [0, 0], sizes = [32, 32], strides = [1, 1]} : vector<64x32xf32> to vector<32x32xf32>
    %234 = vector.extract_strided_slice %232 {offsets = [32, 0], sizes = [32, 32], strides = [1, 1]} : vector<64x32xf32> to vector<32x32xf32>
    %235 = arith.addf %234, %5 : vector<32x32xf32>
    %236 = vector.extract_strided_slice %235 {offsets = [0, 0], sizes = [8, 32], strides = [1, 1]} : vector<32x32xf32> to vector<8x32xf32>
    %237 = arith.negf %236 : vector<8x32xf32>
    %238 = math.exp %237 : vector<8x32xf32>
    %cst_60 = arith.constant 1.000000e+00 : f32
    %239 = vector.broadcast %cst_60 : f32 to vector<8x32xf32>
    %240 = arith.addf %239, %238 : vector<8x32xf32>
    %241 = arith.divf %239, %240 : vector<8x32xf32>
    %242 = vector.extract_strided_slice %235 {offsets = [8, 0], sizes = [8, 32], strides = [1, 1]} : vector<32x32xf32> to vector<8x32xf32>
    %243 = arith.negf %242 : vector<8x32xf32>
    %244 = math.exp %243 : vector<8x32xf32>
    %cst_61 = arith.constant 1.000000e+00 : f32
    %245 = vector.broadcast %cst_61 : f32 to vector<8x32xf32>
    %246 = arith.addf %245, %244 : vector<8x32xf32>
    %247 = arith.divf %245, %246 : vector<8x32xf32>
    %248 = vector.extract_strided_slice %235 {offsets = [16, 0], sizes = [8, 32], strides = [1, 1]} : vector<32x32xf32> to vector<8x32xf32>
    %249 = arith.negf %248 : vector<8x32xf32>
    %250 = math.exp %249 : vector<8x32xf32>
    %cst_62 = arith.constant 1.000000e+00 : f32
    %251 = vector.broadcast %cst_62 : f32 to vector<8x32xf32>
    %252 = arith.addf %251, %250 : vector<8x32xf32>
    %253 = arith.divf %251, %252 : vector<8x32xf32>
    %254 = vector.extract_strided_slice %235 {offsets = [24, 0], sizes = [8, 32], strides = [1, 1]} : vector<32x32xf32> to vector<8x32xf32>
    %255 = math.tanh %254 : vector<8x32xf32>
    %256 = arith.mulf %247, %194 : vector<8x32xf32>
    %257 = arith.mulf %241, %255 : vector<8x32xf32>
    %258 = arith.addf %256, %257 : vector<8x32xf32>
    %259 = math.tanh %258 : vector<8x32xf32>
    %260 = arith.mulf %253, %259 : vector<8x32xf32>
    %c3_63 = arith.constant 3 : index
    %c0_64 = arith.constant 0 : index
    %c0_65 = arith.constant 0 : index
    %261 = vector.load %arg5[%c3_63, %c0_64, %c0_65] : memref<8x8x32xf32, #tpu.memory_space<vmem>>, vector<1x8x32xf32>
    %262 = vector.shape_cast %261 : vector<1x8x32xf32> to vector<8x32xf32>
    %263 = vector.shape_cast %260 : vector<8x32xf32> to vector<1x8x32xf32>
    tpu.vector_store %arg5[%c3_63, %c0_64, %c0_65], %263 {strides = array<i32>} : memref<8x8x32xf32, #tpu.memory_space<vmem>>, vector<1x8x32xf32>,
    %c4 = arith.constant 4 : index
    %c0_66 = arith.constant 0 : index
    %c0_67 = arith.constant 0 : index
    %264 = vector.load %arg0[%c4, %c0_66, %c0_67] : memref<8x32x32xf32, #tpu.memory_space<vmem>>, vector<1x32x32xf32>
    %265 = vector.shape_cast %264 : vector<1x32x32xf32> to vector<32x32xf32>
    %266 = arith.addf %265, %233 : vector<32x32xf32>
    %267 = vector.extract_strided_slice %266 {offsets = [0, 0], sizes = [8, 32], strides = [1, 1]} : vector<32x32xf32> to vector<8x32xf32>
    %268 = arith.negf %267 : vector<8x32xf32>
    %269 = math.exp %268 : vector<8x32xf32>
    %cst_68 = arith.constant 1.000000e+00 : f32
    %270 = vector.broadcast %cst_68 : f32 to vector<8x32xf32>
    %271 = arith.addf %270, %269 : vector<8x32xf32>
    %272 = arith.divf %270, %271 : vector<8x32xf32>
    %273 = vector.extract_strided_slice %266 {offsets = [8, 0], sizes = [8, 32], strides = [1, 1]} : vector<32x32xf32> to vector<8x32xf32>
    %274 = arith.negf %273 : vector<8x32xf32>
    %275 = math.exp %274 : vector<8x32xf32>
    %cst_69 = arith.constant 1.000000e+00 : f32
    %276 = vector.broadcast %cst_69 : f32 to vector<8x32xf32>
    %277 = arith.addf %276, %275 : vector<8x32xf32>
    %278 = arith.divf %276, %277 : vector<8x32xf32>
    %279 = vector.extract_strided_slice %266 {offsets = [16, 0], sizes = [8, 32], strides = [1, 1]} : vector<32x32xf32> to vector<8x32xf32>
    %280 = arith.negf %279 : vector<8x32xf32>
    %281 = math.exp %280 : vector<8x32xf32>
    %cst_70 = arith.constant 1.000000e+00 : f32
    %282 = vector.broadcast %cst_70 : f32 to vector<8x32xf32>
    %283 = arith.addf %282, %281 : vector<8x32xf32>
    %284 = arith.divf %282, %283 : vector<8x32xf32>
    %285 = vector.extract_strided_slice %266 {offsets = [24, 0], sizes = [8, 32], strides = [1, 1]} : vector<32x32xf32> to vector<8x32xf32>
    %286 = math.tanh %285 : vector<8x32xf32>
    %287 = arith.mulf %278, %225 : vector<8x32xf32>
    %288 = arith.mulf %272, %286 : vector<8x32xf32>
    %289 = arith.addf %287, %288 : vector<8x32xf32>
    %290 = math.tanh %289 : vector<8x32xf32>
    %291 = arith.mulf %284, %290 : vector<8x32xf32>
    %292 = tpu.concatenate %291, %260 in 0 : vector<8x32xf32>, vector<8x32xf32> -> vector<16x32xf32>
    %cst_71 = arith.constant dense<0.000000e+00> : vector<16x32xf32>
    %293 = tpu.matmul %292, %1, %cst_71 {dimension_numbers = #tpu.dot_dimension_numbers<[1], [0], [0], [1], [0, 0, 1, 1], [], []>} : vector<16x32xf32>, vector<32x32xf32>, vector<16x32xf32> -> vector<16x32xf32>
    %cst_72 = arith.constant dense<0.000000e+00> : vector<16x32xf32>
    %294 = tpu.matmul %292, %2, %cst_72 {dimension_numbers = #tpu.dot_dimension_numbers<[1], [0], [0], [1], [0, 0, 1, 1], [], []>} : vector<16x32xf32>, vector<32x32xf32>, vector<16x32xf32> -> vector<16x32xf32>
    %295 = tpu.concatenate %293, %292, %294 in 0 : vector<16x32xf32>, vector<16x32xf32>, vector<16x32xf32> -> vector<48x32xf32>
    %cst_73 = arith.constant dense<0.000000e+00> : vector<64x32xf32>
    %296 = tpu.matmul %0, %295, %cst_73 {dimension_numbers = #tpu.dot_dimension_numbers<[1], [0], [0], [1], [0, 0, 1, 1], [], []>} : vector<64x48xf32>, vector<48x32xf32>, vector<64x32xf32> -> vector<64x32xf32>
    %297 = vector.extract_strided_slice %296 {offsets = [0, 0], sizes = [32, 32], strides = [1, 1]} : vector<64x32xf32> to vector<32x32xf32>
    %298 = vector.extract_strided_slice %296 {offsets = [32, 0], sizes = [32, 32], strides = [1, 1]} : vector<64x32xf32> to vector<32x32xf32>
    %299 = arith.addf %298, %5 : vector<32x32xf32>
    %300 = vector.extract_strided_slice %299 {offsets = [0, 0], sizes = [8, 32], strides = [1, 1]} : vector<32x32xf32> to vector<8x32xf32>
    %301 = arith.negf %300 : vector<8x32xf32>
    %302 = math.exp %301 : vector<8x32xf32>
    %cst_74 = arith.constant 1.000000e+00 : f32
    %303 = vector.broadcast %cst_74 : f32 to vector<8x32xf32>
    %304 = arith.addf %303, %302 : vector<8x32xf32>
    %305 = arith.divf %303, %304 : vector<8x32xf32>
    %306 = vector.extract_strided_slice %299 {offsets = [8, 0], sizes = [8, 32], strides = [1, 1]} : vector<32x32xf32> to vector<8x32xf32>
    %307 = arith.negf %306 : vector<8x32xf32>
    %308 = math.exp %307 : vector<8x32xf32>
    %cst_75 = arith.constant 1.000000e+00 : f32
    %309 = vector.broadcast %cst_75 : f32 to vector<8x32xf32>
    %310 = arith.addf %309, %308 : vector<8x32xf32>
    %311 = arith.divf %309, %310 : vector<8x32xf32>
    %312 = vector.extract_strided_slice %299 {offsets = [16, 0], sizes = [8, 32], strides = [1, 1]} : vector<32x32xf32> to vector<8x32xf32>
    %313 = arith.negf %312 : vector<8x32xf32>
    %314 = math.exp %313 : vector<8x32xf32>
    %cst_76 = arith.constant 1.000000e+00 : f32
    %315 = vector.broadcast %cst_76 : f32 to vector<8x32xf32>
    %316 = arith.addf %315, %314 : vector<8x32xf32>
    %317 = arith.divf %315, %316 : vector<8x32xf32>
    %318 = vector.extract_strided_slice %299 {offsets = [24, 0], sizes = [8, 32], strides = [1, 1]} : vector<32x32xf32> to vector<8x32xf32>
    %319 = math.tanh %318 : vector<8x32xf32>
    %320 = arith.mulf %311, %258 : vector<8x32xf32>
    %321 = arith.mulf %305, %319 : vector<8x32xf32>
    %322 = arith.addf %320, %321 : vector<8x32xf32>
    %323 = math.tanh %322 : vector<8x32xf32>
    %324 = arith.mulf %317, %323 : vector<8x32xf32>
    %c4_77 = arith.constant 4 : index
    %c0_78 = arith.constant 0 : index
    %c0_79 = arith.constant 0 : index
    %325 = vector.load %arg5[%c4_77, %c0_78, %c0_79] : memref<8x8x32xf32, #tpu.memory_space<vmem>>, vector<1x8x32xf32>
    %326 = vector.shape_cast %325 : vector<1x8x32xf32> to vector<8x32xf32>
    %327 = vector.shape_cast %324 : vector<8x32xf32> to vector<1x8x32xf32>
    tpu.vector_store %arg5[%c4_77, %c0_78, %c0_79], %327 {strides = array<i32>} : memref<8x8x32xf32, #tpu.memory_space<vmem>>, vector<1x8x32xf32>,
    %c5 = arith.constant 5 : index
    %c0_80 = arith.constant 0 : index
    %c0_81 = arith.constant 0 : index
    %328 = vector.load %arg0[%c5, %c0_80, %c0_81] : memref<8x32x32xf32, #tpu.memory_space<vmem>>, vector<1x32x32xf32>
    %329 = vector.shape_cast %328 : vector<1x32x32xf32> to vector<32x32xf32>
    %330 = arith.addf %329, %297 : vector<32x32xf32>
    %331 = vector.extract_strided_slice %330 {offsets = [0, 0], sizes = [8, 32], strides = [1, 1]} : vector<32x32xf32> to vector<8x32xf32>
    %332 = arith.negf %331 : vector<8x32xf32>
    %333 = math.exp %332 : vector<8x32xf32>
    %cst_82 = arith.constant 1.000000e+00 : f32
    %334 = vector.broadcast %cst_82 : f32 to vector<8x32xf32>
    %335 = arith.addf %334, %333 : vector<8x32xf32>
    %336 = arith.divf %334, %335 : vector<8x32xf32>
    %337 = vector.extract_strided_slice %330 {offsets = [8, 0], sizes = [8, 32], strides = [1, 1]} : vector<32x32xf32> to vector<8x32xf32>
    %338 = arith.negf %337 : vector<8x32xf32>
    %339 = math.exp %338 : vector<8x32xf32>
    %cst_83 = arith.constant 1.000000e+00 : f32
    %340 = vector.broadcast %cst_83 : f32 to vector<8x32xf32>
    %341 = arith.addf %340, %339 : vector<8x32xf32>
    %342 = arith.divf %340, %341 : vector<8x32xf32>
    %343 = vector.extract_strided_slice %330 {offsets = [16, 0], sizes = [8, 32], strides = [1, 1]} : vector<32x32xf32> to vector<8x32xf32>
    %344 = arith.negf %343 : vector<8x32xf32>
    %345 = math.exp %344 : vector<8x32xf32>
    %cst_84 = arith.constant 1.000000e+00 : f32
    %346 = vector.broadcast %cst_84 : f32 to vector<8x32xf32>
    %347 = arith.addf %346, %345 : vector<8x32xf32>
    %348 = arith.divf %346, %347 : vector<8x32xf32>
    %349 = vector.extract_strided_slice %330 {offsets = [24, 0], sizes = [8, 32], strides = [1, 1]} : vector<32x32xf32> to vector<8x32xf32>
    %350 = math.tanh %349 : vector<8x32xf32>
    %351 = arith.mulf %342, %289 : vector<8x32xf32>
    %352 = arith.mulf %336, %350 : vector<8x32xf32>
    %353 = arith.addf %351, %352 : vector<8x32xf32>
    %354 = math.tanh %353 : vector<8x32xf32>
    %355 = arith.mulf %348, %354 : vector<8x32xf32>
    %356 = tpu.concatenate %355, %324 in 0 : vector<8x32xf32>, vector<8x32xf32> -> vector<16x32xf32>
    %cst_85 = arith.constant dense<0.000000e+00> : vector<16x32xf32>
    %357 = tpu.matmul %356, %1, %cst_85 {dimension_numbers = #tpu.dot_dimension_numbers<[1], [0], [0], [1], [0, 0, 1, 1], [], []>} : vector<16x32xf32>, vector<32x32xf32>, vector<16x32xf32> -> vector<16x32xf32>
    %cst_86 = arith.constant dense<0.000000e+00> : vector<16x32xf32>
    %358 = tpu.matmul %356, %2, %cst_86 {dimension_numbers = #tpu.dot_dimension_numbers<[1], [0], [0], [1], [0, 0, 1, 1], [], []>} : vector<16x32xf32>, vector<32x32xf32>, vector<16x32xf32> -> vector<16x32xf32>
    %359 = tpu.concatenate %357, %356, %358 in 0 : vector<16x32xf32>, vector<16x32xf32>, vector<16x32xf32> -> vector<48x32xf32>
    %cst_87 = arith.constant dense<0.000000e+00> : vector<64x32xf32>
    %360 = tpu.matmul %0, %359, %cst_87 {dimension_numbers = #tpu.dot_dimension_numbers<[1], [0], [0], [1], [0, 0, 1, 1], [], []>} : vector<64x48xf32>, vector<48x32xf32>, vector<64x32xf32> -> vector<64x32xf32>
    %361 = vector.extract_strided_slice %360 {offsets = [0, 0], sizes = [32, 32], strides = [1, 1]} : vector<64x32xf32> to vector<32x32xf32>
    %362 = vector.extract_strided_slice %360 {offsets = [32, 0], sizes = [32, 32], strides = [1, 1]} : vector<64x32xf32> to vector<32x32xf32>
    %363 = arith.addf %362, %5 : vector<32x32xf32>
    %364 = vector.extract_strided_slice %363 {offsets = [0, 0], sizes = [8, 32], strides = [1, 1]} : vector<32x32xf32> to vector<8x32xf32>
    %365 = arith.negf %364 : vector<8x32xf32>
    %366 = math.exp %365 : vector<8x32xf32>
    %cst_88 = arith.constant 1.000000e+00 : f32
    %367 = vector.broadcast %cst_88 : f32 to vector<8x32xf32>
    %368 = arith.addf %367, %366 : vector<8x32xf32>
    %369 = arith.divf %367, %368 : vector<8x32xf32>
    %370 = vector.extract_strided_slice %363 {offsets = [8, 0], sizes = [8, 32], strides = [1, 1]} : vector<32x32xf32> to vector<8x32xf32>
    %371 = arith.negf %370 : vector<8x32xf32>
    %372 = math.exp %371 : vector<8x32xf32>
    %cst_89 = arith.constant 1.000000e+00 : f32
    %373 = vector.broadcast %cst_89 : f32 to vector<8x32xf32>
    %374 = arith.addf %373, %372 : vector<8x32xf32>
    %375 = arith.divf %373, %374 : vector<8x32xf32>
    %376 = vector.extract_strided_slice %363 {offsets = [16, 0], sizes = [8, 32], strides = [1, 1]} : vector<32x32xf32> to vector<8x32xf32>
    %377 = arith.negf %376 : vector<8x32xf32>
    %378 = math.exp %377 : vector<8x32xf32>
    %cst_90 = arith.constant 1.000000e+00 : f32
    %379 = vector.broadcast %cst_90 : f32 to vector<8x32xf32>
    %380 = arith.addf %379, %378 : vector<8x32xf32>
    %381 = arith.divf %379, %380 : vector<8x32xf32>
    %382 = vector.extract_strided_slice %363 {offsets = [24, 0], sizes = [8, 32], strides = [1, 1]} : vector<32x32xf32> to vector<8x32xf32>
    %383 = math.tanh %382 : vector<8x32xf32>
    %384 = arith.mulf %375, %322 : vector<8x32xf32>
    %385 = arith.mulf %369, %383 : vector<8x32xf32>
    %386 = arith.addf %384, %385 : vector<8x32xf32>
    %387 = math.tanh %386 : vector<8x32xf32>
    %388 = arith.mulf %381, %387 : vector<8x32xf32>
    %c5_91 = arith.constant 5 : index
    %c0_92 = arith.constant 0 : index
    %c0_93 = arith.constant 0 : index
    %389 = vector.load %arg5[%c5_91, %c0_92, %c0_93] : memref<8x8x32xf32, #tpu.memory_space<vmem>>, vector<1x8x32xf32>
    %390 = vector.shape_cast %389 : vector<1x8x32xf32> to vector<8x32xf32>
    %391 = vector.shape_cast %388 : vector<8x32xf32> to vector<1x8x32xf32>
    tpu.vector_store %arg5[%c5_91, %c0_92, %c0_93], %391 {strides = array<i32>} : memref<8x8x32xf32, #tpu.memory_space<vmem>>, vector<1x8x32xf32>,
    %c6 = arith.constant 6 : index
    %c0_94 = arith.constant 0 : index
    %c0_95 = arith.constant 0 : index
    %392 = vector.load %arg0[%c6, %c0_94, %c0_95] : memref<8x32x32xf32, #tpu.memory_space<vmem>>, vector<1x32x32xf32>
    %393 = vector.shape_cast %392 : vector<1x32x32xf32> to vector<32x32xf32>
    %394 = arith.addf %393, %361 : vector<32x32xf32>
    %395 = vector.extract_strided_slice %394 {offsets = [0, 0], sizes = [8, 32], strides = [1, 1]} : vector<32x32xf32> to vector<8x32xf32>
    %396 = arith.negf %395 : vector<8x32xf32>
    %397 = math.exp %396 : vector<8x32xf32>
    %cst_96 = arith.constant 1.000000e+00 : f32
    %398 = vector.broadcast %cst_96 : f32 to vector<8x32xf32>
    %399 = arith.addf %398, %397 : vector<8x32xf32>
    %400 = arith.divf %398, %399 : vector<8x32xf32>
    %401 = vector.extract_strided_slice %394 {offsets = [8, 0], sizes = [8, 32], strides = [1, 1]} : vector<32x32xf32> to vector<8x32xf32>
    %402 = arith.negf %401 : vector<8x32xf32>
    %403 = math.exp %402 : vector<8x32xf32>
    %cst_97 = arith.constant 1.000000e+00 : f32
    %404 = vector.broadcast %cst_97 : f32 to vector<8x32xf32>
    %405 = arith.addf %404, %403 : vector<8x32xf32>
    %406 = arith.divf %404, %405 : vector<8x32xf32>
    %407 = vector.extract_strided_slice %394 {offsets = [16, 0], sizes = [8, 32], strides = [1, 1]} : vector<32x32xf32> to vector<8x32xf32>
    %408 = arith.negf %407 : vector<8x32xf32>
    %409 = math.exp %408 : vector<8x32xf32>
    %cst_98 = arith.constant 1.000000e+00 : f32
    %410 = vector.broadcast %cst_98 : f32 to vector<8x32xf32>
    %411 = arith.addf %410, %409 : vector<8x32xf32>
    %412 = arith.divf %410, %411 : vector<8x32xf32>
    %413 = vector.extract_strided_slice %394 {offsets = [24, 0], sizes = [8, 32], strides = [1, 1]} : vector<32x32xf32> to vector<8x32xf32>
    %414 = math.tanh %413 : vector<8x32xf32>
    %415 = arith.mulf %406, %353 : vector<8x32xf32>
    %416 = arith.mulf %400, %414 : vector<8x32xf32>
    %417 = arith.addf %415, %416 : vector<8x32xf32>
    %418 = math.tanh %417 : vector<8x32xf32>
    %419 = arith.mulf %412, %418 : vector<8x32xf32>
    %420 = tpu.concatenate %419, %388 in 0 : vector<8x32xf32>, vector<8x32xf32> -> vector<16x32xf32>
    %cst_99 = arith.constant dense<0.000000e+00> : vector<16x32xf32>
    %421 = tpu.matmul %420, %1, %cst_99 {dimension_numbers = #tpu.dot_dimension_numbers<[1], [0], [0], [1], [0, 0, 1, 1], [], []>} : vector<16x32xf32>, vector<32x32xf32>, vector<16x32xf32> -> vector<16x32xf32>
    %cst_100 = arith.constant dense<0.000000e+00> : vector<16x32xf32>
    %422 = tpu.matmul %420, %2, %cst_100 {dimension_numbers = #tpu.dot_dimension_numbers<[1], [0], [0], [1], [0, 0, 1, 1], [], []>} : vector<16x32xf32>, vector<32x32xf32>, vector<16x32xf32> -> vector<16x32xf32>
    %423 = tpu.concatenate %421, %420, %422 in 0 : vector<16x32xf32>, vector<16x32xf32>, vector<16x32xf32> -> vector<48x32xf32>
    %cst_101 = arith.constant dense<0.000000e+00> : vector<64x32xf32>
    %424 = tpu.matmul %0, %423, %cst_101 {dimension_numbers = #tpu.dot_dimension_numbers<[1], [0], [0], [1], [0, 0, 1, 1], [], []>} : vector<64x48xf32>, vector<48x32xf32>, vector<64x32xf32> -> vector<64x32xf32>
    %425 = vector.extract_strided_slice %424 {offsets = [0, 0], sizes = [32, 32], strides = [1, 1]} : vector<64x32xf32> to vector<32x32xf32>
    %426 = vector.extract_strided_slice %424 {offsets = [32, 0], sizes = [32, 32], strides = [1, 1]} : vector<64x32xf32> to vector<32x32xf32>
    %427 = arith.addf %426, %5 : vector<32x32xf32>
    %428 = vector.extract_strided_slice %427 {offsets = [0, 0], sizes = [8, 32], strides = [1, 1]} : vector<32x32xf32> to vector<8x32xf32>
    %429 = arith.negf %428 : vector<8x32xf32>
    %430 = math.exp %429 : vector<8x32xf32>
    %cst_102 = arith.constant 1.000000e+00 : f32
    %431 = vector.broadcast %cst_102 : f32 to vector<8x32xf32>
    %432 = arith.addf %431, %430 : vector<8x32xf32>
    %433 = arith.divf %431, %432 : vector<8x32xf32>
    %434 = vector.extract_strided_slice %427 {offsets = [8, 0], sizes = [8, 32], strides = [1, 1]} : vector<32x32xf32> to vector<8x32xf32>
    %435 = arith.negf %434 : vector<8x32xf32>
    %436 = math.exp %435 : vector<8x32xf32>
    %cst_103 = arith.constant 1.000000e+00 : f32
    %437 = vector.broadcast %cst_103 : f32 to vector<8x32xf32>
    %438 = arith.addf %437, %436 : vector<8x32xf32>
    %439 = arith.divf %437, %438 : vector<8x32xf32>
    %440 = vector.extract_strided_slice %427 {offsets = [16, 0], sizes = [8, 32], strides = [1, 1]} : vector<32x32xf32> to vector<8x32xf32>
    %441 = arith.negf %440 : vector<8x32xf32>
    %442 = math.exp %441 : vector<8x32xf32>
    %cst_104 = arith.constant 1.000000e+00 : f32
    %443 = vector.broadcast %cst_104 : f32 to vector<8x32xf32>
    %444 = arith.addf %443, %442 : vector<8x32xf32>
    %445 = arith.divf %443, %444 : vector<8x32xf32>
    %446 = vector.extract_strided_slice %427 {offsets = [24, 0], sizes = [8, 32], strides = [1, 1]} : vector<32x32xf32> to vector<8x32xf32>
    %447 = math.tanh %446 : vector<8x32xf32>
    %448 = arith.mulf %439, %386 : vector<8x32xf32>
    %449 = arith.mulf %433, %447 : vector<8x32xf32>
    %450 = arith.addf %448, %449 : vector<8x32xf32>
    %451 = math.tanh %450 : vector<8x32xf32>
    %452 = arith.mulf %445, %451 : vector<8x32xf32>
    %c6_105 = arith.constant 6 : index
    %c0_106 = arith.constant 0 : index
    %c0_107 = arith.constant 0 : index
    %453 = vector.load %arg5[%c6_105, %c0_106, %c0_107] : memref<8x8x32xf32, #tpu.memory_space<vmem>>, vector<1x8x32xf32>
    %454 = vector.shape_cast %453 : vector<1x8x32xf32> to vector<8x32xf32>
    %455 = vector.shape_cast %452 : vector<8x32xf32> to vector<1x8x32xf32>
    tpu.vector_store %arg5[%c6_105, %c0_106, %c0_107], %455 {strides = array<i32>} : memref<8x8x32xf32, #tpu.memory_space<vmem>>, vector<1x8x32xf32>,
    %c7 = arith.constant 7 : index
    %c0_108 = arith.constant 0 : index
    %c0_109 = arith.constant 0 : index
    %456 = vector.load %arg0[%c7, %c0_108, %c0_109] : memref<8x32x32xf32, #tpu.memory_space<vmem>>, vector<1x32x32xf32>
    %457 = vector.shape_cast %456 : vector<1x32x32xf32> to vector<32x32xf32>
    %458 = arith.addf %457, %425 : vector<32x32xf32>
    %459 = vector.extract_strided_slice %458 {offsets = [0, 0], sizes = [8, 32], strides = [1, 1]} : vector<32x32xf32> to vector<8x32xf32>
    %460 = arith.negf %459 : vector<8x32xf32>
    %461 = math.exp %460 : vector<8x32xf32>
    %cst_110 = arith.constant 1.000000e+00 : f32
    %462 = vector.broadcast %cst_110 : f32 to vector<8x32xf32>
    %463 = arith.addf %462, %461 : vector<8x32xf32>
    %464 = arith.divf %462, %463 : vector<8x32xf32>
    %465 = vector.extract_strided_slice %458 {offsets = [8, 0], sizes = [8, 32], strides = [1, 1]} : vector<32x32xf32> to vector<8x32xf32>
    %466 = arith.negf %465 : vector<8x32xf32>
    %467 = math.exp %466 : vector<8x32xf32>
    %cst_111 = arith.constant 1.000000e+00 : f32
    %468 = vector.broadcast %cst_111 : f32 to vector<8x32xf32>
    %469 = arith.addf %468, %467 : vector<8x32xf32>
    %470 = arith.divf %468, %469 : vector<8x32xf32>
    %471 = vector.extract_strided_slice %458 {offsets = [16, 0], sizes = [8, 32], strides = [1, 1]} : vector<32x32xf32> to vector<8x32xf32>
    %472 = arith.negf %471 : vector<8x32xf32>
    %473 = math.exp %472 : vector<8x32xf32>
    %cst_112 = arith.constant 1.000000e+00 : f32
    %474 = vector.broadcast %cst_112 : f32 to vector<8x32xf32>
    %475 = arith.addf %474, %473 : vector<8x32xf32>
    %476 = arith.divf %474, %475 : vector<8x32xf32>
    %477 = vector.extract_strided_slice %458 {offsets = [24, 0], sizes = [8, 32], strides = [1, 1]} : vector<32x32xf32> to vector<8x32xf32>
    %478 = math.tanh %477 : vector<8x32xf32>
    %479 = arith.mulf %470, %417 : vector<8x32xf32>
    %480 = arith.mulf %464, %478 : vector<8x32xf32>
    %481 = arith.addf %479, %480 : vector<8x32xf32>
    %482 = math.tanh %481 : vector<8x32xf32>
    %483 = arith.mulf %476, %482 : vector<8x32xf32>
    %484 = tpu.concatenate %483, %452 in 0 : vector<8x32xf32>, vector<8x32xf32> -> vector<16x32xf32>
    %cst_113 = arith.constant dense<0.000000e+00> : vector<16x32xf32>
    %485 = tpu.matmul %484, %1, %cst_113 {dimension_numbers = #tpu.dot_dimension_numbers<[1], [0], [0], [1], [0, 0, 1, 1], [], []>} : vector<16x32xf32>, vector<32x32xf32>, vector<16x32xf32> -> vector<16x32xf32>
    %cst_114 = arith.constant dense<0.000000e+00> : vector<16x32xf32>
    %486 = tpu.matmul %484, %2, %cst_114 {dimension_numbers = #tpu.dot_dimension_numbers<[1], [0], [0], [1], [0, 0, 1, 1], [], []>} : vector<16x32xf32>, vector<32x32xf32>, vector<16x32xf32> -> vector<16x32xf32>
    %487 = tpu.concatenate %485, %484, %486 in 0 : vector<16x32xf32>, vector<16x32xf32>, vector<16x32xf32> -> vector<48x32xf32>
    %cst_115 = arith.constant dense<0.000000e+00> : vector<64x32xf32>
    %488 = tpu.matmul %0, %487, %cst_115 {dimension_numbers = #tpu.dot_dimension_numbers<[1], [0], [0], [1], [0, 0, 1, 1], [], []>} : vector<64x48xf32>, vector<48x32xf32>, vector<64x32xf32> -> vector<64x32xf32>
    %489 = vector.extract_strided_slice %488 {offsets = [32, 0], sizes = [32, 32], strides = [1, 1]} : vector<64x32xf32> to vector<32x32xf32>
    %490 = arith.addf %489, %5 : vector<32x32xf32>
    %491 = vector.extract_strided_slice %490 {offsets = [0, 0], sizes = [8, 32], strides = [1, 1]} : vector<32x32xf32> to vector<8x32xf32>
    %492 = arith.negf %491 : vector<8x32xf32>
    %493 = math.exp %492 : vector<8x32xf32>
    %cst_116 = arith.constant 1.000000e+00 : f32
    %494 = vector.broadcast %cst_116 : f32 to vector<8x32xf32>
    %495 = arith.addf %494, %493 : vector<8x32xf32>
    %496 = arith.divf %494, %495 : vector<8x32xf32>
    %497 = vector.extract_strided_slice %490 {offsets = [8, 0], sizes = [8, 32], strides = [1, 1]} : vector<32x32xf32> to vector<8x32xf32>
    %498 = arith.negf %497 : vector<8x32xf32>
    %499 = math.exp %498 : vector<8x32xf32>
    %cst_117 = arith.constant 1.000000e+00 : f32
    %500 = vector.broadcast %cst_117 : f32 to vector<8x32xf32>
    %501 = arith.addf %500, %499 : vector<8x32xf32>
    %502 = arith.divf %500, %501 : vector<8x32xf32>
    %503 = vector.extract_strided_slice %490 {offsets = [16, 0], sizes = [8, 32], strides = [1, 1]} : vector<32x32xf32> to vector<8x32xf32>
    %504 = arith.negf %503 : vector<8x32xf32>
    %505 = math.exp %504 : vector<8x32xf32>
    %cst_118 = arith.constant 1.000000e+00 : f32
    %506 = vector.broadcast %cst_118 : f32 to vector<8x32xf32>
    %507 = arith.addf %506, %505 : vector<8x32xf32>
    %508 = arith.divf %506, %507 : vector<8x32xf32>
    %509 = vector.extract_strided_slice %490 {offsets = [24, 0], sizes = [8, 32], strides = [1, 1]} : vector<32x32xf32> to vector<8x32xf32>
    %510 = math.tanh %509 : vector<8x32xf32>
    %511 = arith.mulf %502, %450 : vector<8x32xf32>
    %512 = arith.mulf %496, %510 : vector<8x32xf32>
    %513 = arith.addf %511, %512 : vector<8x32xf32>
    %514 = math.tanh %513 : vector<8x32xf32>
    %515 = arith.mulf %508, %514 : vector<8x32xf32>
    %c7_119 = arith.constant 7 : index
    %c0_120 = arith.constant 0 : index
    %c0_121 = arith.constant 0 : index
    %516 = vector.load %arg5[%c7_119, %c0_120, %c0_121] : memref<8x8x32xf32, #tpu.memory_space<vmem>>, vector<1x8x32xf32>
    %517 = vector.shape_cast %516 : vector<1x8x32xf32> to vector<8x32xf32>
    %518 = vector.shape_cast %515 : vector<8x32xf32> to vector<1x8x32xf32>
    tpu.vector_store %arg5[%c7_119, %c0_120, %c0_121], %518 {strides = array<i32>} : memref<8x8x32xf32, #tpu.memory_space<vmem>>, vector<1x8x32xf32>,
    %c0_122 = arith.constant 0 : index
    %c0_123 = arith.constant 0 : index
    %519 = vector.load %arg6[%c0_122, %c0_123] : memref<8x32xf32, #tpu.memory_space<vmem>>, vector<8x32xf32>
    tpu.vector_store %arg6[%c0_122, %c0_123], %513 {strides = array<i32>} : memref<8x32xf32, #tpu.memory_space<vmem>>, vector<8x32xf32>,
    return
  }
}

</mosaic_0001>

<bundles_post_ra>
// kernel: lstm_forward.1
= control target key start
LH: loop header
LB: loop body
LE: loop exit
PB: predicated region body
PF: predicated region fallthrough
CT: control target
= control target key end

     0   :  { %vm129_vm12 = vcmask 261120   ;;  %v2434_v58 = vmov 0.0   ;;  %vm182_vm13 = vcmask 392192   ;;  %s3276_s3 = inlined_call_operand.vmem [shape: f32[32,32], index: 3, kind: input, shape index: {}]   ;;  %s3277_s0 = inlined_call_operand.vmem [shape: f32[8,32,32], index: 0, kind: input, shape index: {}]   ;;  %s3278_s4 = inlined_call_operand.vmem [shape: f32[32,32], index: 4, kind: input, shape index: {}]   ;;  %s3279_s1 = inlined_call_operand.vmem [shape: f32[64,48], index: 1, kind: input, shape index: {}]   ;;  %s3280_s2 = inlined_call_operand.vmem [shape: f32[32,1], index: 2, kind: input, shape index: {}]   ;;  %s3281_s5 = inlined_call_operand.vmem [shape: f32[8,8,32], index: 5, kind: output, shape index: {0}]   ;;  %s3282_s6 = inlined_call_operand.vmem [shape: f32[8,32], index: 6, kind: output, shape index: {1}]  }
   0x1   :  { %v2474_v0 = vld [vmem:[%s3276_s3 + $0x18] sm:$0xff]  ;;  %v2479_v1 = vld [vmem:[%s3276_s3 + $0x10] sm:$0xff]  ;;  %v62_v2 = vld [vmem:[%s3277_s0] sm:$0xff] }
   0x2   :  { %148 = vmatpush.msra.mxu1 %v2474_v0  ;;  %v63_v3 = vld [vmem:[%s3277_s0 + $0x8] sm:$0xff]  ;;  %406 = vmatpush.msra.mxu0 %v2474_v0  ;;  %v64_v5 = vld [vmem:[%s3277_s0 + $0x10] sm:$0xff]  ;;  %v1959_v6 = vmul.f32 -1.442695, %v62_v2  ;;  %v2503_v9 = vld [vmem:[%s3276_s3] sm:$0xff]  ;;  %v2435_v2 = vmov 0  }
   0x3   :  { %v2492_v4 = vld [vmem:[%s3276_s3 + $0x8] sm:$0xff]  ;;  %v1960_v7 = vmul.f32 -1.442695, %v63_v3  ;;  %2136 = vmatpush.msra.mxu3 %v2474_v0  ;;  %v1961_v8 = vmul.f32 -1.442695, %v64_v5  ;;  %v65_v16 = vld [vmem:[%s3277_s0 + $0x18] sm:$0xff]  ;;  %2148 = vset.pattern.permute.xlu0 %v2435_v2 }
   0x4   :  { %149 = vmatpush.msra.mxu1 %v2479_v1  ;;  %407 = vmatpush.msra.mxu0 %v2479_v1  ;;  %2150 = vpow2.f32 %v1959_v6  ;;  %v2525_v20 = vld [vmem:[%s3278_s4 + $0x18] sm:$0xff]  ;;  %v2530_v21 = vld [vmem:[%s3278_s4 + $0x10] sm:$0xff]  ;;  %v2537_v27 = vld [vmem:[%s3278_s4 + $0x8] sm:$0xff] }
   0x5   :  { %2137 = vmatpush.msra.mxu3 %v2479_v1  ;;  %2152 = vpow2.f32 %v1960_v7  ;;  %v2545_v33 = vld [vmem:[%s3278_s4] sm:$0xff]  ;;  %2149 = vset.pattern.permute.xlu1 %v2435_v2  ;;  %v2577_v3 = vld [vmem:[%s3279_s1 + $0x8] sm:$0xff]  ;;  %v2587_v6 = vld [vmem:[%s3279_s1 + $0x10] sm:$0xff] }
   0x6   :  { %150 = vmatpush.msra.mxu1 %v2492_v4  ;;  %408 = vmatpush.msra.mxu0 %v2492_v4  ;;  %2154 = vpow2.f32 %v1961_v8  ;;  %v2570_v63 = vld [vmem:[%s3279_s1] sm:$0xff]  ;;  %v39_v7 = vld [vmem:[%s3280_s2 + $0x8] sm:$0xff]  ;;  %v2597_v8 = vld [vmem:[%s3279_s1 + $0x18] sm:$0xff] }
   0x7   :  { %2138 = vmatpush.msra.mxu3 %v2492_v4  ;;  %v38_v5 = vld [vmem:[%s3280_s2] sm:$0xff] }
   0x8   :  { %151 = vmatpush.msra.mxu1 %v2503_v9  ;;  %409 = vmatpush.msra.mxu0 %v2503_v9 }
   0x9   :  { %2139 = vmatpush.msra.mxu3 %v2503_v9  ;;  %44 = vperm.xlu0 %2148, %v38_v5  }
   0xa   :  { %v2151_v10 = vpop.eup %2150  ;;  %171 = vmatpush.msrb.mxu1 %v2525_v20  ;;  %429 = vmatpush.msrb.mxu0 %v2525_v20 }
   0xb   :  { %640 = vmatpush.msrb.mxu3 %v2474_v0  ;;  %v2153_v11 = vpop.eup %2152  ;;  %v69_v12 = vadd.f32 1.0, %v2151_v10  ;;  %v40_v10 = vld [vmem:[%s3280_s2 + $0x10] sm:$0xff] }
   0xc   :  { %v2155_v13 = vpop.eup %2154  ;;  %v88_v14 = vadd.f32 1.0, %v2153_v11  ;;  %172 = vmatpush.msrb.mxu1 %v2530_v21  ;;  %430 = vmatpush.msrb.mxu0 %v2530_v21  ;;  %v2607_v11 = vld [vmem:[%s3279_s1 + $0x20] sm:$0xff] }
   0xd   :  { %641 = vmatpush.msrb.mxu3 %v2479_v1  ;;  %2156 = vrcp.f32 %v69_v12  ;;  %v2515_v15 = vadd.f32 1.0, %v2155_v13  ;;  %vm75_vm0 = vweird.f32 %v69_v12  ;;  %v81_v22 = vand.u32 2147483648, %v69_v12  ;;  %54 = vperm.xlu1 %2149, %v40_v10   ;;  %v2617_v13 = vld [vmem:[%s3279_s1 + $0x28] sm:$0xff] }
   0xe   :  { %2158 = vrcp.f32 %v88_v14  ;;  %v79_v25 = vand.u32 2147483647, %v69_v12  ;;  %v100_v26 = vand.u32 2147483648, %v88_v14  ;;  %vm94_vm2 = vweird.f32 %v88_v14  ;;  %173 = vmatpush.msrb.mxu1 %v2537_v27  ;;  %431 = vmatpush.msrb.mxu0 %v2537_v27 }
   0xf   :  { %642 = vmatpush.msrb.mxu3 %v2492_v4  ;;  %2160 = vrcp.f32 %v2515_v15  ;;  %v98_v30 = vand.u32 2147483647, %v88_v14  ;;  %v82_v35 = vor.u32 1.1754944e-38, %v81_v22  ;;  %vm113_vm8 = vweird.f32 %v2515_v15  ;;  %v1976_v22 = vld [vmem:[%s3277_s0 + $0x28] sm:$0xff] }
  0x10   :  { %2162 = vtanh.f32 %v65_v16  ;;  %vm80_vm5 = vcmp.eq.f32.partialorder %v79_v25, 8.507059e+37  ;;  %v101_v38 = vor.u32 1.1754944e-38, %v100_v26  ;;  %174 = vmatpush.msrb.mxu1 %v2545_v33  ;;  %432 = vmatpush.msrb.mxu0 %v2545_v33  ;;  %v119_v48 = vand.u32 2147483648, %v2515_v15  ;;  %v1975_v16 = vld [vmem:[%s3277_s0 + $0x20] sm:$0xff] }
  0x11   :  { %643 = vmatpush.msrb.mxu3 %v2503_v9  ;;  %vm99_vm7 = vcmp.eq.f32.partialorder %v98_v30, 8.507059e+37  ;;  %v117_v51 = vand.u32 2147483647, %v2515_v15  ;;  %49 = vperm.xlu0 %2148, %v39_v7  }
  0x12   :  { %v120_v53 = vor.u32 1.1754944e-38, %v119_v48 }
  0x13   :  { %v2157_v17 = vpop.eup %2156  ;;  %vm118_vm11 = vcmp.eq.f32.partialorder %v117_v51, 8.507059e+37 }
  0x14   :  { %v2159_v18 = vpop.eup %2158  ;;  %v71_v19 = vmul.f32 %v2157_v17, %v69_v12  ;;  %vm76_vm1 = vweird.f32 %v2157_v17  ;;  %v41_v12 = vld [vmem:[%s3280_s2 + $0x18] sm:$0xff] }
  0x15   :  { %v90_v23 = vmul.f32 %v2159_v18, %v88_v14  ;;  %v2161_v28 = vpop.eup %2160  ;;  %vm95_vm3 = vweird.f32 %v2159_v18  ;;  %vm2548_vm4 = vmor %vm75_vm0, %vm76_vm1  ;;  %59 = vperm.xlu1 %2149, %v41_v12   ;;  %v2624_v14 = vld [vmem:[%s3279_s1 + $0x30] sm:$0xff] }
  0x16   :  { %v72_v24 = vsub.f32 1.0, %v71_v19  ;;  %v109_v32 = vmul.f32 %v2161_v28, %v2515_v15  ;;  %vm96_vm6 = vmor %vm94_vm2, %vm95_vm3  ;;  %v2163_v40 = vpop.eup %2162  ;;  %vm114_vm9 = vweird.f32 %v2161_v28  ;;  %v2631_v15 = vld [vmem:[%s3279_s1 + $0x38] sm:$0xff] }
  0x17   :  { %v91_v29 = vsub.f32 1.0, %v90_v23  ;;  %vm115_vm10 = vmor %vm113_vm8, %vm114_vm9 }
  0x18   :  { %v73_v31 = vmul.f32 %v2157_v17, %v72_v24  ;;  %v110_v39 = vsub.f32 1.0, %v109_v32 }
  0x19   :  { %v92_v36 = vmul.f32 %v2159_v18, %v91_v29  ;;  %v1977_v29 = vld [vmem:[%s3277_s0 + $0x30] sm:$0xff] }
  0x1a   :  { %v74_v37 = vadd.f32 %v2157_v17, %v73_v31  ;;  %v111_v43 = vmul.f32 %v2161_v28, %v110_v39 }
  0x1b   :  { %v93_v41 = vadd.f32 %v2159_v18, %v92_v36 }
  0x1c   :  { %v78_v42 = vsel %vm2548_vm4, %v2157_v17, %v74_v37  ;;  %v112_v50 = vadd.f32 %v2161_v28, %v111_v43 }
  0x1d   :  { %v83_v44 = vsel %vm80_vm5, %v82_v35, %v78_v42  ;;  %v97_v45 = vsel %vm96_vm6, %v2159_v18, %v93_v41 }
  0x1e   :  { %v102_v46 = vsel %vm99_vm7, %v101_v38, %v97_v45  ;;  %v125_v47 = vmul.f32 %v2163_v40, %v83_v44  ;;  %v116_v54 = vsel %vm115_vm10, %v2161_v28, %v112_v50  ;;  %v1978_v38 = vld [vmem:[%s3277_s0 + $0x38] sm:$0xff] }
  0x1f   :  { %v124_v49 = vmul.f32 0.0, %v102_v46  ;;  %v121_v55 = vsel %vm118_vm11, %v120_v53, %v116_v54 }
  0x21   :  { %v2562_v52 = vadd.f32 %v125_v47, %v124_v49 }
  0x23   :  { %2164 = vtanh.f32 %v2562_v52 }
  0x29   :  { %v2165_v56 = vpop.eup %2164 }
  0x2a   :  { %v128_v57 = vmul.f32 %v2165_v56, %v121_v55 }
  0x2c   :  { %1962 = vmatmul.msk.f32.vlgmr.msra.gmra.mxu1 %vm129_vm12, %v128_v57 }
  0x34   :  { %155 = vmatmul.f32.gmra.mxu1 %v2434_v58 }
  0x3c   :  { %1963 = vmatmul.msk.f32.vlgmr.msrb.gmra.mxu1 %vm129_vm12, %v128_v57 }
  0x44   :  { %178 = vmatmul.f32.gmra.mxu1 %v2434_v58 }
  0x7b   :  { %v2647_v47 = vpop.permute.xlu0 %44 }
  0xa9   :  { %v153_v59 = vpop.f32.mrf.mxu1 }
  0xb1   :  { %v156_v60 = vpop.f32.mrf.mxu1 }
  0xb9   :  { %v176_v61 = vpop.f32.mrf.mxu1 }
  0xc1   :  { %v179_v62 = vpop.f32.mrf.mxu1 }
  0xc2   :  { %217 = vmatpush.msra.mxu2 %v179_v62 }
  0xc4   :  { %218 = vmatpush.msra.mxu2 %v176_v61 }
  0xc6   :  { %219 = vmatpush.msra.mxu2 %v2434_v58 }
  0xc8   :  { %220 = vmatpush.msra.mxu2 %v128_v57 }
  0xca   :  { %221 = vmatpush.msra.mxu2 %v156_v60 }
  0xcc   :  { %222 = vmatpush.msra.mxu2 %v153_v59 }
  0xcd   :  { %1964 = vmatmul.msk.f32.vlgmr.msra.gmra.mxu2 %vm182_vm13, %v2570_v63 }
  0xd5   :  { %1965 = vmatmul.msk.f32.gmra.mxu2 %vm182_vm13, %v2577_v3 }
  0xdd   :  { %1966 = vmatmul.msk.f32.gmra.mxu2 %vm182_vm13, %v2587_v6 }
  0xe5   :  { %1967 = vmatmul.msk.f32.gmra.mxu2 %vm182_vm13, %v2597_v8 }
  0xed   :  { %1968 = vmatmul.msk.f32.gmra.mxu2 %vm182_vm13, %v2607_v11 }
  0xf5   :  { %1969 = vmatmul.msk.f32.gmra.mxu2 %vm182_vm13, %v2617_v13 }
  0xfd   :  { %1970 = vmatmul.msk.f32.gmra.mxu2 %vm182_vm13, %v2624_v14 }
 0x105   :  { %1971 = vmatmul.msk.f32.gmra.mxu2 %vm182_vm13, %v2631_v15 }
 0x150   :  { %v224_v17 = vpop.f32.mrf.mxu2 }
 0x151   :  { %v321_v18 = vadd.f32 %v1975_v16, %v224_v17 }
 0x153   :  { %v1979_v19 = vmul.f32 -1.442695, %v321_v18 }
 0x155   :  { %2166 = vpow2.f32 %v1979_v19 }
 0x158   :  { %v227_v23 = vpop.f32.mrf.mxu2 }
 0x159   :  { %v322_v24 = vadd.f32 %v1976_v22, %v227_v23  ;;  %v2657_v23 = vpop.permute.xlu0 %49 }
 0x15b   :  { %v2167_v25 = vpop.eup %2166  ;;  %v1980_v26 = vmul.f32 -1.442695, %v322_v24 }
 0x15c   :  { %v328_v28 = vadd.f32 1.0, %v2167_v25 }
 0x15d   :  { %2168 = vpow2.f32 %v1980_v26 }
 0x15e   :  { %2170 = vrcp.f32 %v328_v28  ;;  %vm334_vm15 = vweird.f32 %v328_v28  ;;  %v338_v51 = vand.u32 2147483647, %v328_v28  ;;  %v340_v53 = vand.u32 2147483648, %v328_v28 }
 0x160   :  { %v230_v30 = vpop.f32.mrf.mxu2  ;;  %vm339_vm4 = vcmp.eq.f32.partialorder %v338_v51, 8.507059e+37  ;;  %v341_v7 = vor.u32 1.1754944e-38, %v340_v53 }
 0x161   :  { %v323_v31 = vadd.f32 %v1977_v29, %v230_v30 }
 0x163   :  { %v2169_v32 = vpop.eup %2168  ;;  %v1981_v34 = vmul.f32 -1.442695, %v323_v31 }
 0x164   :  { %v2171_v35 = vpop.eup %2170  ;;  %v347_v36 = vadd.f32 1.0, %v2169_v32 }
 0x165   :  { %v330_v37 = vmul.f32 %v2171_v35, %v328_v28  ;;  %2172 = vpow2.f32 %v1981_v34  ;;  %vm335_vm14 = vweird.f32 %v2171_v35 }
 0x166   :  { %2174 = vrcp.f32 %v347_v36  ;;  %v359_v50 = vand.u32 2147483648, %v347_v36  ;;  %v357_v56 = vand.u32 2147483647, %v347_v36  ;;  %vm2650_vm1 = vmor %vm334_vm15, %vm335_vm14  ;;  %vm353_vm2 = vweird.f32 %v347_v36 }
 0x167   :  { %v331_v39 = vsub.f32 1.0, %v330_v37 }
 0x168   :  { %v233_v40 = vpop.f32.mrf.mxu2  ;;  %v360_v5 = vor.u32 1.1754944e-38, %v359_v50  ;;  %vm358_vm5 = vcmp.eq.f32.partialorder %v357_v56, 8.507059e+37 }
 0x169   :  { %v324_v41 = vadd.f32 %v1978_v38, %v233_v40  ;;  %v332_v43 = vmul.f32 %v2171_v35, %v331_v39 }
 0x16b   :  { %v2173_v42 = vpop.eup %2172  ;;  %2176 = vtanh.f32 %v324_v41  ;;  %v333_v49 = vadd.f32 %v2171_v35, %v332_v43 }
 0x16c   :  { %v2175_v44 = vpop.eup %2174  ;;  %v366_v45 = vadd.f32 1.0, %v2173_v42 }
 0x16d   :  { %v349_v46 = vmul.f32 %v2175_v44, %v347_v36  ;;  %vm354_vm0 = vweird.f32 %v2175_v44  ;;  %v337_v60 = vsel %vm2650_vm1, %v2171_v35, %v333_v49  ;;  %v2663_v35 = vpop.permute.xlu1 %54 }
 0x16e   :  { %2178 = vrcp.f32 %v366_v45  ;;  %vm355_vm3 = vmor %vm353_vm2, %vm354_vm0  ;;  %v342_v16 = vsel %vm339_vm4, %v341_v7, %v337_v60  ;;  %v378_v32 = vand.u32 2147483648, %v366_v45  ;;  %vm372_vm7 = vweird.f32 %v366_v45 }
 0x16f   :  { %v350_v48 = vsub.f32 1.0, %v349_v46 }
 0x170   :  { %v236_v54 = vpop.f32.mrf.mxu2  ;;  %v379_v37 = vor.u32 1.1754944e-38, %v378_v32 }
 0x171   :  { %v351_v55 = vmul.f32 %v2175_v44, %v350_v48  ;;  %v248_v57 = vadd.f32 %v236_v54, %v2647_v47  ;;  %v2177_v59 = vpop.eup %2176 }
 0x172   :  { %v384_v19 = vmul.f32 %v2177_v59, %v342_v16 }
 0x173   :  { %v352_v61 = vadd.f32 %v2175_v44, %v351_v55  ;;  %v1972_v62 = vmul.f32 -1.442695, %v248_v57 }
 0x174   :  { %v2179_v2 = vpop.eup %2178 }
 0x175   :  { %v368_v10 = vmul.f32 %v2179_v2, %v366_v45  ;;  %v356_v12 = vsel %vm355_vm3, %v2175_v44, %v352_v61  ;;  %2180 = vpow2.f32 %v1972_v62  ;;  %vm373_vm6 = vweird.f32 %v2179_v2  ;;  %v2672_v50 = vpop.permute.xlu1 %59 }
 0x176   :  { %v361_v17 = vsel %vm358_vm5, %v360_v5, %v356_v12  ;;  %vm374_vm8 = vmor %vm372_vm7, %vm373_vm6 }
 0x177   :  { %v383_v18 = vmul.f32 %v361_v17, %v2562_v52  ;;  %v369_v22 = vsub.f32 1.0, %v368_v10  ;;  %v376_v52 = vand.u32 2147483647, %v366_v45 }
 0x178   :  { %v239_v24 = vpop.f32.mrf.mxu2 }
 0x179   :  { %v2659_v25 = vadd.f32 %v384_v19, %v383_v18  ;;  %v249_v26 = vadd.f32 %v239_v24, %v2657_v23  ;;  %v370_v28 = vmul.f32 %v2179_v2, %v369_v22  ;;  %vm377_vm9 = vcmp.eq.f32.partialorder %v376_v52, 8.507059e+37 }
 0x17b   :  { %v2181_v29 = vpop.eup %2180  ;;  %v1973_v30 = vmul.f32 -1.442695, %v249_v26  ;;  %v371_v31 = vadd.f32 %v2179_v2, %v370_v28  ;;  %2182 = vtanh.f32 %v2659_v25 }
 0x17c   :  { %v255_v34 = vadd.f32 1.0, %v2181_v29 }
 0x17d   :  { %2184 = vpow2.f32 %v1973_v30  ;;  %v375_v36 = vsel %vm374_vm8, %v2179_v2, %v371_v31 }
 0x17e   :  { %2186 = vrcp.f32 %v255_v34  ;;  %v380_v41 = vsel %vm377_vm9, %v379_v37, %v375_v36  ;;  %vm261_vm11 = vweird.f32 %v255_v34  ;;  %v267_v62 = vand.u32 2147483648, %v255_v34 }
 0x17f   :  { %v265_v5 = vand.u32 2147483647, %v255_v34 }
 0x180   :  { %v242_v38 = vpop.f32.mrf.mxu2  ;;  %v268_v19 = vor.u32 1.1754944e-38, %v267_v62 }
 0x181   :  { %v2183_v39 = vpop.eup %2182  ;;  %v250_v40 = vadd.f32 %v242_v38, %v2663_v35  ;;  %vm266_vm2 = vcmp.eq.f32.partialorder %v265_v5, 8.507059e+37 }
 0x182   :  { %v2666_v42 = vmul.f32 %v2183_v39, %v380_v41 }
 0x183   :  { %v2185_v43 = vpop.eup %2184  ;;  %v1974_v44 = vmul.f32 -1.442695, %v250_v40 }
 0x184   :  { %v2187_v46 = vpop.eup %2186  ;;  %v274_v48 = vadd.f32 1.0, %v2185_v43  ;;  %1982 = vmatmul.msk.f32.vlgmr.msra.gmra.mxu0 %vm129_vm12, %v2666_v42 }
 0x185   :  { %v257_v45 = vmul.f32 %v2187_v46, %v255_v34  ;;  %2188 = vpow2.f32 %v1974_v44  ;;  %663 = vmatpush.msra.mxu0 %v2525_v20  ;;  %vm262_vm10 = vweird.f32 %v2187_v46 }
 0x186   :  { %2190 = vrcp.f32 %v274_v48  ;;  %v286_v61 = vand.u32 2147483648, %v274_v48  ;;  %v284_v7 = vand.u32 2147483647, %v274_v48  ;;  %vm263_vm15 = vmor %vm261_vm11, %vm262_vm10  ;;  %vm280_vm0 = vweird.f32 %v274_v48 }
 0x187   :  { %v258_v49 = vsub.f32 1.0, %v257_v45  ;;  %664 = vmatpush.msra.mxu0 %v2530_v21 }
 0x188   :  { %v245_v51 = vpop.f32.mrf.mxu2  ;;  %v287_v18 = vor.u32 1.1754944e-38, %v286_v61  ;;  %vm285_vm3 = vcmp.eq.f32.partialorder %v284_v7, 8.507059e+37 }
 0x189   :  { %v251_v53 = vadd.f32 %v245_v51, %v2672_v50  ;;  %665 = vmatpush.msra.mxu0 %v2537_v27  ;;  %v259_v55 = vmul.f32 %v2187_v46, %v258_v49 }
 0x18b   :  { %v2189_v54 = vpop.eup %2188  ;;  %666 = vmatpush.msra.mxu0 %v2545_v33  ;;  %2192 = vtanh.f32 %v251_v53  ;;  %v260_v60 = vadd.f32 %v2187_v46, %v259_v55  ;;  %v1999_v53 = vld [vmem:[%s3277_s0 + $0x48] sm:$0xff] }
 0x18c   :  { %v2191_v56 = vpop.eup %2190  ;;  %v293_v57 = vadd.f32 1.0, %v2189_v54  ;;  %1984 = vmatmul.msk.f32.vlgmr.msrb.gmra.mxu0 %vm129_vm12, %v2666_v42 }
 0x18d   :  { %v276_v58 = vmul.f32 %v2191_v56, %v274_v48  ;;  %vm281_vm14 = vweird.f32 %v2191_v56  ;;  %v264_v12 = vsel %vm263_vm15, %v2187_v46, %v260_v60 }
 0x18e   :  { %2194 = vrcp.f32 %v293_v57  ;;  %vm282_vm1 = vmor %vm280_vm0, %vm281_vm14  ;;  %v269_v26 = vsel %vm266_vm2, %v268_v19, %v264_v12  ;;  %v305_v36 = vand.u32 2147483648, %v293_v57  ;;  %vm299_vm5 = vweird.f32 %v293_v57  ;;  %v2001_v12 = vld [vmem:[%s3277_s0 + $0x58] sm:$0xff] }
 0x18f   :  { %v277_v59 = vsub.f32 1.0, %v276_v58  ;;  %v303_v37 = vand.u32 2147483647, %v293_v57 }
 0x190   :  { %v306_v39 = vor.u32 1.1754944e-38, %v305_v36 }
 0x191   :  { %v278_v2 = vmul.f32 %v2191_v56, %v277_v59  ;;  %v2193_v10 = vpop.eup %2192  ;;  %vm304_vm7 = vcmp.eq.f32.partialorder %v303_v37, 8.507059e+37  ;;  %v2000_v59 = vld [vmem:[%s3277_s0 + $0x50] sm:$0xff] }
 0x192   :  { %v311_v31 = vmul.f32 %v2193_v10, %v269_v26 }
 0x193   :  { %v279_v16 = vadd.f32 %v2191_v56, %v278_v2 }
 0x194   :  { %v2195_v17 = vpop.eup %2194 }
 0x195   :  { %v295_v22 = vmul.f32 %v2195_v17, %v293_v57  ;;  %v283_v24 = vsel %vm282_vm1, %v2191_v56, %v279_v16  ;;  %vm300_vm4 = vweird.f32 %v2195_v17 }
 0x196   :  { %v288_v28 = vsel %vm285_vm3, %v287_v18, %v283_v24  ;;  %vm301_vm6 = vmor %vm299_vm5, %vm300_vm4 }
 0x197   :  { %v296_v29 = vsub.f32 1.0, %v295_v22  ;;  %v310_v30 = vmul.f32 0.0, %v288_v28 }
 0x199   :  { %v2679_v32 = vadd.f32 %v311_v31, %v310_v30  ;;  %v297_v34 = vmul.f32 %v2195_v17, %v296_v29 }
 0x19b   :  { %2196 = vtanh.f32 %v2679_v32  ;;  %v298_v52 = vadd.f32 %v2195_v17, %v297_v34 }
 0x19d   :  { %v302_v38 = vsel %vm301_vm6, %v2195_v17, %v298_v52 }
 0x19e   :  { %v307_v41 = vsel %vm304_vm7, %v306_v39, %v302_v38 }
 0x1a1   :  { %v2197_v40 = vpop.eup %2196 }
 0x1a2   :  { %v314_v43 = vmul.f32 %v2197_v40, %v307_v41 }
 0x1a4   :  { %315 = vst.msk [vmem:[%s3281_s5] sm:$0xff] %vm129_vm12, %v314_v43  ;;  %1983 = vmatmul.msk.f32.vlgmr.msra.gmra.mxu3 %vm129_vm12, %v314_v43  ;;  %1985 = vmatmul.msk.f32.gmra.mxu0 %vm129_vm12, %v314_v43 }
 0x201   :  { %v411_v44 = vpop.f32.mrf.mxu0 }
 0x209   :  { %v434_v46 = vpop.f32.mrf.mxu0 }
 0x221   :  { %v437_v48 = vpop.f32.mrf.mxu0 }
 0x222   :  { %450 = vmatpush.msra.mxu1 %v437_v48 }
 0x224   :  { %451 = vmatpush.msra.mxu1 %v434_v46 }
 0x226   :  { %452 = vmatpush.msra.mxu1 %v314_v43 }
 0x227   :  { %v414_v45 = vpop.f32.mrf.mxu3 }
 0x228   :  { %453 = vmatpush.msra.mxu1 %v2666_v42 }
 0x22a   :  { %454 = vmatpush.msra.mxu1 %v414_v45 }
 0x22c   :  { %455 = vmatpush.msra.mxu1 %v411_v44 }
 0x22d   :  { %1986 = vmatmul.msk.f32.vlgmr.msra.gmra.mxu1 %vm182_vm13, %v2570_v63 }
 0x22e   :  { %1131 = vmatpush.msrb.mxu1 %v2525_v20 }
 0x230   :  { %1132 = vmatpush.msrb.mxu1 %v2530_v21 }
 0x232   :  { %1133 = vmatpush.msrb.mxu1 %v2537_v27 }
 0x234   :  { %1134 = vmatpush.msrb.mxu1 %v2545_v33 }
 0x235   :  { %1987 = vmatmul.msk.f32.gmra.mxu1 %vm182_vm13, %v2577_v3 }
 0x236   :  { %1342 = vmatpush.msra.mxu1 %v2474_v0 }
 0x238   :  { %1343 = vmatpush.msra.mxu1 %v2479_v1  ;;  %v1998_v1 = vld [vmem:[%s3277_s0 + $0x40] sm:$0xff] }
 0x23a   :  { %1344 = vmatpush.msra.mxu1 %v2492_v4 }
 0x23c   :  { %1345 = vmatpush.msra.mxu1 %v2503_v9 }
 0x23d   :  { %1988 = vmatmul.msk.f32.gmra.mxu1 %vm182_vm13, %v2587_v6 }
 0x245   :  { %1989 = vmatmul.msk.f32.gmra.mxu1 %vm182_vm13, %v2597_v8 }
 0x24d   :  { %1990 = vmatmul.msk.f32.gmra.mxu1 %vm182_vm13, %v2607_v11 }
 0x255   :  { %1991 = vmatmul.msk.f32.gmra.mxu1 %vm182_vm13, %v2617_v13 }
 0x25d   :  { %1992 = vmatmul.msk.f32.gmra.mxu1 %vm182_vm13, %v2624_v14 }
 0x265   :  { %1993 = vmatmul.msk.f32.gmra.mxu1 %vm182_vm13, %v2631_v15 }
 0x2aa   :  { %v457_v42 = vpop.f32.mrf.mxu1 }
 0x2ab   :  { %v555_v49 = vadd.f32 %v1998_v1, %v457_v42 }
 0x2ad   :  { %v2002_v51 = vmul.f32 -1.442695, %v555_v49 }
 0x2af   :  { %2198 = vpow2.f32 %v2002_v51 }
 0x2b2   :  { %v460_v54 = vpop.f32.mrf.mxu1 }
 0x2b3   :  { %v556_v55 = vadd.f32 %v1999_v53, %v460_v54 }
 0x2b5   :  { %v2199_v56 = vpop.eup %2198  ;;  %v2003_v57 = vmul.f32 -1.442695, %v556_v55 }
 0x2b6   :  { %v562_v58 = vadd.f32 1.0, %v2199_v56 }
 0x2b7   :  { %2200 = vpow2.f32 %v2003_v57 }
 0x2b8   :  { %2202 = vrcp.f32 %v562_v58  ;;  %vm568_vm9 = vweird.f32 %v562_v58  ;;  %v572_v34 = vand.u32 2147483647, %v562_v58  ;;  %v574_v52 = vand.u32 2147483648, %v562_v58 }
 0x2ba   :  { %v463_v60 = vpop.f32.mrf.mxu1  ;;  %vm573_vm0 = vcmp.eq.f32.partialorder %v572_v34, 8.507059e+37  ;;  %v575_v1 = vor.u32 1.1754944e-38, %v574_v52 }
 0x2bb   :  { %v557_v61 = vadd.f32 %v2000_v59, %v463_v60 }
 0x2bd   :  { %v2201_v62 = vpop.eup %2200  ;;  %v2004_v2 = vmul.f32 -1.442695, %v557_v61 }
 0x2be   :  { %v2203_v5 = vpop.eup %2202  ;;  %v581_v7 = vadd.f32 1.0, %v2201_v62 }
 0x2bf   :  { %v564_v10 = vmul.f32 %v2203_v5, %v562_v58  ;;  %2204 = vpow2.f32 %v2004_v2  ;;  %vm569_vm8 = vweird.f32 %v2203_v5 }
 0x2c0   :  { %2206 = vrcp.f32 %v581_v7  ;;  %v593_v31 = vand.u32 2147483648, %v581_v7  ;;  %v591_v38 = vand.u32 2147483647, %v581_v7  ;;  %vm2726_vm11 = vmor %vm568_vm9, %vm569_vm8  ;;  %vm587_vm14 = vweird.f32 %v581_v7 }
 0x2c1   :  { %v565_v16 = vsub.f32 1.0, %v564_v10 }
 0x2c2   :  { %v466_v17 = vpop.f32.mrf.mxu1  ;;  %v594_v45 = vor.u32 1.1754944e-38, %v593_v31  ;;  %vm592_vm1 = vcmp.eq.f32.partialorder %v591_v38, 8.507059e+37 }
 0x2c3   :  { %v558_v18 = vadd.f32 %v2001_v12, %v466_v17  ;;  %v566_v22 = vmul.f32 %v2203_v5, %v565_v16 }
 0x2c5   :  { %v2205_v19 = vpop.eup %2204  ;;  %2208 = vtanh.f32 %v558_v18  ;;  %v567_v30 = vadd.f32 %v2203_v5, %v566_v22 }
 0x2c6   :  { %v2207_v24 = vpop.eup %2206  ;;  %v600_v26 = vadd.f32 1.0, %v2205_v19 }
 0x2c7   :  { %v583_v28 = vmul.f32 %v2207_v24, %v581_v7  ;;  %vm588_vm10 = vweird.f32 %v2207_v24  ;;  %v571_v43 = vsel %vm2726_vm11, %v2203_v5, %v567_v30 }
 0x2c8   :  { %2210 = vrcp.f32 %v600_v26  ;;  %vm589_vm15 = vmor %vm587_vm14, %vm588_vm10  ;;  %v576_v51 = vsel %vm573_vm0, %v575_v1, %v571_v43  ;;  %v612_v5 = vand.u32 2147483648, %v600_v26  ;;  %vm606_vm3 = vweird.f32 %v600_v26 }
 0x2c9   :  { %v584_v29 = vsub.f32 1.0, %v583_v28  ;;  %v610_v10 = vand.u32 2147483647, %v600_v26 }
 0x2ca   :  { %v469_v36 = vpop.f32.mrf.mxu1  ;;  %v613_v12 = vor.u32 1.1754944e-38, %v612_v5 }
 0x2cb   :  { %v585_v37 = vmul.f32 %v2207_v24, %v584_v29  ;;  %v481_v39 = vadd.f32 %v469_v36, %v2647_v47  ;;  %v2209_v41 = vpop.eup %2208  ;;  %vm611_vm5 = vcmp.eq.f32.partialorder %v610_v10, 8.507059e+37 }
 0x2cc   :  { %v618_v56 = vmul.f32 %v2209_v41, %v576_v51 }
 0x2cd   :  { %v586_v44 = vadd.f32 %v2207_v24, %v585_v37  ;;  %v1994_v46 = vmul.f32 -1.442695, %v481_v39 }
 0x2ce   :  { %v2211_v48 = vpop.eup %2210 }
 0x2cf   :  { %v602_v42 = vmul.f32 %v2211_v48, %v600_v26  ;;  %v590_v49 = vsel %vm589_vm15, %v2207_v24, %v586_v44  ;;  %2212 = vpow2.f32 %v1994_v46  ;;  %vm607_vm2 = vweird.f32 %v2211_v48 }
 0x2d0   :  { %v595_v53 = vsel %vm592_vm1, %v594_v45, %v590_v49  ;;  %vm608_vm4 = vmor %vm606_vm3, %vm607_vm2 }
 0x2d1   :  { %v603_v54 = vsub.f32 1.0, %v602_v42  ;;  %v617_v55 = vmul.f32 %v595_v53, %v2659_v25 }
 0x2d2   :  { %v472_v57 = vpop.f32.mrf.mxu1 }
 0x2d3   :  { %v2733_v58 = vadd.f32 %v618_v56, %v617_v55  ;;  %v482_v59 = vadd.f32 %v472_v57, %v2657_v23  ;;  %v604_v60 = vmul.f32 %v2211_v48, %v603_v54 }
 0x2d5   :  { %v2213_v61 = vpop.eup %2212  ;;  %2214 = vtanh.f32 %v2733_v58  ;;  %v1995_v62 = vmul.f32 -1.442695, %v482_v59  ;;  %v605_v2 = vadd.f32 %v2211_v48, %v604_v60 }
 0x2d6   :  { %v488_v7 = vadd.f32 1.0, %v2213_v61 }
 0x2d7   :  { %2216 = vpow2.f32 %v1995_v62  ;;  %v609_v25 = vsel %vm608_vm4, %v2211_v48, %v605_v2 }
 0x2d8   :  { %2218 = vrcp.f32 %v488_v7  ;;  %v614_v19 = vsel %vm611_vm5, %v613_v12, %v609_v25  ;;  %vm494_vm7 = vweird.f32 %v488_v7  ;;  %v500_v46 = vand.u32 2147483648, %v488_v7 }
 0x2d9   :  { %v498_v45 = vand.u32 2147483647, %v488_v7 }
 0x2da   :  { %v475_v16 = vpop.f32.mrf.mxu1  ;;  %v501_v55 = vor.u32 1.1754944e-38, %v500_v46 }
 0x2db   :  { %v2215_v17 = vpop.eup %2214  ;;  %v483_v18 = vadd.f32 %v475_v16, %v2663_v35  ;;  %vm499_vm14 = vcmp.eq.f32.partialorder %v498_v45, 8.507059e+37  ;;  %v2024_v45 = vld [vmem:[%s3277_s0 + $0x78] sm:$0xff] }
 0x2dc   :  { %v2738_v22 = vmul.f32 %v2215_v17, %v614_v19 }
 0x2dd   :  { %v2217_v24 = vpop.eup %2216  ;;  %v1996_v28 = vmul.f32 -1.442695, %v483_v18 }
 0x2de   :  { %v2219_v29 = vpop.eup %2218  ;;  %v507_v30 = vadd.f32 1.0, %v2217_v24  ;;  %2005 = vmatmul.msk.f32.vlgmr.msrb.gmra.mxu3 %vm129_vm12, %v2738_v22  ;;  %2007 = vmatmul.msk.f32.vlgmr.msra.gmra.mxu0 %vm129_vm12, %v2738_v22 }
 0x2df   :  { %v490_v26 = vmul.f32 %v2219_v29, %v488_v7  ;;  %2220 = vpow2.f32 %v1996_v28  ;;  %vm495_vm6 = vweird.f32 %v2219_v29 }
 0x2e0   :  { %2222 = vrcp.f32 %v507_v30  ;;  %v519_v44 = vand.u32 2147483648, %v507_v30  ;;  %v517_v1 = vand.u32 2147483647, %v507_v30  ;;  %vm496_vm9 = vmor %vm494_vm7, %vm495_vm6  ;;  %vm513_vm10 = vweird.f32 %v507_v30 }
 0x2e1   :  { %v491_v31 = vsub.f32 1.0, %v490_v26  ;;  %v2766_v26 = vld [vmem:[%s3276_s3 + $0x10] sm:$0xff] }
 0x2e2   :  { %v478_v34 = vpop.f32.mrf.mxu1  ;;  %v520_v54 = vor.u32 1.1754944e-38, %v519_v44  ;;  %vm518_vm15 = vcmp.eq.f32.partialorder %v517_v1, 8.507059e+37 }
 0x2e3   :  { %v484_v52 = vadd.f32 %v478_v34, %v2672_v50  ;;  %v492_v37 = vmul.f32 %v2219_v29, %v491_v31 }
 0x2e5   :  { %v2221_v36 = vpop.eup %2220  ;;  %2224 = vtanh.f32 %v484_v52  ;;  %v493_v43 = vadd.f32 %v2219_v29, %v492_v37 }
 0x2e6   :  { %v2223_v38 = vpop.eup %2222  ;;  %v526_v39 = vadd.f32 1.0, %v2221_v36 }
 0x2e7   :  { %v509_v40 = vmul.f32 %v2223_v38, %v507_v30  ;;  %vm514_vm8 = vweird.f32 %v2223_v38  ;;  %v497_v49 = vsel %vm496_vm9, %v2219_v29, %v493_v43 }
 0x2e8   :  { %2226 = vrcp.f32 %v526_v39  ;;  %vm515_vm11 = vmor %vm513_vm10, %vm514_vm8  ;;  %v502_v59 = vsel %vm499_vm14, %v501_v55, %v497_v49  ;;  %v538_v10 = vand.u32 2147483648, %v526_v39  ;;  %vm532_vm1 = vweird.f32 %v526_v39 }
 0x2e9   :  { %v510_v41 = vsub.f32 1.0, %v509_v40  ;;  %v536_v12 = vand.u32 2147483647, %v526_v39 }
 0x2ea   :  { %v539_v17 = vor.u32 1.1754944e-38, %v538_v10 }
 0x2eb   :  { %v511_v48 = vmul.f32 %v2223_v38, %v510_v41  ;;  %v2225_v42 = vpop.eup %2224  ;;  %vm537_vm3 = vcmp.eq.f32.partialorder %v536_v12, 8.507059e+37 }
 0x2ec   :  { %v544_v2 = vmul.f32 %v2225_v42, %v502_v59 }
 0x2ed   :  { %v512_v51 = vadd.f32 %v2223_v38, %v511_v48 }
 0x2ee   :  { %v2227_v53 = vpop.eup %2226 }
 0x2ef   :  { %v528_v56 = vmul.f32 %v2227_v53, %v526_v39  ;;  %v516_v57 = vsel %vm515_vm11, %v2223_v38, %v512_v51  ;;  %vm533_vm0 = vweird.f32 %v2227_v53 }
 0x2f0   :  { %v521_v60 = vsel %vm518_vm15, %v520_v54, %v516_v57  ;;  %vm534_vm2 = vmor %vm532_vm1, %vm533_vm0 }
 0x2f1   :  { %v529_v61 = vsub.f32 1.0, %v528_v56  ;;  %v543_v62 = vmul.f32 %v521_v60, %v2679_v32 }
 0x2f3   :  { %v530_v5 = vmul.f32 %v2227_v53, %v529_v61  ;;  %v2746_v7 = vadd.f32 %v544_v2, %v543_v62 }
 0x2f5   :  { %2228 = vtanh.f32 %v2746_v7  ;;  %v531_v25 = vadd.f32 %v2227_v53, %v530_v5 }
 0x2f7   :  { %v535_v16 = vsel %vm534_vm2, %v2227_v53, %v531_v25 }
 0x2f8   :  { %v540_v19 = vsel %vm537_vm3, %v539_v17, %v535_v16 }
 0x2fb   :  { %v2229_v18 = vpop.eup %2228 }
 0x2fc   :  { %v547_v24 = vmul.f32 %v2229_v18, %v540_v19 }
 0x2fe   :  { %1997 = vst.msk [vmem:[%s3281_s5 + $0x8] sm:$0xff] %vm129_vm12, %v547_v24  ;;  %2006 = vmatmul.msk.f32.gmra.mxu3 %vm129_vm12, %v547_v24  ;;  %2008 = vmatmul.msk.f32.gmra.mxu0 %vm129_vm12, %v547_v24 }
 0x35b   :  { %v668_v32 = vpop.f32.mrf.mxu0 }
 0x361   :  { %v645_v28 = vpop.f32.mrf.mxu3 }
 0x37b   :  { %v671_v29 = vpop.f32.mrf.mxu0 }
 0x37c   :  { %684 = vmatpush.msrb.mxu0 %v671_v29  ;;  %2140 = vmatpush.msra.mxu3 %v671_v29 }
 0x37e   :  { %685 = vmatpush.msrb.mxu0 %v668_v32  ;;  %2141 = vmatpush.msra.mxu3 %v668_v32 }
 0x380   :  { %686 = vmatpush.msrb.mxu0 %v547_v24  ;;  %2142 = vmatpush.msra.mxu3 %v547_v24 }
 0x381   :  { %v648_v30 = vpop.f32.mrf.mxu3 }
 0x382   :  { %687 = vmatpush.msrb.mxu0 %v2738_v22  ;;  %2143 = vmatpush.msra.mxu3 %v2738_v22  ;;  %v2023_v22 = vld [vmem:[%s3277_s0 + $0x70] sm:$0xff] }
 0x384   :  { %688 = vmatpush.msrb.mxu0 %v648_v30  ;;  %2144 = vmatpush.msra.mxu3 %v648_v30 }
 0x386   :  { %689 = vmatpush.msrb.mxu0 %v645_v28  ;;  %2145 = vmatpush.msra.mxu3 %v645_v28 }
 0x387   :  { %2009 = vmatmul.msk.f32.vlgmr.msrb.gmra.mxu0 %vm182_vm13, %v2570_v63  ;;  %2012 = vmatmul.msk.f32.vlgmr.msra.gmra.mxu3 %vm182_vm13, %v2597_v8 }
 0x388   :  { %874 = vmatpush.msra.mxu0 %v2474_v0  ;;  %1365 = vmatpush.msrb.mxu3 %v2525_v20  ;;  %v2782_v0 = vld [vmem:[%s3276_s3 + $0x18] sm:$0xff] }
 0x38a   :  { %875 = vmatpush.msra.mxu0 %v2766_v26  ;;  %1366 = vmatpush.msrb.mxu3 %v2530_v21 }
 0x38c   :  { %876 = vmatpush.msra.mxu0 %v2492_v4  ;;  %1367 = vmatpush.msrb.mxu3 %v2537_v27  ;;  %v2791_v4 = vld [vmem:[%s3276_s3 + $0x8] sm:$0xff] }
 0x38e   :  { %877 = vmatpush.msra.mxu0 %v2503_v9  ;;  %1368 = vmatpush.msrb.mxu3 %v2545_v33  ;;  %v2798_v9 = vld [vmem:[%s3276_s3] sm:$0xff] }
 0x38f   :  { %2010 = vmatmul.msk.f32.gmra.mxu0 %vm182_vm13, %v2577_v3  ;;  %2013 = vmatmul.msk.f32.gmra.mxu3 %vm182_vm13, %v2607_v11  ;;  %v2022_v3 = vld [vmem:[%s3277_s0 + $0x68] sm:$0xff] }
 0x390   :  { %897 = vmatpush.msrb.mxu0 %v2525_v20  ;;  %1576 = vmatpush.msra.mxu3 %v2782_v0  ;;  %v2021_v20 = vld [vmem:[%s3277_s0 + $0x60] sm:$0xff] }
 0x392   :  { %898 = vmatpush.msrb.mxu0 %v2530_v21  ;;  %1577 = vmatpush.msra.mxu3 %v2766_v26 }
 0x394   :  { %899 = vmatpush.msrb.mxu0 %v2537_v27  ;;  %1578 = vmatpush.msra.mxu3 %v2791_v4 }
 0x396   :  { %900 = vmatpush.msrb.mxu0 %v2545_v33  ;;  %1579 = vmatpush.msra.mxu3 %v2798_v9 }
 0x397   :  { %2011 = vmatmul.msk.f32.gmra.mxu0 %vm182_vm13, %v2587_v6  ;;  %2014 = vmatmul.msk.f32.gmra.mxu3 %vm182_vm13, %v2617_v13 }
 0x39f   :  { %2015 = vmatmul.msk.f32.gmra.mxu3 %vm182_vm13, %v2624_v14 }
 0x3a7   :  { %2016 = vmatmul.msk.f32.gmra.mxu3 %vm182_vm13, %v2631_v15 }
 0x404   :  { %v691_v21 = vpop.f32.mrf.mxu0 }
 0x405   :  { %v789_v27 = vadd.f32 %v2021_v20, %v691_v21 }
 0x407   :  { %v2025_v33 = vmul.f32 -1.442695, %v789_v27 }
 0x409   :  { %2230 = vpow2.f32 %v2025_v33 }
 0x40a   :  { %v700_v63 = vpop.f32.mrf.mxu3 }
 0x40b   :  { %v792_v54 = vadd.f32 %v2024_v45, %v700_v63 }
 0x40c   :  { %v694_v6 = vpop.f32.mrf.mxu0 }
 0x40d   :  { %v790_v8 = vadd.f32 %v2022_v3, %v694_v6 }
 0x40f   :  { %v2231_v11 = vpop.eup %2230  ;;  %v2026_v13 = vmul.f32 -1.442695, %v790_v8 }
 0x410   :  { %v796_v14 = vadd.f32 1.0, %v2231_v11 }
 0x411   :  { %2232 = vpow2.f32 %v2026_v13 }
 0x412   :  { %2234 = vrcp.f32 %v796_v14  ;;  %v703_v15 = vpop.f32.mrf.mxu3  ;;  %vm802_vm4 = vweird.f32 %v796_v14  ;;  %v808_v59 = vand.u32 2147483648, %v796_v14  ;;  %v806_v61 = vand.u32 2147483647, %v796_v14 }
 0x413   :  { %v715_v31 = vadd.f32 %v703_v15, %v2647_v47 }
 0x414   :  { %v697_v34 = vpop.f32.mrf.mxu0  ;;  %v809_v24 = vor.u32 1.1754944e-38, %v808_v59  ;;  %vm807_vm9 = vcmp.eq.f32.partialorder %v806_v61, 8.507059e+37 }
 0x415   :  { %v2017_v52 = vmul.f32 -1.442695, %v715_v31  ;;  %v791_v36 = vadd.f32 %v2023_v22, %v697_v34 }
 0x417   :  { %v2233_v37 = vpop.eup %2232  ;;  %2236 = vpow2.f32 %v2017_v52  ;;  %v2027_v38 = vmul.f32 -1.442695, %v791_v36 }
 0x418   :  { %v2235_v39 = vpop.eup %2234  ;;  %v815_v40 = vadd.f32 1.0, %v2233_v37 }
 0x419   :  { %v798_v41 = vmul.f32 %v2235_v39, %v796_v14  ;;  %2238 = vpow2.f32 %v2027_v38  ;;  %vm803_vm5 = vweird.f32 %v2235_v39 }
 0x41a   :  { %2240 = vrcp.f32 %v815_v40  ;;  %v706_v43 = vpop.f32.mrf.mxu3  ;;  %vm2830_vm6 = vmor %vm802_vm4, %vm803_vm5  ;;  %vm821_vm7 = vweird.f32 %v815_v40  ;;  %v825_v10 = vand.u32 2147483647, %v815_v40  ;;  %v827_v25 = vand.u32 2147483648, %v815_v40 }
 0x41b   :  { %v799_v44 = vsub.f32 1.0, %v798_v41  ;;  %v716_v46 = vadd.f32 %v706_v43, %v2657_v23 }
 0x41c   :  { %v828_v21 = vor.u32 1.1754944e-38, %v827_v25  ;;  %vm826_vm11 = vcmp.eq.f32.partialorder %v825_v10, 8.507059e+37 }
 0x41d   :  { %v2237_v48 = vpop.eup %2236  ;;  %v800_v1 = vmul.f32 %v2235_v39, %v799_v44  ;;  %v2018_v42 = vmul.f32 -1.442695, %v716_v46 }
 0x41e   :  { %v2823_v49 = vadd.f32 1.0, %v2237_v48 }
 0x41f   :  { %v2239_v51 = vpop.eup %2238  ;;  %2242 = vpow2.f32 %v2018_v42  ;;  %v801_v56 = vadd.f32 %v2235_v39, %v800_v1 }
 0x420   :  { %v2241_v53 = vpop.eup %2240  ;;  %2244 = vrcp.f32 %v2823_v49  ;;  %v2826_v55 = vadd.f32 1.0, %v2239_v51  ;;  %v732_v44 = vand.u32 2147483647, %v2823_v49  ;;  %v734_v46 = vand.u32 2147483648, %v2823_v49  ;;  %v2047_v51 = vld [vmem:[%s3277_s0 + $0x98] sm:$0xff] }
 0x421   :  { %v817_v57 = vmul.f32 %v2241_v53, %v815_v40  ;;  %v805_v16 = vsel %vm2830_vm6, %v2235_v39, %v801_v56  ;;  %vm822_vm8 = vweird.f32 %v2241_v53  ;;  %vm728_vm3 = vweird.f32 %v2823_v49 }
 0x422   :  { %2246 = vrcp.f32 %v2826_v55  ;;  %v709_v60 = vpop.f32.mrf.mxu3  ;;  %v810_v20 = vsel %vm807_vm9, %v809_v24, %v805_v16  ;;  %vm823_vm10 = vmor %vm821_vm7, %vm822_vm8  ;;  %vm840_vm14 = vweird.f32 %v2826_v55  ;;  %v846_v39 = vand.u32 2147483648, %v2826_v55 }
 0x423   :  { %v818_v62 = vsub.f32 1.0, %v817_v57  ;;  %v717_v2 = vadd.f32 %v709_v60, %v2663_v35  ;;  %2248 = vtanh.f32 %v792_v54  ;;  %v844_v48 = vand.u32 2147483647, %v2826_v55 }
 0x424   :  { %v847_v56 = vor.u32 1.1754944e-38, %v846_v39  ;;  %vm733_vm7 = vcmp.eq.f32.partialorder %v732_v44, 8.507059e+37  ;;  %v735_v60 = vor.u32 1.1754944e-38, %v734_v46 }
 0x425   :  { %v2243_v12 = vpop.eup %2242  ;;  %v819_v17 = vmul.f32 %v2241_v53, %v818_v62  ;;  %v2019_v18 = vmul.f32 -1.442695, %v717_v2  ;;  %vm845_vm8 = vcmp.eq.f32.partialorder %v844_v48, 8.507059e+37 }
 0x426   :  { %v2836_v19 = vpop.eup %2244  ;;  %v2838_v32 = vadd.f32 1.0, %v2243_v12 }
 0x427   :  { %v820_v28 = vadd.f32 %v2241_v53, %v819_v17  ;;  %v724_v29 = vmul.f32 %v2836_v19, %v2823_v49  ;;  %2250 = vpow2.f32 %v2019_v18  ;;  %vm729_vm0 = vweird.f32 %v2836_v19 }
 0x428   :  { %v2247_v30 = vpop.eup %2246  ;;  %2252 = vrcp.f32 %v2838_v32  ;;  %v753_v43 = vand.u32 2147483648, %v2838_v32  ;;  %v751_v42 = vand.u32 2147483647, %v2838_v32  ;;  %vm2868_vm4 = vmor %vm728_vm3, %vm729_vm0  ;;  %vm747_vm5 = vweird.f32 %v2838_v32 }
 0x429   :  { %v824_v27 = vsel %vm823_vm10, %v2241_v53, %v820_v28  ;;  %v725_v33 = vsub.f32 1.0, %v724_v29  ;;  %v836_v63 = vmul.f32 %v2247_v30, %v2826_v55  ;;  %v2249_v3 = vpop.eup %2248  ;;  %vm841_vm15 = vweird.f32 %v2247_v30 }
 0x42a   :  { %v829_v6 = vsel %vm826_vm11, %v828_v21, %v824_v27  ;;  %v712_v8 = vpop.f32.mrf.mxu3  ;;  %v852_v11 = vmul.f32 %v2249_v3, %v810_v20  ;;  %vm2862_vm1 = vmor %vm840_vm14, %vm841_vm15  ;;  %v754_v49 = vor.u32 1.1754944e-38, %v753_v43  ;;  %vm752_vm9 = vcmp.eq.f32.partialorder %v751_v42, 8.507059e+37  ;;  %v2911_v3 = vld [vmem:[%s3279_s1 + $0x10] sm:$0xff] }
 0x42b   :  { %v851_v13 = vmul.f32 %v829_v6, %v2733_v58  ;;  %v837_v14 = vsub.f32 1.0, %v836_v63  ;;  %v718_v15 = vadd.f32 %v712_v8, %v2672_v50  ;;  %v726_v34 = vmul.f32 %v2836_v19, %v725_v33  ;;  %v2904_v63 = vld [vmem:[%s3279_s1 + $0x8] sm:$0xff]  ;;  %v2918_v6 = vld [vmem:[%s3279_s1 + $0x18] sm:$0xff]  ;;  %v2925_v8 = vld [vmem:[%s3279_s1 + $0x20] sm:$0xff] }
 0x42d   :  { %v2251_v22 = vpop.eup %2250  ;;  %v838_v31 = vmul.f32 %v2247_v30, %v837_v14  ;;  %v2848_v52 = vadd.f32 %v852_v11, %v851_v13  ;;  %2254 = vtanh.f32 %v718_v15  ;;  %v727_v41 = vadd.f32 %v2836_v19, %v726_v34  ;;  %v2932_v11 = vld [vmem:[%s3279_s1 + $0x28] sm:$0xff]  ;;  %v2939_v13 = vld [vmem:[%s3279_s1 + $0x30] sm:$0xff]  ;;  %v2946_v14 = vld [vmem:[%s3279_s1 + $0x38] sm:$0xff] }
 0x42e   :  { %v2253_v36 = vpop.eup %2252  ;;  %v760_v37 = vadd.f32 1.0, %v2251_v22  ;;  %v2044_v15 = vld [vmem:[%s3277_s0 + $0x80] sm:$0xff] }
 0x42f   :  { %v743_v38 = vmul.f32 %v2253_v36, %v2838_v32  ;;  %v839_v58 = vadd.f32 %v2247_v30, %v838_v31  ;;  %vm748_vm2 = vweird.f32 %v2253_v36  ;;  %v731_v55 = vsel %vm2868_vm4, %v2836_v19, %v727_v41  ;;  %v2046_v41 = vld [vmem:[%s3277_s0 + $0x90] sm:$0xff] }
 0x430   :  { %2256 = vrcp.f32 %v760_v37  ;;  %vm749_vm6 = vmor %vm747_vm5, %vm748_vm2  ;;  %v736_v10 = vsel %vm733_vm7, %v735_v60, %v731_v55  ;;  %v772_v28 = vand.u32 2147483648, %v760_v37  ;;  %vm766_vm11 = vweird.f32 %v760_v37 }
 0x431   :  { %v744_v40 = vsub.f32 1.0, %v743_v38  ;;  %2258 = vtanh.f32 %v2848_v52  ;;  %v843_v53 = vsel %vm2862_vm1, %v2247_v30, %v839_v58  ;;  %v770_v29 = vand.u32 2147483647, %v760_v37 }
 0x432   :  { %v848_v5 = vsel %vm845_vm8, %v847_v56, %v843_v53  ;;  %v773_v30 = vor.u32 1.1754944e-38, %v772_v28 }
 0x433   :  { %v745_v1 = vmul.f32 %v2253_v36, %v744_v40  ;;  %v2255_v54 = vpop.eup %2254  ;;  %vm771_vm15 = vcmp.eq.f32.partialorder %v770_v29, 8.507059e+37 }
 0x434   :  { %v778_v18 = vmul.f32 %v2255_v54, %v736_v10 }
 0x435   :  { %v746_v57 = vadd.f32 %v2253_v36, %v745_v1 }
 0x436   :  { %v2257_v59 = vpop.eup %2256 }
 0x437   :  { %v2259_v61 = vpop.eup %2258  ;;  %v762_v62 = vmul.f32 %v2257_v59, %v760_v37  ;;  %v750_v2 = vsel %vm749_vm6, %v2253_v36, %v746_v57  ;;  %vm767_vm10 = vweird.f32 %v2257_v59  ;;  %v2045_v36 = vld [vmem:[%s3277_s0 + $0x88] sm:$0xff] }
 0x438   :  { %v755_v25 = vsel %vm752_vm9, %v754_v49, %v750_v2  ;;  %v855_v12 = vmul.f32 %v2259_v61, %v848_v5  ;;  %vm768_vm14 = vmor %vm766_vm11, %vm767_vm10 }
 0x439   :  { %v763_v16 = vsub.f32 1.0, %v762_v62  ;;  %v777_v17 = vmul.f32 %v755_v25, %v2746_v7 }
 0x43a   :  { %2028 = vmatmul.msk.f32.vlgmr.msra.gmra.mxu0 %vm129_vm12, %v855_v12 }
 0x43b   :  { %v2880_v19 = vadd.f32 %v778_v18, %v777_v17  ;;  %v764_v24 = vmul.f32 %v2257_v59, %v763_v16  ;;  %1108 = vmatpush.msra.mxu0 %v2782_v0 }
 0x43d   :  { %2260 = vtanh.f32 %v2880_v19  ;;  %v765_v32 = vadd.f32 %v2257_v59, %v764_v24  ;;  %1109 = vmatpush.msra.mxu0 %v2766_v26 }
 0x43f   :  { %1110 = vmatpush.msra.mxu0 %v2791_v4  ;;  %v769_v7 = vsel %vm768_vm14, %v2257_v59, %v765_v32 }
 0x440   :  { %v774_v21 = vsel %vm771_vm15, %v773_v30, %v769_v7 }
 0x441   :  { %1111 = vmatpush.msra.mxu0 %v2798_v9  ;;  %v2897_v9 = vld [vmem:[%s3279_s1] sm:$0xff] }
 0x443   :  { %v2261_v20 = vpop.eup %2260 }
 0x444   :  { %v781_v0 = vmul.f32 %v2261_v20, %v774_v21 }
 0x446   :  { %2020 = vst.msk [vmem:[%s3281_s5 + $0x10] sm:$0xff] %vm129_vm12, %v781_v0  ;;  %2029 = vmatmul.msk.f32.gmra.mxu0 %vm129_vm12, %v781_v0 }
 0x44e   :  { %2030 = vmatmul.msk.f32.vlgmr.msrb.gmra.mxu0 %vm129_vm12, %v855_v12 }
 0x456   :  { %2031 = vmatmul.msk.f32.gmra.mxu0 %vm129_vm12, %v781_v0 }
 0x4b7   :  { %v879_v26 = vpop.f32.mrf.mxu0 }
 0x4c3   :  { %v882_v4 = vpop.f32.mrf.mxu0 }
 0x4cb   :  { %v902_v27 = vpop.f32.mrf.mxu0 }
 0x4d3   :  { %v905_v33 = vpop.f32.mrf.mxu0 }
 0x4d4   :  { %918 = vmatpush.msrb.mxu2 %v905_v33 }
 0x4d6   :  { %919 = vmatpush.msrb.mxu2 %v902_v27 }
 0x4d8   :  { %920 = vmatpush.msrb.mxu2 %v781_v0 }
 0x4da   :  { %921 = vmatpush.msrb.mxu2 %v855_v12 }
 0x4dc   :  { %922 = vmatpush.msrb.mxu2 %v882_v4 }
 0x4de   :  { %923 = vmatpush.msrb.mxu2 %v879_v26 }
 0x4df   :  { %2032 = vmatmul.msk.f32.vlgmr.msrb.gmra.mxu2 %vm182_vm13, %v2897_v9 }
 0x4e7   :  { %2033 = vmatmul.msk.f32.gmra.mxu2 %vm182_vm13, %v2904_v63 }
 0x4ef   :  { %2034 = vmatmul.msk.f32.gmra.mxu2 %vm182_vm13, %v2911_v3 }
 0x4f7   :  { %2035 = vmatmul.msk.f32.gmra.mxu2 %vm182_vm13, %v2918_v6 }
 0x4ff   :  { %2036 = vmatmul.msk.f32.gmra.mxu2 %vm182_vm13, %v2925_v8 }
 0x507   :  { %2037 = vmatmul.msk.f32.gmra.mxu2 %vm182_vm13, %v2932_v11 }
 0x50f   :  { %2038 = vmatmul.msk.f32.gmra.mxu2 %vm182_vm13, %v2939_v13 }
 0x517   :  { %2039 = vmatmul.msk.f32.gmra.mxu2 %vm182_vm13, %v2946_v14 }
 0x562   :  { %v925_v22 = vpop.f32.mrf.mxu2 }
 0x563   :  { %v1023_v31 = vadd.f32 %v2044_v15, %v925_v22 }
 0x565   :  { %v2048_v34 = vmul.f32 -1.442695, %v1023_v31 }
 0x567   :  { %2262 = vpow2.f32 %v2048_v34 }
 0x56a   :  { %v928_v37 = vpop.f32.mrf.mxu2 }
 0x56b   :  { %v1024_v38 = vadd.f32 %v2045_v36, %v928_v37 }
 0x56d   :  { %v2263_v39 = vpop.eup %2262  ;;  %v2049_v58 = vmul.f32 -1.442695, %v1024_v38 }
 0x56e   :  { %v1030_v40 = vadd.f32 1.0, %v2263_v39 }
 0x56f   :  { %2264 = vpow2.f32 %v2049_v58 }
 0x570   :  { %2266 = vrcp.f32 %v1030_v40  ;;  %vm1036_vm1 = vweird.f32 %v1030_v40  ;;  %v1040_v5 = vand.u32 2147483647, %v1030_v40  ;;  %v1042_v10 = vand.u32 2147483648, %v1030_v40 }
 0x572   :  { %v931_v43 = vpop.f32.mrf.mxu2  ;;  %vm1041_vm6 = vcmp.eq.f32.partialorder %v1040_v5, 8.507059e+37  ;;  %v1043_v20 = vor.u32 1.1754944e-38, %v1042_v10 }
 0x573   :  { %v1025_v44 = vadd.f32 %v2046_v41, %v931_v43 }
 0x575   :  { %v2265_v46 = vpop.eup %2264  ;;  %v2050_v48 = vmul.f32 -1.442695, %v1025_v44 }
 0x576   :  { %v2267_v45 = vpop.eup %2266  ;;  %v1049_v1 = vadd.f32 1.0, %v2265_v46 }
 0x577   :  { %v1032_v42 = vmul.f32 %v2267_v45, %v1030_v40  ;;  %2268 = vpow2.f32 %v2050_v48  ;;  %vm1037_vm0 = vweird.f32 %v2267_v45 }
 0x578   :  { %2270 = vrcp.f32 %v1049_v1  ;;  %v1061_v2 = vand.u32 2147483648, %v1049_v1  ;;  %v1059_v16 = vand.u32 2147483647, %v1049_v1  ;;  %vm2963_vm3 = vmor %vm1036_vm1, %vm1037_vm0  ;;  %vm1055_vm4 = vweird.f32 %v1049_v1 }
 0x579   :  { %v1033_v53 = vsub.f32 1.0, %v1032_v42 }
 0x57a   :  { %v934_v54 = vpop.f32.mrf.mxu2  ;;  %v1062_v30 = vor.u32 1.1754944e-38, %v1061_v2  ;;  %vm1060_vm7 = vcmp.eq.f32.partialorder %v1059_v16, 8.507059e+37 }
 0x57b   :  { %v1026_v56 = vadd.f32 %v2047_v51, %v934_v54  ;;  %v1034_v57 = vmul.f32 %v2267_v45, %v1033_v53 }
 0x57d   :  { %v2269_v55 = vpop.eup %2268  ;;  %2272 = vtanh.f32 %v1026_v56  ;;  %v1035_v62 = vadd.f32 %v2267_v45, %v1034_v57 }
 0x57e   :  { %v2271_v59 = vpop.eup %2270  ;;  %v1068_v49 = vadd.f32 1.0, %v2269_v55 }
 0x57f   :  { %v1051_v60 = vmul.f32 %v2271_v59, %v1049_v1  ;;  %vm1056_vm2 = vweird.f32 %v2271_v59  ;;  %v1039_v32 = vsel %vm2963_vm3, %v2267_v45, %v1035_v62 }
 0x580   :  { %2274 = vrcp.f32 %v1068_v49  ;;  %vm1057_vm5 = vmor %vm1055_vm4, %vm1056_vm2  ;;  %v1044_v26 = vsel %vm1041_vm6, %v1043_v20, %v1039_v32  ;;  %v1080_v38 = vand.u32 2147483648, %v1068_v49  ;;  %vm1074_vm9 = vweird.f32 %v1068_v49 }
 0x581   :  { %v1052_v61 = vsub.f32 1.0, %v1051_v60  ;;  %v1078_v41 = vand.u32 2147483647, %v1068_v49 }
 0x582   :  { %v937_v25 = vpop.f32.mrf.mxu2  ;;  %v1081_v43 = vor.u32 1.1754944e-38, %v1080_v38 }
 0x583   :  { %v1053_v12 = vmul.f32 %v2271_v59, %v1052_v61  ;;  %v949_v17 = vadd.f32 %v937_v25, %v2647_v47  ;;  %v2273_v24 = vpop.eup %2272  ;;  %vm1079_vm11 = vcmp.eq.f32.partialorder %v1078_v41, 8.507059e+37 }
 0x584   :  { %v1086_v15 = vmul.f32 %v2273_v24, %v1044_v26 }
 0x585   :  { %v1054_v28 = vadd.f32 %v2271_v59, %v1053_v12  ;;  %v2040_v29 = vmul.f32 -1.442695, %v949_v17 }
 0x586   :  { %v2275_v7 = vpop.eup %2274 }
 0x587   :  { %v1070_v21 = vmul.f32 %v2275_v7, %v1068_v49  ;;  %v1058_v0 = vsel %vm1057_vm5, %v2271_v59, %v1054_v28  ;;  %2276 = vpow2.f32 %v2040_v29  ;;  %vm1075_vm8 = vweird.f32 %v2275_v7 }
 0x588   :  { %v1063_v4 = vsel %vm1060_vm7, %v1062_v30, %v1058_v0  ;;  %vm1076_vm10 = vmor %vm1074_vm9, %vm1075_vm8 }
 0x589   :  { %v1071_v27 = vsub.f32 1.0, %v1070_v21  ;;  %v1085_v33 = vmul.f32 %v1063_v4, %v2848_v52 }
 0x58a   :  { %v940_v22 = vpop.f32.mrf.mxu2 }
 0x58b   :  { %v1072_v31 = vmul.f32 %v2275_v7, %v1071_v27  ;;  %v2970_v34 = vadd.f32 %v1086_v15, %v1085_v33  ;;  %v950_v36 = vadd.f32 %v940_v22, %v2657_v23 }
 0x58d   :  { %v2277_v37 = vpop.eup %2276  ;;  %2278 = vtanh.f32 %v2970_v34  ;;  %v2041_v39 = vmul.f32 -1.442695, %v950_v36  ;;  %v1073_v58 = vadd.f32 %v2275_v7, %v1072_v31 }
 0x58e   :  { %v956_v40 = vadd.f32 1.0, %v2277_v37 }
 0x58f   :  { %2280 = vpow2.f32 %v2041_v39  ;;  %v1077_v52 = vsel %vm1076_vm10, %v2275_v7, %v1073_v58 }
 0x590   :  { %2282 = vrcp.f32 %v956_v40  ;;  %v1082_v45 = vsel %vm1079_vm11, %v1081_v43, %v1077_v52  ;;  %vm962_vm15 = vweird.f32 %v956_v40  ;;  %v968_v12 = vand.u32 2147483648, %v956_v40 }
 0x591   :  { %v966_v17 = vand.u32 2147483647, %v956_v40 }
 0x592   :  { %v943_v44 = vpop.f32.mrf.mxu2  ;;  %v969_v30 = vor.u32 1.1754944e-38, %v968_v12 }
 0x593   :  { %v2279_v46 = vpop.eup %2278  ;;  %v951_v48 = vadd.f32 %v943_v44, %v2663_v35  ;;  %vm967_vm4 = vcmp.eq.f32.partialorder %v966_v17, 8.507059e+37  ;;  %v2070_v17 = vld [vmem:[%s3277_s0 + $0xb8] sm:$0xff] }
 0x594   :  { %v2975_v1 = vmul.f32 %v2279_v46, %v1082_v45  ;;  %v2998_v46 = vld [vmem:[%s3278_s4 + $0x18] sm:$0xff]  ;;  %v3010_v45 = vld [vmem:[%s3278_s4 + $0x8] sm:$0xff] }
 0x595   :  { %v2281_v42 = vpop.eup %2280  ;;  %v2042_v51 = vmul.f32 -1.442695, %v951_v48  ;;  %v3004_v48 = vld [vmem:[%s3278_s4 + $0x10] sm:$0xff] }
 0x596   :  { %v2283_v53 = vpop.eup %2282  ;;  %v975_v54 = vadd.f32 1.0, %v2281_v42  ;;  %2051 = vmatmul.msk.f32.vlgmr.msra.gmra.mxu0 %vm129_vm12, %v2975_v1  ;;  %2053 = vmatmul.msk.f32.vlgmr.msrb.gmra.mxu1 %vm129_vm12, %v2975_v1  ;;  %v2067_v42 = vld [vmem:[%s3277_s0 + $0xa0] sm:$0xff] }
 0x597   :  { %v958_v56 = vmul.f32 %v2283_v53, %v956_v40  ;;  %2284 = vpow2.f32 %v2042_v51  ;;  %vm963_vm14 = vweird.f32 %v2283_v53 }
 0x598   :  { %2286 = vrcp.f32 %v975_v54  ;;  %v987_v25 = vand.u32 2147483648, %v975_v54  ;;  %v985_v18 = vand.u32 2147483647, %v975_v54  ;;  %vm964_vm1 = vmor %vm962_vm15, %vm963_vm14  ;;  %vm981_vm2 = vweird.f32 %v975_v54 }
 0x599   :  { %v959_v55 = vsub.f32 1.0, %v958_v56  ;;  %v2068_v56 = vld [vmem:[%s3277_s0 + $0xa8] sm:$0xff] }
 0x59a   :  { %v946_v57 = vpop.f32.mrf.mxu2  ;;  %v988_v7 = vor.u32 1.1754944e-38, %v987_v25  ;;  %vm986_vm5 = vcmp.eq.f32.partialorder %v985_v18, 8.507059e+37 }
 0x59b   :  { %v952_v59 = vadd.f32 %v946_v57, %v2672_v50  ;;  %v960_v60 = vmul.f32 %v2283_v53, %v959_v55 }
 0x59d   :  { %v2285_v49 = vpop.eup %2284  ;;  %2288 = vtanh.f32 %v952_v59  ;;  %v961_v10 = vadd.f32 %v2283_v53, %v960_v60 }
 0x59e   :  { %v2287_v61 = vpop.eup %2286  ;;  %v994_v62 = vadd.f32 1.0, %v2285_v49 }
 0x59f   :  { %v977_v2 = vmul.f32 %v2287_v61, %v975_v54  ;;  %vm982_vm0 = vweird.f32 %v2287_v61  ;;  %v965_v32 = vsel %vm964_vm1, %v2283_v53, %v961_v10 }
 0x5a0   :  { %2290 = vrcp.f32 %v994_v62  ;;  %vm983_vm3 = vmor %vm981_vm2, %vm982_vm0  ;;  %v970_v0 = vsel %vm967_vm4, %v969_v30, %v965_v32  ;;  %v1006_v36 = vand.u32 2147483648, %v994_v62  ;;  %vm1000_vm7 = vweird.f32 %v994_v62 }
 0x5a1   :  { %v978_v5 = vsub.f32 1.0, %v977_v2  ;;  %v1004_v37 = vand.u32 2147483647, %v994_v62 }
 0x5a2   :  { %v1007_v39 = vor.u32 1.1754944e-38, %v1006_v36 }
 0x5a3   :  { %v979_v16 = vmul.f32 %v2287_v61, %v978_v5  ;;  %v2289_v24 = vpop.eup %2288  ;;  %vm1005_vm9 = vcmp.eq.f32.partialorder %v1004_v37, 8.507059e+37 }
 0x5a4   :  { %v1012_v33 = vmul.f32 %v2289_v24, %v970_v0 }
 0x5a5   :  { %v980_v28 = vadd.f32 %v2287_v61, %v979_v16 }
 0x5a6   :  { %v2291_v29 = vpop.eup %2290 }
 0x5a7   :  { %v996_v20 = vmul.f32 %v2291_v29, %v994_v62  ;;  %v984_v21 = vsel %vm983_vm3, %v2287_v61, %v980_v28  ;;  %vm1001_vm6 = vweird.f32 %v2291_v29  ;;  %v2069_v61 = vld [vmem:[%s3277_s0 + $0xb0] sm:$0xff] }
 0x5a8   :  { %v989_v26 = vsel %vm986_vm5, %v988_v7, %v984_v21  ;;  %vm1002_vm8 = vmor %vm1000_vm7, %vm1001_vm6 }
 0x5a9   :  { %v997_v4 = vsub.f32 1.0, %v996_v20  ;;  %v1011_v27 = vmul.f32 %v989_v26, %v2880_v19 }
 0x5ab   :  { %v2983_v15 = vadd.f32 %v1012_v33, %v1011_v27  ;;  %v998_v22 = vmul.f32 %v2291_v29, %v997_v4 }
 0x5ad   :  { %2292 = vtanh.f32 %v2983_v15  ;;  %v999_v31 = vadd.f32 %v2291_v29, %v998_v22 }
 0x5af   :  { %v1003_v38 = vsel %vm1002_vm8, %v2291_v29, %v999_v31 }
 0x5b0   :  { %v1008_v40 = vsel %vm1005_vm9, %v1007_v39, %v1003_v38 }
 0x5b3   :  { %v2293_v58 = vpop.eup %2292 }
 0x5b4   :  { %v1015_v41 = vmul.f32 %v2293_v58, %v1008_v40 }
 0x5b6   :  { %2043 = vst.msk [vmem:[%s3281_s5 + $0x18] sm:$0xff] %vm129_vm12, %v1015_v41  ;;  %2052 = vmatmul.msk.f32.gmra.mxu0 %vm129_vm12, %v1015_v41  ;;  %2054 = vmatmul.msk.f32.gmra.mxu1 %vm129_vm12, %v1015_v41 }
 0x613   :  { %v1136_v19 = vpop.f32.mrf.mxu1  ;;  %v1113_v52 = vpop.f32.mrf.mxu0 }
 0x633   :  { %v1139_v43 = vpop.f32.mrf.mxu1  ;;  %v1116_v44 = vpop.f32.mrf.mxu0 }
 0x634   :  { %1152 = vmatpush.msrb.mxu0 %v1139_v43 }
 0x636   :  { %1153 = vmatpush.msrb.mxu0 %v1136_v19 }
 0x638   :  { %1154 = vmatpush.msrb.mxu0 %v1015_v41 }
 0x63a   :  { %1155 = vmatpush.msrb.mxu0 %v2975_v1  ;;  %v3016_v1 = vld [vmem:[%s3278_s4] sm:$0xff] }
 0x63c   :  { %1156 = vmatpush.msrb.mxu0 %v1116_v44 }
 0x63e   :  { %1157 = vmatpush.msrb.mxu0 %v1113_v52 }
 0x63f   :  { %2055 = vmatmul.msk.f32.vlgmr.msrb.gmra.mxu0 %vm182_vm13, %v2897_v9 }
 0x640   :  { %1833 = vmatpush.msra.mxu0 %v2998_v46 }
 0x642   :  { %1834 = vmatpush.msra.mxu0 %v3004_v48 }
 0x644   :  { %1835 = vmatpush.msra.mxu0 %v3010_v45 }
 0x646   :  { %1836 = vmatpush.msra.mxu0 %v3016_v1 }
 0x647   :  { %2056 = vmatmul.msk.f32.gmra.mxu0 %vm182_vm13, %v2904_v63 }
 0x64f   :  { %2057 = vmatmul.msk.f32.gmra.mxu0 %vm182_vm13, %v2911_v3 }
 0x657   :  { %2058 = vmatmul.msk.f32.gmra.mxu0 %vm182_vm13, %v2918_v6 }
 0x65f   :  { %2059 = vmatmul.msk.f32.gmra.mxu0 %vm182_vm13, %v2925_v8 }
 0x667   :  { %2060 = vmatmul.msk.f32.gmra.mxu0 %vm182_vm13, %v2932_v11 }
 0x66f   :  { %2061 = vmatmul.msk.f32.gmra.mxu0 %vm182_vm13, %v2939_v13 }
 0x677   :  { %2062 = vmatmul.msk.f32.gmra.mxu0 %vm182_vm13, %v2946_v14 }
 0x6bc   :  { %v1159_v51 = vpop.f32.mrf.mxu0 }
 0x6bd   :  { %v1257_v53 = vadd.f32 %v2067_v42, %v1159_v51 }
 0x6bf   :  { %v2071_v54 = vmul.f32 -1.442695, %v1257_v53 }
 0x6c1   :  { %2294 = vpow2.f32 %v2071_v54 }
 0x6c4   :  { %v1162_v55 = vpop.f32.mrf.mxu0 }
 0x6c5   :  { %v1258_v57 = vadd.f32 %v2068_v56, %v1162_v55 }
 0x6c7   :  { %v2295_v59 = vpop.eup %2294  ;;  %v2072_v49 = vmul.f32 -1.442695, %v1258_v57 }
 0x6c8   :  { %v1264_v60 = vadd.f32 1.0, %v2295_v59 }
 0x6c9   :  { %2296 = vpow2.f32 %v2072_v49 }
 0x6ca   :  { %2298 = vrcp.f32 %v1264_v60  ;;  %vm1270_vm11 = vweird.f32 %v1264_v60  ;;  %v1274_v4 = vand.u32 2147483647, %v1264_v60  ;;  %v1276_v27 = vand.u32 2147483648, %v1264_v60 }
 0x6cc   :  { %v1165_v62 = vpop.f32.mrf.mxu0  ;;  %vm1275_vm2 = vcmp.eq.f32.partialorder %v1274_v4, 8.507059e+37  ;;  %v1277_v52 = vor.u32 1.1754944e-38, %v1276_v27 }
 0x6cd   :  { %v1259_v2 = vadd.f32 %v2069_v61, %v1165_v62 }
 0x6cf   :  { %v2297_v5 = vpop.eup %2296  ;;  %v2073_v10 = vmul.f32 -1.442695, %v1259_v2 }
 0x6d0   :  { %v2299_v25 = vpop.eup %2298  ;;  %v1283_v12 = vadd.f32 1.0, %v2297_v5 }
 0x6d1   :  { %v1266_v16 = vmul.f32 %v2299_v25, %v1264_v60  ;;  %2300 = vpow2.f32 %v2073_v10  ;;  %vm1271_vm10 = vweird.f32 %v2299_v25 }
 0x6d2   :  { %2302 = vrcp.f32 %v1283_v12  ;;  %v1295_v26 = vand.u32 2147483648, %v1283_v12  ;;  %v1293_v31 = vand.u32 2147483647, %v1283_v12  ;;  %vm3046_vm15 = vmor %vm1270_vm11, %vm1271_vm10  ;;  %vm1289_vm0 = vweird.f32 %v1283_v12 }
 0x6d3   :  { %v1267_v18 = vsub.f32 1.0, %v1266_v16 }
 0x6d4   :  { %v1168_v24 = vpop.f32.mrf.mxu0  ;;  %v1296_v19 = vor.u32 1.1754944e-38, %v1295_v26  ;;  %vm1294_vm3 = vcmp.eq.f32.partialorder %v1293_v31, 8.507059e+37 }
 0x6d5   :  { %v1260_v32 = vadd.f32 %v2070_v17, %v1168_v24  ;;  %v1268_v29 = vmul.f32 %v2299_v25, %v1267_v18 }
 0x6d7   :  { %v2301_v28 = vpop.eup %2300  ;;  %2304 = vtanh.f32 %v1260_v32  ;;  %v1269_v0 = vadd.f32 %v2299_v25, %v1268_v29 }
 0x6d8   :  { %v2303_v7 = vpop.eup %2302  ;;  %v1302_v30 = vadd.f32 1.0, %v2301_v28 }
 0x6d9   :  { %v1285_v20 = vmul.f32 %v2303_v7, %v1283_v12  ;;  %vm1290_vm14 = vweird.f32 %v2303_v7  ;;  %v1273_v39 = vsel %vm3046_vm15, %v2299_v25, %v1269_v0 }
 0x6da   :  { %2306 = vrcp.f32 %v1302_v30  ;;  %vm1291_vm1 = vmor %vm1289_vm0, %vm1290_vm14  ;;  %v1278_v42 = vsel %vm1275_vm2, %v1277_v52, %v1273_v39  ;;  %v1314_v61 = vand.u32 2147483648, %v1302_v30  ;;  %vm1308_vm5 = vweird.f32 %v1302_v30 }
 0x6db   :  { %v1286_v21 = vsub.f32 1.0, %v1285_v20  ;;  %v1312_v10 = vand.u32 2147483647, %v1302_v30 }
 0x6dc   :  { %v1171_v33 = vpop.f32.mrf.mxu0  ;;  %v1315_v25 = vor.u32 1.1754944e-38, %v1314_v61 }
 0x6dd   :  { %v1287_v22 = vmul.f32 %v2303_v7, %v1286_v21  ;;  %v1183_v36 = vadd.f32 %v1171_v33, %v2647_v47  ;;  %v2305_v38 = vpop.eup %2304  ;;  %vm1313_vm7 = vcmp.eq.f32.partialorder %v1312_v10, 8.507059e+37 }
 0x6de   :  { %v1320_v56 = vmul.f32 %v2305_v38, %v1278_v42 }
 0x6df   :  { %v1288_v58 = vadd.f32 %v2303_v7, %v1287_v22  ;;  %v2063_v40 = vmul.f32 -1.442695, %v1183_v36 }
 0x6e0   :  { %v2307_v41 = vpop.eup %2306 }
 0x6e1   :  { %v1304_v43 = vmul.f32 %v2307_v41, %v1302_v30  ;;  %v1292_v44 = vsel %vm1291_vm1, %v2303_v7, %v1288_v58  ;;  %2308 = vpow2.f32 %v2063_v40  ;;  %vm1309_vm4 = vweird.f32 %v2307_v41 }
 0x6e2   :  { %v1297_v51 = vsel %vm1294_vm3, %v1296_v19, %v1292_v44  ;;  %vm1310_vm6 = vmor %vm1308_vm5, %vm1309_vm4 }
 0x6e3   :  { %v1305_v53 = vsub.f32 1.0, %v1304_v43  ;;  %v1319_v54 = vmul.f32 %v1297_v51, %v2970_v34 }
 0x6e4   :  { %v1174_v55 = vpop.f32.mrf.mxu0 }
 0x6e5   :  { %v1306_v57 = vmul.f32 %v2307_v41, %v1305_v53  ;;  %v3053_v59 = vadd.f32 %v1320_v56, %v1319_v54  ;;  %v1184_v49 = vadd.f32 %v1174_v55, %v2657_v23 }
 0x6e7   :  { %v2309_v60 = vpop.eup %2308  ;;  %2310 = vtanh.f32 %v3053_v59  ;;  %v2064_v62 = vmul.f32 -1.442695, %v1184_v49  ;;  %v1307_v2 = vadd.f32 %v2307_v41, %v1306_v57 }
 0x6e8   :  { %v1190_v5 = vadd.f32 1.0, %v2309_v60 }
 0x6e9   :  { %2312 = vpow2.f32 %v2064_v62  ;;  %v1311_v34 = vsel %vm1310_vm6, %v2307_v41, %v1307_v2 }
 0x6ea   :  { %2314 = vrcp.f32 %v1190_v5  ;;  %v1316_v18 = vsel %vm1313_vm7, %v1315_v25, %v1311_v34  ;;  %vm1196_vm9 = vweird.f32 %v1190_v5  ;;  %v1200_v38 = vand.u32 2147483647, %v1190_v5 }
 0x6ec   :  { %v1177_v12 = vpop.f32.mrf.mxu0  ;;  %vm1201_vm0 = vcmp.eq.f32.partialorder %v1200_v38, 8.507059e+37 }
 0x6ed   :  { %v2311_v16 = vpop.eup %2310  ;;  %v1185_v17 = vadd.f32 %v1177_v12, %v2663_v35 }
 0x6ee   :  { %v3058_v24 = vmul.f32 %v2311_v16, %v1316_v18 }
 0x6ef   :  { %v2313_v32 = vpop.eup %2312  ;;  %v2065_v28 = vmul.f32 -1.442695, %v1185_v17 }
 0x6f0   :  { %v2315_v29 = vpop.eup %2314  ;;  %v1209_v7 = vadd.f32 1.0, %v2313_v32  ;;  %2074 = vmatmul.msk.f32.vlgmr.msra.gmra.mxu1 %vm129_vm12, %v3058_v24  ;;  %2076 = vmatmul.msk.f32.vlgmr.msrb.gmra.mxu3 %vm129_vm12, %v3058_v24 }
 0x6f1   :  { %v1192_v30 = vmul.f32 %v2315_v29, %v1190_v5  ;;  %2316 = vpow2.f32 %v2065_v28  ;;  %1599 = vmatpush.msrb.mxu3 %v2998_v46  ;;  %vm1197_vm8 = vweird.f32 %v2315_v29 }
 0x6f2   :  { %2318 = vrcp.f32 %v1209_v7  ;;  %v1221_v36 = vand.u32 2147483648, %v1209_v7  ;;  %v1219_v39 = vand.u32 2147483647, %v1209_v7  ;;  %vm1198_vm11 = vmor %vm1196_vm9, %vm1197_vm8  ;;  %vm1215_vm14 = vweird.f32 %v1209_v7 }
 0x6f3   :  { %v1193_v20 = vsub.f32 1.0, %v1192_v30  ;;  %1600 = vmatpush.msrb.mxu3 %v3004_v48  ;;  %v1202_v48 = vand.u32 2147483648, %v1190_v5 }
 0x6f4   :  { %v1180_v21 = vpop.f32.mrf.mxu0  ;;  %v1222_v41 = vor.u32 1.1754944e-38, %v1221_v36  ;;  %vm1220_vm1 = vcmp.eq.f32.partialorder %v1219_v39, 8.507059e+37 }
 0x6f5   :  { %v1186_v0 = vadd.f32 %v1180_v21, %v2672_v50  ;;  %1601 = vmatpush.msrb.mxu3 %v3010_v45  ;;  %v1194_v4 = vmul.f32 %v2315_v29, %v1193_v20  ;;  %v1203_v19 = vor.u32 1.1754944e-38, %v1202_v48  ;;  %v2093_v21 = vld [vmem:[%s3277_s0 + $0xd8] sm:$0xff] }
 0x6f7   :  { %v2317_v26 = vpop.eup %2316  ;;  %1602 = vmatpush.msrb.mxu3 %v3016_v1  ;;  %2320 = vtanh.f32 %v1186_v0  ;;  %v1195_v46 = vadd.f32 %v2315_v29, %v1194_v4 }
 0x6f8   :  { %v2319_v27 = vpop.eup %2318  ;;  %v1228_v33 = vadd.f32 1.0, %v2317_v26 }
 0x6f9   :  { %v1211_v22 = vmul.f32 %v2319_v27, %v1209_v7  ;;  %vm1216_vm10 = vweird.f32 %v2319_v27  ;;  %v1199_v58 = vsel %vm1198_vm11, %v2315_v29, %v1195_v46 }
 0x6fa   :  { %2322 = vrcp.f32 %v1228_v33  ;;  %vm1217_vm15 = vmor %vm1215_vm14, %vm1216_vm10  ;;  %v1204_v44 = vsel %vm1201_vm0, %v1203_v19, %v1199_v58  ;;  %v1240_v49 = vand.u32 2147483648, %v1228_v33  ;;  %vm1234_vm3 = vweird.f32 %v1228_v33 }
 0x6fb   :  { %v1212_v31 = vsub.f32 1.0, %v1211_v22  ;;  %v1238_v60 = vand.u32 2147483647, %v1228_v33 }
 0x6fc   :  { %v1241_v62 = vor.u32 1.1754944e-38, %v1240_v49 }
 0x6fd   :  { %v1213_v37 = vmul.f32 %v2319_v27, %v1212_v31  ;;  %v2321_v45 = vpop.eup %2320  ;;  %vm1239_vm5 = vcmp.eq.f32.partialorder %v1238_v60, 8.507059e+37 }
 0x6fe   :  { %v1246_v54 = vmul.f32 %v2321_v45, %v1204_v44 }
 0x6ff   :  { %v1214_v1 = vadd.f32 %v2319_v27, %v1213_v37 }
 0x700   :  { %v2323_v40 = vpop.eup %2322 }
 0x701   :  { %v1230_v52 = vmul.f32 %v2323_v40, %v1228_v33  ;;  %v1218_v43 = vsel %vm1217_vm15, %v2319_v27, %v1214_v1  ;;  %vm1235_vm2 = vweird.f32 %v2323_v40 }
 0x702   :  { %v1223_v42 = vsel %vm1220_vm1, %v1222_v41, %v1218_v43  ;;  %vm1236_vm4 = vmor %vm1234_vm3, %vm1235_vm2 }
 0x703   :  { %v1231_v51 = vsub.f32 1.0, %v1230_v52  ;;  %v1245_v53 = vmul.f32 %v1223_v42, %v2983_v15 }
 0x705   :  { %v3070_v56 = vadd.f32 %v1246_v54, %v1245_v53  ;;  %v1232_v55 = vmul.f32 %v2323_v40, %v1231_v51 }
 0x707   :  { %2324 = vtanh.f32 %v3070_v56  ;;  %v1233_v57 = vadd.f32 %v2323_v40, %v1232_v55 }
 0x709   :  { %v1237_v61 = vsel %vm1236_vm4, %v2323_v40, %v1233_v57 }
 0x70a   :  { %v1242_v5 = vsel %vm1239_vm5, %v1241_v62, %v1237_v61 }
 0x70d   :  { %v2325_v2 = vpop.eup %2324 }
 0x70e   :  { %v1249_v10 = vmul.f32 %v2325_v2, %v1242_v5 }
 0x710   :  { %2066 = vst.msk [vmem:[%s3281_s5 + $0x20] sm:$0xff] %vm129_vm12, %v1249_v10  ;;  %2075 = vmatmul.msk.f32.gmra.mxu1 %vm129_vm12, %v1249_v10  ;;  %2077 = vmatmul.msk.f32.gmra.mxu3 %vm129_vm12, %v1249_v10 }
 0x76d   :  { %v1347_v34 = vpop.f32.mrf.mxu1 }
 0x773   :  { %v1370_v15 = vpop.f32.mrf.mxu3 }
 0x78d   :  { %v1350_v12 = vpop.f32.mrf.mxu1 }
 0x793   :  { %v1373_v25 = vpop.f32.mrf.mxu3 }
 0x794   :  { %1386 = vmatpush.msrb.mxu1 %v1373_v25 }
 0x796   :  { %1387 = vmatpush.msrb.mxu1 %v1370_v15 }
 0x798   :  { %1388 = vmatpush.msrb.mxu1 %v1249_v10 }
 0x79a   :  { %1389 = vmatpush.msrb.mxu1 %v3058_v24 }
 0x79c   :  { %1390 = vmatpush.msrb.mxu1 %v1350_v12 }
 0x79e   :  { %1391 = vmatpush.msrb.mxu1 %v1347_v34 }
 0x79f   :  { %2078 = vmatmul.msk.f32.vlgmr.msrb.gmra.mxu1 %vm182_vm13, %v2897_v9  ;;  %v2090_v9 = vld [vmem:[%s3277_s0 + $0xc0] sm:$0xff] }
 0x7a7   :  { %2079 = vmatmul.msk.f32.gmra.mxu1 %vm182_vm13, %v2904_v63 }
 0x7af   :  { %2080 = vmatmul.msk.f32.gmra.mxu1 %vm182_vm13, %v2911_v3 }
 0x7b7   :  { %2081 = vmatmul.msk.f32.gmra.mxu1 %vm182_vm13, %v2918_v6  ;;  %v2091_v6 = vld [vmem:[%s3277_s0 + $0xc8] sm:$0xff] }
 0x7bf   :  { %2082 = vmatmul.msk.f32.gmra.mxu1 %vm182_vm13, %v2925_v8 }
 0x7c7   :  { %2083 = vmatmul.msk.f32.gmra.mxu1 %vm182_vm13, %v2932_v11 }
 0x7cf   :  { %2084 = vmatmul.msk.f32.gmra.mxu1 %vm182_vm13, %v2939_v13 }
 0x7d7   :  { %2085 = vmatmul.msk.f32.gmra.mxu1 %vm182_vm13, %v2946_v14  ;;  %v2092_v14 = vld [vmem:[%s3277_s0 + $0xd0] sm:$0xff] }
 0x81c   :  { %v1393_v63 = vpop.f32.mrf.mxu1 }
 0x81d   :  { %v1491_v3 = vadd.f32 %v2090_v9, %v1393_v63 }
 0x81f   :  { %v2094_v16 = vmul.f32 -1.442695, %v1491_v3 }
 0x821   :  { %2326 = vpow2.f32 %v2094_v16 }
 0x824   :  { %v1396_v8 = vpop.f32.mrf.mxu1 }
 0x825   :  { %v1492_v11 = vadd.f32 %v2091_v6, %v1396_v8 }
 0x827   :  { %v2327_v17 = vpop.eup %2326  ;;  %v2095_v18 = vmul.f32 -1.442695, %v1492_v11 }
 0x828   :  { %v1498_v13 = vadd.f32 1.0, %v2327_v17 }
 0x829   :  { %2328 = vpow2.f32 %v2095_v18 }
 0x82a   :  { %2330 = vrcp.f32 %v1498_v13  ;;  %vm1504_vm7 = vweird.f32 %v1498_v13  ;;  %v1508_v38 = vand.u32 2147483647, %v1498_v13  ;;  %v1510_v39 = vand.u32 2147483648, %v1498_v13 }
 0x82c   :  { %v1399_v24 = vpop.f32.mrf.mxu1  ;;  %vm1509_vm14 = vcmp.eq.f32.partialorder %v1508_v38, 8.507059e+37  ;;  %v1511_v53 = vor.u32 1.1754944e-38, %v1510_v39 }
 0x82d   :  { %v1493_v32 = vadd.f32 %v2092_v14, %v1399_v24 }
 0x82f   :  { %v2329_v28 = vpop.eup %2328  ;;  %v2096_v29 = vmul.f32 -1.442695, %v1493_v32 }
 0x830   :  { %v2331_v7 = vpop.eup %2330  ;;  %v1517_v30 = vadd.f32 1.0, %v2329_v28 }
 0x831   :  { %v1500_v20 = vmul.f32 %v2331_v7, %v1498_v13  ;;  %2332 = vpow2.f32 %v2096_v29  ;;  %vm1505_vm6 = vweird.f32 %v2331_v7  ;;  %v2422_v29 = vld [vmem:[%s3276_s3 + $0x18] sm:$0xff] }
 0x832   :  { %2334 = vrcp.f32 %v1517_v30  ;;  %v1529_v37 = vand.u32 2147483648, %v1517_v30  ;;  %v1527_v1 = vand.u32 2147483647, %v1517_v30  ;;  %vm3109_vm9 = vmor %vm1504_vm7, %vm1505_vm6  ;;  %vm1523_vm10 = vweird.f32 %v1517_v30 }
 0x833   :  { %v1501_v0 = vsub.f32 1.0, %v1500_v20 }
 0x834   :  { %v1402_v26 = vpop.f32.mrf.mxu1  ;;  %v1530_v51 = vor.u32 1.1754944e-38, %v1529_v37  ;;  %vm1528_vm15 = vcmp.eq.f32.partialorder %v1527_v1, 8.507059e+37 }
 0x835   :  { %v1494_v4 = vadd.f32 %v2093_v21, %v1402_v26  ;;  %v1502_v33 = vmul.f32 %v2331_v7, %v1501_v0  ;;  %v2424_v0 = vld [vmem:[%s3276_s3 + $0x8] sm:$0xff] }
 0x837   :  { %v2333_v27 = vpop.eup %2332  ;;  %2336 = vtanh.f32 %v1494_v4  ;;  %v1503_v48 = vadd.f32 %v2331_v7, %v1502_v33 }
 0x838   :  { %v2335_v22 = vpop.eup %2334  ;;  %v1536_v31 = vadd.f32 1.0, %v2333_v27  ;;  %v2425_v27 = vld [vmem:[%s3276_s3] sm:$0xff] }
 0x839   :  { %v1519_v46 = vmul.f32 %v2335_v22, %v1517_v30  ;;  %vm1524_vm8 = vweird.f32 %v2335_v22  ;;  %v1507_v52 = vsel %vm3109_vm9, %v2331_v7, %v1503_v48  ;;  %v2423_v30 = vld [vmem:[%s3276_s3 + $0x10] sm:$0xff] }
 0x83a   :  { %2338 = vrcp.f32 %v1536_v31  ;;  %vm1525_vm11 = vmor %vm1523_vm10, %vm1524_vm8  ;;  %v1512_v57 = vsel %vm1509_vm14, %v1511_v53, %v1507_v52  ;;  %v1548_v25 = vand.u32 2147483648, %v1536_v31  ;;  %vm1542_vm1 = vweird.f32 %v1536_v31 }
 0x83b   :  { %v1520_v36 = vsub.f32 1.0, %v1519_v46  ;;  %v1546_v3 = vand.u32 2147483647, %v1536_v31 }
 0x83c   :  { %v1405_v45 = vpop.f32.mrf.mxu1  ;;  %v1549_v16 = vor.u32 1.1754944e-38, %v1548_v25 }
 0x83d   :  { %v1521_v58 = vmul.f32 %v2335_v22, %v1520_v36  ;;  %v1417_v40 = vadd.f32 %v1405_v45, %v2647_v47  ;;  %v2337_v19 = vpop.eup %2336  ;;  %vm1547_vm3 = vcmp.eq.f32.partialorder %v1546_v3, 8.507059e+37  ;;  %v3154_v3 = vld [vmem:[%s3279_s1] sm:$0xff] }
 0x83e   :  { %v1554_v62 = vmul.f32 %v2337_v19, %v1512_v57 }
 0x83f   :  { %v1522_v43 = vadd.f32 %v2335_v22, %v1521_v58  ;;  %v2086_v44 = vmul.f32 -1.442695, %v1417_v40 }
 0x840   :  { %v2339_v42 = vpop.eup %2338 }
 0x841   :  { %v1538_v54 = vmul.f32 %v2339_v42, %v1536_v31  ;;  %v1526_v55 = vsel %vm1525_vm11, %v2335_v22, %v1522_v43  ;;  %2340 = vpow2.f32 %v2086_v44  ;;  %vm1543_vm0 = vweird.f32 %v2339_v42 }
 0x842   :  { %v1531_v49 = vsel %vm1528_vm15, %v1530_v51, %v1526_v55  ;;  %vm1544_vm2 = vmor %vm1542_vm1, %vm1543_vm0 }
 0x843   :  { %v1539_v60 = vsub.f32 1.0, %v1538_v54  ;;  %v1553_v61 = vmul.f32 %v1531_v49, %v3053_v59 }
 0x844   :  { %v1408_v2 = vpop.f32.mrf.mxu1 }
 0x845   :  { %v1540_v5 = vmul.f32 %v2339_v42, %v1539_v60  ;;  %v3116_v10 = vadd.f32 %v1554_v62, %v1553_v61  ;;  %v1418_v15 = vadd.f32 %v1408_v2, %v2657_v23 }
 0x847   :  { %v2341_v34 = vpop.eup %2340  ;;  %2342 = vtanh.f32 %v3116_v10  ;;  %v2087_v12 = vmul.f32 -1.442695, %v1418_v15  ;;  %v1541_v9 = vadd.f32 %v2339_v42, %v1540_v5 }
 0x848   :  { %v1424_v63 = vadd.f32 1.0, %v2341_v34 }
 0x849   :  { %2344 = vpow2.f32 %v2087_v12  ;;  %v1545_v59 = vsel %vm1544_vm2, %v2339_v42, %v1541_v9 }
 0x84a   :  { %2346 = vrcp.f32 %v1424_v63  ;;  %v1550_v17 = vsel %vm1547_vm3, %v1549_v16, %v1545_v59  ;;  %vm1430_vm5 = vweird.f32 %v1424_v63  ;;  %v1436_v37 = vand.u32 2147483648, %v1424_v63  ;;  %v3161_v59 = vld [vmem:[%s3279_s1 + $0x8] sm:$0xff]  ;;  %v3168_v16 = vld [vmem:[%s3279_s1 + $0x10] sm:$0xff] }
 0x84b   :  { %v1434_v39 = vand.u32 2147483647, %v1424_v63 }
 0x84c   :  { %v1411_v6 = vpop.f32.mrf.mxu1  ;;  %v1437_v52 = vor.u32 1.1754944e-38, %v1436_v37 }
 0x84d   :  { %v2343_v8 = vpop.eup %2342  ;;  %v1419_v11 = vadd.f32 %v1411_v6, %v2663_v35  ;;  %vm1435_vm10 = vcmp.eq.f32.partialorder %v1434_v39, 8.507059e+37  ;;  %v3175_v6 = vld [vmem:[%s3279_s1 + $0x18] sm:$0xff] }
 0x84e   :  { %v3121_v18 = vmul.f32 %v2343_v8, %v1550_v17  ;;  %v3182_v8 = vld [vmem:[%s3279_s1 + $0x20] sm:$0xff]  ;;  %v3196_v17 = vld [vmem:[%s3279_s1 + $0x30] sm:$0xff] }
 0x84f   :  { %v2345_v13 = vpop.eup %2344  ;;  %v2088_v14 = vmul.f32 -1.442695, %v1419_v11  ;;  %v3189_v11 = vld [vmem:[%s3279_s1 + $0x28] sm:$0xff] }
 0x850   :  { %v2347_v24 = vpop.eup %2346  ;;  %v1443_v32 = vadd.f32 1.0, %v2345_v13  ;;  %2097 = vmatmul.msk.f32.vlgmr.msra.gmra.mxu3 %vm129_vm12, %v3121_v18  ;;  %v2113_v13 = vld [vmem:[%s3277_s0 + $0xe0] sm:$0xff] }
 0x851   :  { %v1426_v28 = vmul.f32 %v2347_v24, %v1424_v63  ;;  %2348 = vpow2.f32 %v2088_v14  ;;  %1810 = vmatpush.msra.mxu3 %v2422_v29  ;;  %vm1431_vm4 = vweird.f32 %v2347_v24 }
 0x852   :  { %2350 = vrcp.f32 %v1443_v32  ;;  %v1455_v48 = vand.u32 2147483648, %v1443_v32  ;;  %v1453_v45 = vand.u32 2147483647, %v1443_v32  ;;  %vm1432_vm7 = vmor %vm1430_vm5, %vm1431_vm4  ;;  %vm1449_vm8 = vweird.f32 %v1443_v32 }
 0x853   :  { %v1427_v7 = vsub.f32 1.0, %v1426_v28  ;;  %1811 = vmatpush.msra.mxu3 %v2423_v30  ;;  %v2114_v28 = vld [vmem:[%s3277_s0 + $0xe8] sm:$0xff] }
 0x854   :  { %v1414_v20 = vpop.f32.mrf.mxu1  ;;  %v1456_v19 = vor.u32 1.1754944e-38, %v1455_v48  ;;  %vm1454_vm11 = vcmp.eq.f32.partialorder %v1453_v45, 8.507059e+37 }
 0x855   :  { %v1420_v21 = vadd.f32 %v1414_v20, %v2672_v50  ;;  %1812 = vmatpush.msra.mxu3 %v2424_v0  ;;  %v1428_v4 = vmul.f32 %v2347_v24, %v1427_v7  ;;  %v2115_v0 = vld [vmem:[%s3277_s0 + $0xf0] sm:$0xff] }
 0x857   :  { %v2349_v26 = vpop.eup %2348  ;;  %1813 = vmatpush.msra.mxu3 %v2425_v27  ;;  %2352 = vtanh.f32 %v1420_v21  ;;  %v1429_v36 = vadd.f32 %v2347_v24, %v1428_v4 }
 0x858   :  { %v2351_v33 = vpop.eup %2350  ;;  %v1462_v22 = vadd.f32 1.0, %v2349_v26 }
 0x859   :  { %v1445_v31 = vmul.f32 %v2351_v33, %v1443_v32  ;;  %vm1450_vm6 = vweird.f32 %v2351_v33  ;;  %v1433_v1 = vsel %vm1432_vm7, %v2347_v24, %v1429_v36  ;;  %v2116_v36 = vld [vmem:[%s3277_s0 + $0xf8] sm:$0xff] }
 0x85a   :  { %2354 = vrcp.f32 %v1462_v22  ;;  %vm1451_vm9 = vmor %vm1449_vm8, %vm1450_vm6  ;;  %v1438_v42 = vsel %vm1435_vm10, %v1437_v52, %v1433_v1  ;;  %v1474_v61 = vand.u32 2147483648, %v1462_v22  ;;  %vm1468_vm15 = vweird.f32 %v1462_v22 }
 0x85b   :  { %v1446_v46 = vsub.f32 1.0, %v1445_v31  ;;  %v1472_v62 = vand.u32 2147483647, %v1462_v22 }
 0x85c   :  { %v1475_v5 = vor.u32 1.1754944e-38, %v1474_v61 }
 0x85d   :  { %v1447_v38 = vmul.f32 %v2351_v33, %v1446_v46  ;;  %v2353_v58 = vpop.eup %2352  ;;  %vm1473_vm1 = vcmp.eq.f32.partialorder %v1472_v62, 8.507059e+37 }
 0x85e   :  { %v1480_v55 = vmul.f32 %v2353_v58, %v1438_v42 }
 0x85f   :  { %v1448_v40 = vadd.f32 %v2351_v33, %v1447_v38 }
 0x860   :  { %v2355_v41 = vpop.eup %2354 }
 0x861   :  { %v1464_v43 = vmul.f32 %v2355_v41, %v1462_v22  ;;  %v1452_v44 = vsel %vm1451_vm9, %v2351_v33, %v1448_v40  ;;  %vm1469_vm14 = vweird.f32 %v2355_v41 }
 0x862   :  { %v1457_v51 = vsel %vm1454_vm11, %v1456_v19, %v1452_v44  ;;  %vm1470_vm0 = vmor %vm1468_vm15, %vm1469_vm14 }
 0x863   :  { %v1465_v53 = vsub.f32 1.0, %v1464_v43  ;;  %v1479_v54 = vmul.f32 %v1457_v51, %v3070_v56 }
 0x865   :  { %v3139_v57 = vadd.f32 %v1480_v55, %v1479_v54  ;;  %v1466_v49 = vmul.f32 %v2355_v41, %v1465_v53 }
 0x867   :  { %2356 = vtanh.f32 %v3139_v57  ;;  %v1467_v60 = vadd.f32 %v2355_v41, %v1466_v49 }
 0x869   :  { %v1471_v2 = vsel %vm1470_vm0, %v2355_v41, %v1467_v60 }
 0x86a   :  { %v1476_v34 = vsel %vm1473_vm1, %v1475_v5, %v1471_v2 }
 0x86d   :  { %v2357_v15 = vpop.eup %2356 }
 0x86e   :  { %v1483_v25 = vmul.f32 %v2357_v15, %v1476_v34 }
 0x870   :  { %2089 = vst.msk [vmem:[%s3281_s5 + $0x28] sm:$0xff] %vm129_vm12, %v1483_v25  ;;  %2098 = vmatmul.msk.f32.gmra.mxu3 %vm129_vm12, %v1483_v25 }
 0x878   :  { %2099 = vmatmul.msk.f32.vlgmr.msrb.gmra.mxu3 %vm129_vm12, %v3121_v18 }
 0x880   :  { %2100 = vmatmul.msk.f32.gmra.mxu3 %vm129_vm12, %v1483_v25 }
 0x8d3   :  { %v1581_v56 = vpop.f32.mrf.mxu3 }
 0x8f3   :  { %v1584_v12 = vpop.f32.mrf.mxu3 }
 0x8fb   :  { %v1604_v9 = vpop.f32.mrf.mxu3 }
 0x903   :  { %v1607_v63 = vpop.f32.mrf.mxu3 }
 0x904   :  { %1620 = vmatpush.msra.mxu2 %v1607_v63 }
 0x906   :  { %1621 = vmatpush.msra.mxu2 %v1604_v9 }
 0x908   :  { %1622 = vmatpush.msra.mxu2 %v1483_v25 }
 0x90a   :  { %1623 = vmatpush.msra.mxu2 %v3121_v18  ;;  %v3203_v18 = vld [vmem:[%s3279_s1 + $0x38] sm:$0xff] }
 0x90c   :  { %1624 = vmatpush.msra.mxu2 %v1584_v12 }
 0x90e   :  { %1625 = vmatpush.msra.mxu2 %v1581_v56 }
 0x90f   :  { %2101 = vmatmul.msk.f32.vlgmr.msra.gmra.mxu2 %vm182_vm13, %v3154_v3 }
 0x917   :  { %2102 = vmatmul.msk.f32.gmra.mxu2 %vm182_vm13, %v3161_v59 }
 0x91f   :  { %2103 = vmatmul.msk.f32.gmra.mxu2 %vm182_vm13, %v3168_v16 }
 0x927   :  { %2104 = vmatmul.msk.f32.gmra.mxu2 %vm182_vm13, %v3175_v6 }
 0x92f   :  { %2105 = vmatmul.msk.f32.gmra.mxu2 %vm182_vm13, %v3182_v8 }
 0x937   :  { %2106 = vmatmul.msk.f32.gmra.mxu2 %vm182_vm13, %v3189_v11 }
 0x93f   :  { %2107 = vmatmul.msk.f32.gmra.mxu2 %vm182_vm13, %v3196_v17 }
 0x947   :  { %2108 = vmatmul.msk.f32.gmra.mxu2 %vm182_vm13, %v3203_v18 }
 0x992   :  { %v1627_v14 = vpop.f32.mrf.mxu2 }
 0x993   :  { %v1725_v24 = vadd.f32 %v2113_v13, %v1627_v14 }
 0x995   :  { %v2117_v32 = vmul.f32 -1.442695, %v1725_v24 }
 0x997   :  { %2358 = vpow2.f32 %v2117_v32 }
 0x99a   :  { %v1630_v29 = vpop.f32.mrf.mxu2 }
 0x99b   :  { %v1726_v7 = vadd.f32 %v2114_v28, %v1630_v29 }
 0x99d   :  { %v2359_v30 = vpop.eup %2358  ;;  %v2118_v20 = vmul.f32 -1.442695, %v1726_v7 }
 0x99e   :  { %v1732_v21 = vadd.f32 1.0, %v2359_v30 }
 0x99f   :  { %2360 = vpow2.f32 %v2118_v20 }
 0x9a0   :  { %2362 = vrcp.f32 %v1732_v21  ;;  %vm1738_vm3 = vweird.f32 %v1732_v21  ;;  %v1742_v43 = vand.u32 2147483647, %v1732_v21  ;;  %v1744_v44 = vand.u32 2147483648, %v1732_v21 }
 0x9a2   :  { %v1633_v26 = vpop.f32.mrf.mxu2  ;;  %vm1743_vm8 = vcmp.eq.f32.partialorder %v1742_v43, 8.507059e+37  ;;  %v1745_v15 = vor.u32 1.1754944e-38, %v1744_v44 }
 0x9a3   :  { %v1727_v4 = vadd.f32 %v2115_v0, %v1633_v26 }
 0x9a5   :  { %v2361_v27 = vpop.eup %2360  ;;  %v2119_v33 = vmul.f32 -1.442695, %v1727_v4 }
 0x9a6   :  { %v2363_v22 = vpop.eup %2362  ;;  %v1751_v31 = vadd.f32 1.0, %v2361_v27 }
 0x9a7   :  { %v1734_v46 = vmul.f32 %v2363_v22, %v1732_v21  ;;  %2364 = vpow2.f32 %v2119_v33  ;;  %vm1739_vm2 = vweird.f32 %v2363_v22 }
 0x9a8   :  { %2366 = vrcp.f32 %v1751_v31  ;;  %v1763_v52 = vand.u32 2147483648, %v1751_v31  ;;  %v1761_v53 = vand.u32 2147483647, %v1751_v31  ;;  %vm3220_vm5 = vmor %vm1738_vm3, %vm1739_vm2  ;;  %vm1757_vm6 = vweird.f32 %v1751_v31 }
 0x9a9   :  { %v1735_v48 = vsub.f32 1.0, %v1734_v46 }
 0x9aa   :  { %v1636_v37 = vpop.f32.mrf.mxu2  ;;  %v1764_v5 = vor.u32 1.1754944e-38, %v1763_v52  ;;  %vm1762_vm9 = vcmp.eq.f32.partialorder %v1761_v53, 8.507059e+37 }
 0x9ab   :  { %v1728_v38 = vadd.f32 %v2116_v36, %v1636_v37  ;;  %v1736_v45 = vmul.f32 %v2363_v22, %v1735_v48 }
 0x9ad   :  { %v2365_v39 = vpop.eup %2364  ;;  %2368 = vtanh.f32 %v1728_v38  ;;  %v1737_v19 = vadd.f32 %v2363_v22, %v1736_v45 }
 0x9ae   :  { %v2367_v58 = vpop.eup %2366  ;;  %v1770_v1 = vadd.f32 1.0, %v2365_v39 }
 0x9af   :  { %v1753_v40 = vmul.f32 %v2367_v58, %v1751_v31  ;;  %vm1758_vm4 = vweird.f32 %v2367_v58  ;;  %v1741_v60 = vsel %vm3220_vm5, %v2363_v22, %v1737_v19 }
 0x9b0   :  { %2370 = vrcp.f32 %v1770_v1  ;;  %vm1759_vm7 = vmor %vm1757_vm6, %vm1758_vm4  ;;  %v1746_v56 = vsel %vm1743_vm8, %v1745_v15, %v1741_v60  ;;  %v1782_v7 = vand.u32 2147483648, %v1770_v1  ;;  %vm1776_vm11 = vweird.f32 %v1770_v1 }
 0x9b1   :  { %v1754_v41 = vsub.f32 1.0, %v1753_v40  ;;  %v1780_v0 = vand.u32 2147483647, %v1770_v1 }
 0x9b2   :  { %v1639_v42 = vpop.f32.mrf.mxu2 }
 0x9b3   :  { %v1755_v51 = vmul.f32 %v2367_v58, %v1754_v41  ;;  %v1651_v54 = vadd.f32 %v1639_v42, %v2647_v47  ;;  %v2369_v49 = vpop.eup %2368  ;;  %vm1781_vm15 = vcmp.eq.f32.partialorder %v1780_v0, 8.507059e+37 }
 0x9b4   :  { %v1788_v13 = vmul.f32 %v2369_v49, %v1746_v56 }
 0x9b5   :  { %v1756_v61 = vadd.f32 %v2367_v58, %v1755_v51  ;;  %v2109_v62 = vmul.f32 -1.442695, %v1651_v54 }
 0x9b6   :  { %v2371_v2 = vpop.eup %2370 }
 0x9b7   :  { %v1772_v34 = vmul.f32 %v2371_v2, %v1770_v1  ;;  %v1760_v25 = vsel %vm1759_vm7, %v2367_v58, %v1756_v61  ;;  %2372 = vpow2.f32 %v2109_v62  ;;  %vm1777_vm10 = vweird.f32 %v2371_v2 }
 0x9b8   :  { %v1765_v12 = vsel %vm1762_vm9, %v1764_v5, %v1760_v25  ;;  %vm1778_vm14 = vmor %vm1776_vm11, %vm1777_vm10 }
 0x9b9   :  { %v1773_v9 = vsub.f32 1.0, %v1772_v34  ;;  %v1787_v63 = vmul.f32 %v1765_v12, %v3116_v10  ;;  %v1783_v10 = vor.u32 1.1754944e-38, %v1782_v7 }
 0x9ba   :  { %v1642_v14 = vpop.f32.mrf.mxu2 }
 0x9bb   :  { %v1774_v24 = vmul.f32 %v2371_v2, %v1773_v9  ;;  %v1789_v32 = vadd.f32 %v1788_v13, %v1787_v63  ;;  %v1652_v28 = vadd.f32 %v1642_v14, %v2657_v23 }
 0x9bd   :  { %v2373_v29 = vpop.eup %2372  ;;  %2374 = vtanh.f32 %v1789_v32  ;;  %v2110_v30 = vmul.f32 -1.442695, %v1652_v28  ;;  %v1775_v20 = vadd.f32 %v2371_v2, %v1774_v24 }
 0x9be   :  { %v1658_v21 = vadd.f32 1.0, %v2373_v29 }
 0x9bf   :  { %2376 = vpow2.f32 %v2110_v30  ;;  %v1779_v26 = vsel %vm1778_vm14, %v2371_v2, %v1775_v20 }
 0x9c0   :  { %2378 = vrcp.f32 %v1658_v21  ;;  %v1784_v22 = vsel %vm1781_vm15, %v1783_v10, %v1779_v26  ;;  %vm1664_vm1 = vweird.f32 %v1658_v21  ;;  %v1670_v51 = vand.u32 2147483648, %v1658_v21 }
 0x9c1   :  { %v1668_v54 = vand.u32 2147483647, %v1658_v21 }
 0x9c2   :  { %v1645_v4 = vpop.f32.mrf.mxu2  ;;  %v1671_v5 = vor.u32 1.1754944e-38, %v1670_v51 }
 0x9c3   :  { %v2375_v27 = vpop.eup %2374  ;;  %v1653_v33 = vadd.f32 %v1645_v4, %v2663_v35  ;;  %vm1669_vm6 = vcmp.eq.f32.partialorder %v1668_v54, 8.507059e+37 }
 0x9c4   :  { %v3229_v31 = vmul.f32 %v2375_v27, %v1784_v22 }
 0x9c5   :  { %v2377_v46 = vpop.eup %2376  ;;  %v2111_v36 = vmul.f32 -1.442695, %v1653_v33 }
 0x9c6   :  { %v2379_v48 = vpop.eup %2378  ;;  %v1677_v37 = vadd.f32 1.0, %v2377_v46  ;;  %2120 = vmatmul.msk.f32.vlgmr.msra.gmra.mxu3 %vm129_vm12, %v3229_v31  ;;  %2122 = vmatmul.msk.f32.vlgmr.msra.gmra.mxu0 %vm129_vm12, %v3229_v31 }
 0x9c7   :  { %v1660_v38 = vmul.f32 %v2379_v48, %v1658_v21  ;;  %2380 = vpow2.f32 %v2111_v36  ;;  %vm1665_vm0 = vweird.f32 %v2379_v48 }
 0x9c8   :  { %2382 = vrcp.f32 %v1677_v37  ;;  %v1689_v42 = vand.u32 2147483648, %v1677_v37  ;;  %v1687_v55 = vand.u32 2147483647, %v1677_v37  ;;  %vm1666_vm3 = vmor %vm1664_vm1, %vm1665_vm0  ;;  %vm1683_vm4 = vweird.f32 %v1677_v37 }
 0x9c9   :  { %v1661_v39 = vsub.f32 1.0, %v1660_v38 }
 0x9ca   :  { %v1648_v45 = vpop.f32.mrf.mxu2  ;;  %v1690_v2 = vor.u32 1.1754944e-38, %v1689_v42  ;;  %vm1688_vm7 = vcmp.eq.f32.partialorder %v1687_v55, 8.507059e+37 }
 0x9cb   :  { %v1654_v58 = vadd.f32 %v1648_v45, %v2672_v50  ;;  %v1662_v40 = vmul.f32 %v2379_v48, %v1661_v39 }
 0x9cd   :  { %v2381_v1 = vpop.eup %2380  ;;  %2384 = vtanh.f32 %v1654_v58  ;;  %v1663_v44 = vadd.f32 %v2379_v48, %v1662_v40 }
 0x9ce   :  { %v2383_v41 = vpop.eup %2382  ;;  %v1696_v19 = vadd.f32 1.0, %v2381_v1 }
 0x9cf   :  { %v1679_v52 = vmul.f32 %v2383_v41, %v1677_v37  ;;  %vm1684_vm2 = vweird.f32 %v2383_v41  ;;  %v1667_v60 = vsel %vm1666_vm3, %v2379_v48, %v1663_v44 }
 0x9d0   :  { %2386 = vrcp.f32 %v1696_v19  ;;  %vm1685_vm5 = vmor %vm1683_vm4, %vm1684_vm2  ;;  %v1672_v25 = vsel %vm1669_vm6, %v1671_v5, %v1667_v60  ;;  %v1708_v32 = vand.u32 2147483648, %v1696_v19  ;;  %vm1702_vm9 = vweird.f32 %v1696_v19 }
 0x9d1   :  { %v1680_v43 = vsub.f32 1.0, %v1679_v52  ;;  %v1706_v28 = vand.u32 2147483647, %v1696_v19 }
 0x9d2   :  { %v1709_v7 = vor.u32 1.1754944e-38, %v1708_v32 }
 0x9d3   :  { %v1681_v53 = vmul.f32 %v2383_v41, %v1680_v43  ;;  %v2385_v49 = vpop.eup %2384  ;;  %vm1707_vm11 = vcmp.eq.f32.partialorder %v1706_v28, 8.507059e+37 }
 0x9d4   :  { %v1714_v63 = vmul.f32 %v2385_v49, %v1672_v25 }
 0x9d5   :  { %v1682_v61 = vadd.f32 %v2383_v41, %v1681_v53 }
 0x9d6   :  { %v2387_v62 = vpop.eup %2386 }
 0x9d7   :  { %v1698_v15 = vmul.f32 %v2387_v62, %v1696_v19  ;;  %v1686_v34 = vsel %vm1685_vm5, %v2383_v41, %v1682_v61  ;;  %vm1703_vm8 = vweird.f32 %v2387_v62 }
 0x9d8   :  { %v1691_v56 = vsel %vm1688_vm7, %v1690_v2, %v1686_v34  ;;  %vm1704_vm10 = vmor %vm1702_vm9, %vm1703_vm8 }
 0x9d9   :  { %v1699_v12 = vsub.f32 1.0, %v1698_v15  ;;  %v1713_v9 = vmul.f32 %v1691_v56, %v3139_v57 }
 0x9db   :  { %v3237_v13 = vadd.f32 %v1714_v63, %v1713_v9  ;;  %v1700_v14 = vmul.f32 %v2387_v62, %v1699_v12 }
 0x9dd   :  { %2388 = vtanh.f32 %v3237_v13  ;;  %v1701_v24 = vadd.f32 %v2387_v62, %v1700_v14 }
 0x9df   :  { %v1705_v29 = vsel %vm1704_vm10, %v2387_v62, %v1701_v24 }
 0x9e0   :  { %v1710_v20 = vsel %vm1707_vm11, %v1709_v7, %v1705_v29 }
 0x9e3   :  { %v2389_v30 = vpop.eup %2388 }
 0x9e4   :  { %v1717_v21 = vmul.f32 %v2389_v30, %v1710_v20 }
 0x9e6   :  { %2112 = vst.msk [vmem:[%s3281_s5 + $0x30] sm:$0xff] %vm129_vm12, %v1717_v21  ;;  %2121 = vmatmul.msk.f32.gmra.mxu3 %vm129_vm12, %v1717_v21  ;;  %2123 = vmatmul.msk.f32.gmra.mxu0 %vm129_vm12, %v1717_v21 }
 0xa43   :  { %v1838_v57 = vpop.f32.mrf.mxu0 }
 0xa49   :  { %v1815_v0 = vpop.f32.mrf.mxu3 }
 0xa63   :  { %v1841_v26 = vpop.f32.mrf.mxu0 }
 0xa64   :  { %1854 = vmatpush.msrb.mxu3 %v1841_v26 }
 0xa66   :  { %1855 = vmatpush.msrb.mxu3 %v1838_v57 }
 0xa68   :  { %1856 = vmatpush.msrb.mxu3 %v1717_v21 }
 0xa69   :  { %v1818_v10 = vpop.f32.mrf.mxu3 }
 0xa6a   :  { %1857 = vmatpush.msrb.mxu3 %v3229_v31 }
 0xa6c   :  { %1858 = vmatpush.msrb.mxu3 %v1818_v10 }
 0xa6e   :  { %1859 = vmatpush.msrb.mxu3 %v1815_v0 }
 0xa6f   :  { %2124 = vmatmul.msk.f32.vlgmr.msrb.gmra.mxu3 %vm182_vm13, %v3154_v3 }
 0xa77   :  { %2125 = vmatmul.msk.f32.gmra.mxu3 %vm182_vm13, %v3161_v59 }
 0xa7f   :  { %2126 = vmatmul.msk.f32.gmra.mxu3 %vm182_vm13, %v3168_v16 }
 0xa87   :  { %2127 = vmatmul.msk.f32.gmra.mxu3 %vm182_vm13, %v3175_v6 }
 0xa8f   :  { %2128 = vmatmul.msk.f32.gmra.mxu3 %vm182_vm13, %v3182_v8 }
 0xa97   :  { %2129 = vmatmul.msk.f32.gmra.mxu3 %vm182_vm13, %v3189_v11 }
 0xa9f   :  { %2130 = vmatmul.msk.f32.gmra.mxu3 %vm182_vm13, %v3196_v17 }
 0xaa7   :  { %2131 = vmatmul.msk.f32.gmra.mxu3 %vm182_vm13, %v3203_v18 }
 0xaf2   :  { %v1861_v3 = vpop.f32.mrf.mxu3 }
 0xafa   :  { %v1863_v59 = vpop.f32.mrf.mxu3 }
 0xb02   :  { %v1865_v4 = vpop.f32.mrf.mxu3 }
 0xb0a   :  { %v1867_v27 = vpop.f32.mrf.mxu3 }
 0xb12   :  { %v1869_v16 = vpop.f32.mrf.mxu3 }
 0xb13   :  { %v1881_v33 = vadd.f32 %v1869_v16, %v2647_v47 }
 0xb15   :  { %v2132_v6 = vmul.f32 -1.442695, %v1881_v33 }
 0xb17   :  { %2390 = vpow2.f32 %v2132_v6 }
 0xb1a   :  { %v1872_v22 = vpop.f32.mrf.mxu3 }
 0xb1b   :  { %v1882_v8 = vadd.f32 %v1872_v22, %v2657_v23 }
 0xb1d   :  { %v2391_v31 = vpop.eup %2390  ;;  %v2133_v11 = vmul.f32 -1.442695, %v1882_v8 }
 0xb1e   :  { %v1888_v46 = vadd.f32 1.0, %v2391_v31 }
 0xb1f   :  { %2392 = vpow2.f32 %v2133_v11 }
 0xb20   :  { %2394 = vrcp.f32 %v1888_v46  ;;  %vm1894_vm14 = vweird.f32 %v1888_v46  ;;  %v1900_v44 = vand.u32 2147483648, %v1888_v46  ;;  %v1898_v51 = vand.u32 2147483647, %v1888_v46 }
 0xb22   :  { %v1875_v17 = vpop.f32.mrf.mxu3  ;;  %v1901_v61 = vor.u32 1.1754944e-38, %v1900_v44  ;;  %vm1899_vm3 = vcmp.eq.f32.partialorder %v1898_v51, 8.507059e+37 }
 0xb23   :  { %v1883_v18 = vadd.f32 %v1875_v17, %v2663_v35 }
 0xb25   :  { %v2393_v36 = vpop.eup %2392  ;;  %v2134_v48 = vmul.f32 -1.442695, %v1883_v18 }
 0xb26   :  { %v2395_v37 = vpop.eup %2394  ;;  %v1907_v38 = vadd.f32 1.0, %v2393_v36 }
 0xb27   :  { %v1890_v39 = vmul.f32 %v2395_v37, %v1888_v46  ;;  %2396 = vpow2.f32 %v2134_v48  ;;  %vm1895_vm13 = vweird.f32 %v2395_v37 }
 0xb28   :  { %2398 = vrcp.f32 %v1907_v38  ;;  %v1919_v43 = vand.u32 2147483648, %v1907_v38  ;;  %v1917_v53 = vand.u32 2147483647, %v1907_v38  ;;  %vm1896_vm0 = vmor %vm1894_vm14, %vm1895_vm13  ;;  %vm1913_vm1 = vweird.f32 %v1907_v38 }
 0xb29   :  { %v1891_v47 = vsub.f32 1.0, %v1890_v39 }
 0xb2a   :  { %v1878_v45 = vpop.f32.mrf.mxu3  ;;  %v1920_v60 = vor.u32 1.1754944e-38, %v1919_v43  ;;  %vm1918_vm4 = vcmp.eq.f32.partialorder %v1917_v53, 8.507059e+37 }
 0xb2b   :  { %v1884_v58 = vadd.f32 %v1878_v45, %v2672_v50  ;;  %v1892_v1 = vmul.f32 %v2395_v37, %v1891_v47 }
 0xb2d   :  { %v2397_v23 = vpop.eup %2396  ;;  %2400 = vtanh.f32 %v1884_v58  ;;  %v1893_v35 = vadd.f32 %v2395_v37, %v1892_v1 }
 0xb2e   :  { %v2399_v40 = vpop.eup %2398  ;;  %v1926_v41 = vadd.f32 1.0, %v2397_v23 }
 0xb2f   :  { %v1909_v19 = vmul.f32 %v2399_v40, %v1907_v38  ;;  %vm1914_vm15 = vweird.f32 %v2399_v40  ;;  %v1897_v50 = vsel %vm1896_vm0, %v2395_v37, %v1893_v35 }
 0xb30   :  { %2402 = vrcp.f32 %v1926_v41  ;;  %vm1915_vm2 = vmor %vm1913_vm1, %vm1914_vm15  ;;  %v1902_v5 = vsel %vm1899_vm3, %v1901_v61, %v1897_v50  ;;  %v1938_v14 = vand.u32 2147483648, %v1926_v41  ;;  %vm1932_vm6 = vweird.f32 %v1926_v41 }
 0xb31   :  { %v1910_v52 = vsub.f32 1.0, %v1909_v19  ;;  %v1936_v24 = vand.u32 2147483647, %v1926_v41 }
 0xb32   :  { %v1939_v28 = vor.u32 1.1754944e-38, %v1938_v14 }
 0xb33   :  { %v1911_v42 = vmul.f32 %v2399_v40, %v1910_v52  ;;  %v2401_v54 = vpop.eup %2400  ;;  %vm1937_vm8 = vcmp.eq.f32.partialorder %v1936_v24, 8.507059e+37 }
 0xb34   :  { %v1944_v56 = vmul.f32 %v2401_v54, %v1902_v5 }
 0xb35   :  { %v1912_v55 = vadd.f32 %v2399_v40, %v1911_v42 }
 0xb36   :  { %v2403_v49 = vpop.eup %2402 }
 0xb37   :  { %v1928_v62 = vmul.f32 %v2403_v49, %v1926_v41  ;;  %v1916_v2 = vsel %vm1915_vm2, %v2399_v40, %v1912_v55  ;;  %vm1933_vm5 = vweird.f32 %v2403_v49 }
 0xb38   :  { %v1921_v15 = vsel %vm1918_vm4, %v1920_v60, %v1916_v2  ;;  %vm1934_vm7 = vmor %vm1932_vm6, %vm1933_vm5 }
 0xb39   :  { %v1929_v34 = vsub.f32 1.0, %v1928_v62  ;;  %v1943_v25 = vmul.f32 %v1921_v15, %v3237_v13 }
 0xb3b   :  { %v1930_v12 = vmul.f32 %v2403_v49, %v1929_v34  ;;  %v1945_v9 = vadd.f32 %v1944_v56, %v1943_v25 }
 0xb3d   :  { %v1931_v63 = vadd.f32 %v2403_v49, %v1930_v12  ;;  %2404 = vtanh.f32 %v1945_v9  ;;  %1950 = vst.msk [vmem:[%s3282_s6] sm:$0xff] %vm129_vm12, %v1945_v9 }
 0xb3f   :  { %v1935_v32 = vsel %vm1934_vm7, %v2403_v49, %v1931_v63 }
 0xb40   :  { %v1940_v13 = vsel %vm1937_vm8, %v1939_v28, %v1935_v32 }
 0xb43   :  { %v2405_v29 = vpop.eup %2404 }
 0xb44   :  { %v1947_v7 = vmul.f32 %v2405_v29, %v1940_v13 }
 0xb46   :  { %2135 = vst.msk [vmem:[%s3281_s5 + $0x38] sm:$0xff] %vm129_vm12, %v1947_v7 }

</bundles_post_ra>
